<compile_context>
chip_gen: v5e
topology: v5e:2x2
jax: 0.10.0
libtpu: 0.0.40
codegen_flags: <defaults>
</compile_context>

<pallas_src>
import jax
import jax.numpy as jnp
import numpy as np
from jax.experimental import pallas as pl
from jax.experimental.pallas import tpu as pltpu

_LANE = 128      # lane width: mid/out channel dims padded to a multiple of this
_LP = 16         # left halo pad of the mid scratch = bf16 sublane tile -> aligned store
_SMALL_CIN = 32  # below this, conv1 is fully im2col-packed in the wrapper (9*Cin lanes)


def _round_up(v, m):
    return ((v + m - 1) // m) * m


def _make_kernel(H, W, conv1_packed):
    """Build the per-image kernel. Static config (H, W, packing mode) via closure."""

    def kernel(x_ref, w1_ref, b1_ref, w2_ref, b2_ref, o_ref, mid_ref):
        # x_ref  : (1, H*W, 9*Cin) bf16           (conv1_packed)   -- wrapper im2col
        #          (1, H+2, W+2, Cin) bf16        (otherwise)      -- spatially padded
        # w1_ref : (n_dy1, K1, Cmid_p) bf16, BN1 scale folded in
        # b1_ref : (1, Cmid_p) f32
        # w2_ref : (3, 3*Cmid_p, Cout_p) bf16, BN2 scale folded in
        # b2_ref : (1, Cout_p) f32
        # o_ref  : (1, H*W, Cout_p) f32 (lane-dense)
        # mid_ref: (H+2, _LP + W + _LP, Cmid_p) bf16 VMEM scratch (intermediate + halo)
        Cmid_p = mid_ref.shape[2]
        n_dy1 = w1_ref.shape[0]
        K1 = w1_ref.shape[1]
        mid_w = mid_ref.shape[1]

        # ---- conv1 (+ folded BN1 scale): taps concatenated into K ----
        acc1 = None
        for dy in range(n_dy1):
            if conv1_packed:
                patch = x_ref[0]                                   # (H*W, 9*Cin), bf16
            else:
                # concatenate the 3 dx taps along lanes -> K = 3*Cin per dy
                patch = jnp.concatenate(
                    [x_ref[0, dy:dy + H, dx:dx + W, :] for dx in range(3)],
                    axis=-1).reshape(H * W, K1)
            d = jnp.dot(patch, w1_ref[dy], preferred_element_type=jnp.float32)
            acc1 = d if acc1 is None else acc1 + d
        # BN1 bias + ReLU in f32 (scale folded into w1); cast once to bf16 for staging.
        h = jnp.maximum(acc1 + b1_ref[...], 0.0).astype(jnp.bfloat16)

        # ---- stage the intermediate in bf16 VMEM with a zero halo for conv2 ----
        # Interior store starts at sublane offset _LP = 16 (bf16 tile) -> aligned,
        # unmasked store. Only the thin halo conv2 reads is zeroed, and it is
        # zeroed every step (scratch is per-core and uninitialized; with the
        # parallel batch axis a core may never run grid step 0).
        zero_row = jnp.zeros((1, mid_w, Cmid_p), jnp.bfloat16)
        zero_col = jnp.zeros((H, 1, Cmid_p), jnp.bfloat16)
        mid_ref[0:1, :, :] = zero_row
        mid_ref[H + 1:H + 2, :, :] = zero_row
        mid_ref[1:H + 1, _LP - 1:_LP, :] = zero_col
        mid_ref[1:H + 1, _LP + W:_LP + W + 1, :] = zero_col
        mid_ref[1:H + 1, _LP:_LP + W, :] = h.reshape(H, W, Cmid_p)

        # ---- conv2 (+ folded BN2 scale): 3 dx taps concatenated -> K = 3*Cmid_p ----
        acc2 = None
        for dy in range(3):
            patch = jnp.concatenate(
                [mid_ref[dy:dy + H, _LP - 1 + dx:_LP - 1 + dx + W, :]
                 for dx in range(3)],
                axis=-1).reshape(H * W, 3 * Cmid_p)
            d = jnp.dot(patch, w2_ref[dy], preferred_element_type=jnp.float32)
            acc2 = d if acc2 is None else acc2 + d
        out = jnp.maximum(acc2 + b2_ref[...], 0.0)

        # Cout padded to the 128-lane width -> unmasked, lane-dense store.
        o_ref[0] = out.astype(o_ref.dtype)

    return kernel


def double_conv_pallas(x_nchw, params, eps=1e-5):
    """x_nchw: (N, Cin, H, W) float32. Returns (N, Cout, H, W) float32."""
    (w1, g1, beta1, m1, v1, w2, g2, beta2, m2, v2) = params

    # Fold BatchNorm (inference) into per-channel scale/bias; fold the scale
    # into the conv weights (per-output-channel scale commutes with conv).
    s1 = g1 / jnp.sqrt(v1 + eps)
    b1 = beta1 - m1 * s1
    s2 = g2 / jnp.sqrt(v2 + eps)
    b2 = beta2 - m2 * s2

    N, Cin, H, W = x_nchw.shape
    Cmid = w1.shape[0]
    Cout = w2.shape[0]
    Cmid_p = _round_up(Cmid, _LANE)
    Cout_p = _round_up(Cout, _LANE)
    mid_w = _LP + W + _LP
    conv1_packed = Cin <= _SMALL_CIN

    # ---- weights: OIHW -> (kh, kw, Ci, Co), fold BN scale, pad Co (and the
    #      conv2 Cmid contraction) to the lane width, concatenate taps into the
    #      contraction dim, cast to bf16. ----
    w1t = jnp.transpose(w1, (2, 3, 1, 0)).astype(jnp.float32) * s1[None, None, None, :]
    w1p = jnp.pad(w1t, ((0, 0), (0, 0), (0, 0), (0, Cmid_p - Cmid)))
    if conv1_packed:
        w1k = w1p.reshape(1, 9 * Cin, Cmid_p).astype(jnp.bfloat16)   # K order (dy, dx, cin)
    else:
        w1k = w1p.reshape(3, 3 * Cin, Cmid_p).astype(jnp.bfloat16)   # per-dy K order (dx, cin)

    w2t = jnp.transpose(w2, (2, 3, 1, 0)).astype(jnp.float32) * s2[None, None, None, :]
    w2p = jnp.pad(w2t, ((0, 0), (0, 0), (0, Cmid_p - Cmid), (0, Cout_p - Cout)))
    w2k = w2p.reshape(3, 3 * Cmid_p, Cout_p).astype(jnp.bfloat16)    # per-dy K order (dx, cmid)

    b1p = jnp.pad(b1, (0, Cmid_p - Cmid))[None, :].astype(jnp.float32)
    b2p = jnp.pad(b2, (0, Cout_p - Cout))[None, :].astype(jnp.float32)

    # ---- activations: NCHW -> NHWC, zero-pad spatially (SAME), bf16 once. ----
    x = jnp.transpose(x_nchw, (0, 2, 3, 1))
    x_pad = jnp.pad(x, ((0, 0), (1, 1), (1, 1), (0, 0))).astype(jnp.bfloat16)
    if conv1_packed:
        # Shifted-copy im2col: lane axis carries 9*Cin, conv1 becomes a single
        # fat matmul and no spatial halo is needed for it in the kernel.
        parts = [x_pad[:, dy:dy + H, dx:dx + W, :]
                 for dy in range(3) for dx in range(3)]
        x_in = jnp.concatenate(parts, axis=-1).reshape(N, H * W, 9 * Cin)
        x_spec = pl.BlockSpec((1, H * W, 9 * Cin), lambda n: (n, 0, 0))
    else:
        x_in = x_pad
        x_spec = pl.BlockSpec((1, H + 2, W + 2, Cin), lambda n: (n, 0, 0, 0))

    # Grid-invariant weights/biases: index_map is always block 0, so
    # single-buffer them (no re-DMA happens anyway; this halves their VMEM).
    single = pl.Buffered(buffer_count=1)
    w1_spec = pl.BlockSpec(w1k.shape, lambda n: (0, 0, 0), pipeline_mode=single)
    b1_spec = pl.BlockSpec(b1p.shape, lambda n: (0, 0), pipeline_mode=single)
    w2_spec = pl.BlockSpec(w2k.shape, lambda n: (0, 0, 0), pipeline_mode=single)
    b2_spec = pl.BlockSpec(b2p.shape, lambda n: (0, 0), pipeline_mode=single)

    # Per-generation VMEM limit (v5e/v6e: 128 MiB physical, v7x: 64 MiB).
    try:
        vmem_cap = int(pltpu.get_tpu_info().vmem_capacity_bytes)
    except Exception:
        vmem_cap = 64 * 1024 * 1024
    vmem_limit = min(int(0.75 * vmem_cap), 100 * 1024 * 1024)

    kernel = _make_kernel(H, W, conv1_packed)

    out_p = pl.pallas_call(
        kernel,
        out_shape=jax.ShapeDtypeStruct((N, H * W, Cout_p), jnp.float32),
        grid_spec=pltpu.PrefetchScalarGridSpec(
            num_scalar_prefetch=0,
            grid=(N,),
            in_specs=[x_spec, w1_spec, b1_spec, w2_spec, b2_spec],
            out_specs=pl.BlockSpec((1, H * W, Cout_p), lambda n: (n, 0, 0)),
            scratch_shapes=[pltpu.VMEM((H + 2, mid_w, Cmid_p), jnp.bfloat16)],
        ),
        compiler_params=pltpu.CompilerParams(
            dimension_semantics=("parallel",),
            vmem_limit_bytes=vmem_limit),
    )(x_in, w1k, b1p, w2k, b2p)

    # Drop the channel padding and go back to NCHW.
    out = out_p.reshape(N, H, W, Cout_p)[..., :Cout]
    return jnp.transpose(out, (0, 3, 1, 2))


def double_conv_ref(x_nchw, params, eps=1e-5):
    """Pure-JAX f32 reference (inference-mode BN)."""
    (w1, g1, beta1, m1, v1, w2, g2, beta2, m2, v2) = params
    s1 = g1 / jnp.sqrt(v1 + eps)
    b1 = beta1 - m1 * s1
    s2 = g2 / jnp.sqrt(v2 + eps)
    b2 = beta2 - m2 * s2
    dn = ("NCHW", "OIHW", "NCHW")
    y = jax.lax.conv_general_dilated(x_nchw, w1, (1, 1), "SAME",
                                     dimension_numbers=dn)
    y = jnp.maximum(y * s1[None, :, None, None] + b1[None, :, None, None], 0.0)
    y = jax.lax.conv_general_dilated(y, w2, (1, 1), "SAME",
                                     dimension_numbers=dn)
    y = jnp.maximum(y * s2[None, :, None, None] + b2[None, :, None, None], 0.0)
    return y


if __name__ == "__main__":
    # Small shapes: batch=2, in_channels=4, mid=out=8, spatial=16x16.
    N, Cin, Cmid, Cout, H, W = 2, 4, 8, 8, 16, 16

    key = jax.random.PRNGKey(0)
    keys = jax.random.split(key, 9)

    x = jax.random.normal(keys[0], (N, Cin, H, W), dtype=jnp.float32)

    # Deterministic parameter init (shapes follow nn.Conv2d / nn.BatchNorm2d).
    w1 = 0.1 * jax.random.normal(keys[1], (Cmid, Cin, 3, 3), dtype=jnp.float32)
    g1 = 1.0 + 0.1 * jax.random.normal(keys[2], (Cmid,), dtype=jnp.float32)
    beta1 = 0.1 * jax.random.normal(keys[3], (Cmid,), dtype=jnp.float32)
    m1 = 0.1 * jax.random.normal(keys[4], (Cmid,), dtype=jnp.float32)
    v1 = jnp.abs(jax.random.normal(keys[5], (Cmid,), dtype=jnp.float32)) + 0.5

    w2 = 0.1 * jax.random.normal(keys[6], (Cout, Cmid, 3, 3), dtype=jnp.float32)
    g2 = 1.0 + 0.1 * jax.random.normal(keys[7], (Cout,), dtype=jnp.float32)
    beta2 = 0.1 * jax.random.normal(keys[8], (Cout,), dtype=jnp.float32)
    m2 = jnp.zeros((Cout,), jnp.float32)
    v2 = jnp.ones((Cout,), jnp.float32)

    params = (w1, g1, beta1, m1, v1, w2, g2, beta2, m2, v2)

    out = double_conv_pallas(x, params)
    out = jax.block_until_ready(out)

    ref = jax.block_until_ready(double_conv_ref(x, params))
    # Kernel matmuls use bf16 operands (f32 accumulation); compare against the
    # f32 reference with a tolerance sized for bf16 input rounding.
    np.testing.assert_allclose(np.asarray(out), np.asarray(ref),
                               atol=2e-2, rtol=2e-2)
    print("KERNEL_OK")
</pallas_src>

<mosaic_0001>
module attributes {stable_mosaic.version = 11 : i64} {
  func.func @kernel(%arg0: i32, %arg1: memref<1x256x36xbf16, #tpu.memory_space<vmem>>, %arg2: memref<1x36x128xbf16, #tpu.memory_space<vmem>>, %arg3: memref<1x128xf32, #tpu.memory_space<vmem>>, %arg4: memref<3x384x128xbf16, #tpu.memory_space<vmem>>, %arg5: memref<1x128xf32, #tpu.memory_space<vmem>>, %arg6: memref<1x256x128xf32, #tpu.memory_space<vmem>>, %arg7: memref<18x48x128xbf16, #tpu.memory_space<vmem>>) attributes {dimension_semantics = [#tpu.dimension_semantics<parallel>], iteration_bounds = array<i64: 2>, scalar_prefetch = 0 : i64, scratch_operands = 1 : i64, tpu.core_type = #tpu.core_type<tc>, window_params = [{transform_indices = @transform_0, window_bounds = array<i64: 1, 256, 36>}, {pipeline_mode = #tpu.pipeline_mode<synchronous>, transform_indices = @transform_1, window_bounds = array<i64: 1, 36, 128>}, {pipeline_mode = #tpu.pipeline_mode<synchronous>, transform_indices = @transform_2, window_bounds = array<i64: 1, 128>}, {pipeline_mode = #tpu.pipeline_mode<synchronous>, transform_indices = @transform_3, window_bounds = array<i64: 3, 384, 128>}, {pipeline_mode = #tpu.pipeline_mode<synchronous>, transform_indices = @transform_4, window_bounds = array<i64: 1, 128>}, {transform_indices = @transform_5, window_bounds = array<i64: 1, 256, 128>}]} {
    %c0 = arith.constant 0 : index
    %c0_0 = arith.constant 0 : index
    %c0_1 = arith.constant 0 : index
    %0 = vector.load %arg1[%c0, %c0_0, %c0_1] : memref<1x256x36xbf16, #tpu.memory_space<vmem>>, vector<1x256x36xbf16>
    %1 = vector.shape_cast %0 : vector<1x256x36xbf16> to vector<256x36xbf16>
    %c0_2 = arith.constant 0 : index
    %c0_3 = arith.constant 0 : index
    %c0_4 = arith.constant 0 : index
    %2 = vector.load %arg2[%c0_2, %c0_3, %c0_4] : memref<1x36x128xbf16, #tpu.memory_space<vmem>>, vector<1x36x128xbf16>
    %3 = vector.shape_cast %2 : vector<1x36x128xbf16> to vector<36x128xbf16>
    %cst = arith.constant dense<0.000000e+00> : vector<256x128xf32>
    %4 = tpu.matmul %1, %3, %cst {dimension_numbers = #tpu.dot_dimension_numbers<[1], [0], [0], [1], [0, 0, 1, 1], [], []>} : vector<256x36xbf16>, vector<36x128xbf16>, vector<256x128xf32> -> vector<256x128xf32>
    %c0_5 = arith.constant 0 : index
    %c0_6 = arith.constant 0 : index
    %5 = vector.load %arg3[%c0_5, %c0_6] : memref<1x128xf32, #tpu.memory_space<vmem>>, vector<1x128xf32>
    %6 = vector.broadcast %5 : vector<1x128xf32> to vector<256x128xf32>
    %7 = arith.addf %4, %6 : vector<256x128xf32>
    %cst_7 = arith.constant 0.000000e+00 : f32
    %8 = vector.broadcast %cst_7 : f32 to vector<256x128xf32>
    %9 = arith.maximumf %7, %8 : vector<256x128xf32>
    %10 = arith.truncf %9 : vector<256x128xf32> to vector<256x128xbf16>
    %cst_8 = arith.constant 0.000000e+00 : bf16
    %11 = vector.broadcast %cst_8 : bf16 to vector<1x48x128xbf16>
    %cst_9 = arith.constant 0.000000e+00 : bf16
    %12 = vector.broadcast %cst_9 : bf16 to vector<16x1x128xbf16>
    %c0_10 = arith.constant 0 : index
    %c0_11 = arith.constant 0 : index
    %c0_12 = arith.constant 0 : index
    %13 = vector.load %arg7[%c0_10, %c0_11, %c0_12] : memref<18x48x128xbf16, #tpu.memory_space<vmem>>, vector<1x48x128xbf16>
    tpu.vector_store %arg7[%c0_10, %c0_11, %c0_12], %11 {strides = array<i32>} : memref<18x48x128xbf16, #tpu.memory_space<vmem>>, vector<1x48x128xbf16>,
    %c17 = arith.constant 17 : index
    %c0_13 = arith.constant 0 : index
    %c0_14 = arith.constant 0 : index
    %14 = vector.load %arg7[%c17, %c0_13, %c0_14] : memref<18x48x128xbf16, #tpu.memory_space<vmem>>, vector<1x48x128xbf16>
    tpu.vector_store %arg7[%c17, %c0_13, %c0_14], %11 {strides = array<i32>} : memref<18x48x128xbf16, #tpu.memory_space<vmem>>, vector<1x48x128xbf16>,
    %c1 = arith.constant 1 : index
    %c15 = arith.constant 15 : index
    %c0_15 = arith.constant 0 : index
    %15 = vector.load %arg7[%c1, %c15, %c0_15] : memref<18x48x128xbf16, #tpu.memory_space<vmem>>, vector<16x1x128xbf16>
    tpu.vector_store %arg7[%c1, %c15, %c0_15], %12 {strides = array<i32>} : memref<18x48x128xbf16, #tpu.memory_space<vmem>>, vector<16x1x128xbf16>,
    %c1_16 = arith.constant 1 : index
    %c32 = arith.constant 32 : index
    %c0_17 = arith.constant 0 : index
    %16 = vector.load %arg7[%c1_16, %c32, %c0_17] : memref<18x48x128xbf16, #tpu.memory_space<vmem>>, vector<16x1x128xbf16>
    tpu.vector_store %arg7[%c1_16, %c32, %c0_17], %12 {strides = array<i32>} : memref<18x48x128xbf16, #tpu.memory_space<vmem>>, vector<16x1x128xbf16>,
    %17 = vector.shape_cast %10 : vector<256x128xbf16> to vector<16x16x128xbf16>
    %c1_18 = arith.constant 1 : index
    %c16 = arith.constant 16 : index
    %c0_19 = arith.constant 0 : index
    %18 = vector.load %arg7[%c1_18, %c16, %c0_19] : memref<18x48x128xbf16, #tpu.memory_space<vmem>>, vector<16x16x128xbf16>
    tpu.vector_store %arg7[%c1_18, %c16, %c0_19], %17 {strides = array<i32>} : memref<18x48x128xbf16, #tpu.memory_space<vmem>>, vector<16x16x128xbf16>,
    %c0_20 = arith.constant 0 : index
    %c15_21 = arith.constant 15 : index
    %c0_22 = arith.constant 0 : index
    %19 = vector.load %arg7[%c0_20, %c15_21, %c0_22] : memref<18x48x128xbf16, #tpu.memory_space<vmem>>, vector<16x16x128xbf16>
    %c0_23 = arith.constant 0 : index
    %c16_24 = arith.constant 16 : index
    %c0_25 = arith.constant 0 : index
    %20 = vector.load %arg7[%c0_23, %c16_24, %c0_25] : memref<18x48x128xbf16, #tpu.memory_space<vmem>>, vector<16x16x128xbf16>
    %c0_26 = arith.constant 0 : index
    %c17_27 = arith.constant 17 : index
    %c0_28 = arith.constant 0 : index
    %21 = vector.load %arg7[%c0_26, %c17_27, %c0_28] : memref<18x48x128xbf16, #tpu.memory_space<vmem>>, vector<16x16x128xbf16>
    %22 = tpu.concatenate %19, %20, %21 in 2 : vector<16x16x128xbf16>, vector<16x16x128xbf16>, vector<16x16x128xbf16> -> vector<16x16x384xbf16>
    %23 = vector.shape_cast %22 : vector<16x16x384xbf16> to vector<256x384xbf16>
    %c0_29 = arith.constant 0 : index
    %c0_30 = arith.constant 0 : index
    %c0_31 = arith.constant 0 : index
    %24 = vector.load %arg4[%c0_29, %c0_30, %c0_31] : memref<3x384x128xbf16, #tpu.memory_space<vmem>>, vector<1x384x128xbf16>
    %25 = vector.shape_cast %24 : vector<1x384x128xbf16> to vector<384x128xbf16>
    %cst_32 = arith.constant dense<0.000000e+00> : vector<256x128xf32>
    %26 = tpu.matmul %23, %25, %cst_32 {dimension_numbers = #tpu.dot_dimension_numbers<[1], [0], [0], [1], [0, 0, 1, 1], [], []>} : vector<256x384xbf16>, vector<384x128xbf16>, vector<256x128xf32> -> vector<256x128xf32>
    %c1_33 = arith.constant 1 : index
    %c15_34 = arith.constant 15 : index
    %c0_35 = arith.constant 0 : index
    %27 = vector.load %arg7[%c1_33, %c15_34, %c0_35] : memref<18x48x128xbf16, #tpu.memory_space<vmem>>, vector<16x16x128xbf16>
    %c1_36 = arith.constant 1 : index
    %c16_37 = arith.constant 16 : index
    %c0_38 = arith.constant 0 : index
    %28 = vector.load %arg7[%c1_36, %c16_37, %c0_38] : memref<18x48x128xbf16, #tpu.memory_space<vmem>>, vector<16x16x128xbf16>
    %c1_39 = arith.constant 1 : index
    %c17_40 = arith.constant 17 : index
    %c0_41 = arith.constant 0 : index
    %29 = vector.load %arg7[%c1_39, %c17_40, %c0_41] : memref<18x48x128xbf16, #tpu.memory_space<vmem>>, vector<16x16x128xbf16>
    %30 = tpu.concatenate %27, %28, %29 in 2 : vector<16x16x128xbf16>, vector<16x16x128xbf16>, vector<16x16x128xbf16> -> vector<16x16x384xbf16>
    %31 = vector.shape_cast %30 : vector<16x16x384xbf16> to vector<256x384xbf16>
    %c1_42 = arith.constant 1 : index
    %c0_43 = arith.constant 0 : index
    %c0_44 = arith.constant 0 : index
    %32 = vector.load %arg4[%c1_42, %c0_43, %c0_44] : memref<3x384x128xbf16, #tpu.memory_space<vmem>>, vector<1x384x128xbf16>
    %33 = vector.shape_cast %32 : vector<1x384x128xbf16> to vector<384x128xbf16>
    %cst_45 = arith.constant dense<0.000000e+00> : vector<256x128xf32>
    %34 = tpu.matmul %31, %33, %cst_45 {dimension_numbers = #tpu.dot_dimension_numbers<[1], [0], [0], [1], [0, 0, 1, 1], [], []>} : vector<256x384xbf16>, vector<384x128xbf16>, vector<256x128xf32> -> vector<256x128xf32>
    %35 = arith.addf %26, %34 : vector<256x128xf32>
    %c2 = arith.constant 2 : index
    %c15_46 = arith.constant 15 : index
    %c0_47 = arith.constant 0 : index
    %36 = vector.load %arg7[%c2, %c15_46, %c0_47] : memref<18x48x128xbf16, #tpu.memory_space<vmem>>, vector<16x16x128xbf16>
    %c2_48 = arith.constant 2 : index
    %c16_49 = arith.constant 16 : index
    %c0_50 = arith.constant 0 : index
    %37 = vector.load %arg7[%c2_48, %c16_49, %c0_50] : memref<18x48x128xbf16, #tpu.memory_space<vmem>>, vector<16x16x128xbf16>
    %c2_51 = arith.constant 2 : index
    %c17_52 = arith.constant 17 : index
    %c0_53 = arith.constant 0 : index
    %38 = vector.load %arg7[%c2_51, %c17_52, %c0_53] : memref<18x48x128xbf16, #tpu.memory_space<vmem>>, vector<16x16x128xbf16>
    %39 = tpu.concatenate %36, %37, %38 in 2 : vector<16x16x128xbf16>, vector<16x16x128xbf16>, vector<16x16x128xbf16> -> vector<16x16x384xbf16>
    %40 = vector.shape_cast %39 : vector<16x16x384xbf16> to vector<256x384xbf16>
    %c2_54 = arith.constant 2 : index
    %c0_55 = arith.constant 0 : index
    %c0_56 = arith.constant 0 : index
    %41 = vector.load %arg4[%c2_54, %c0_55, %c0_56] : memref<3x384x128xbf16, #tpu.memory_space<vmem>>, vector<1x384x128xbf16>
    %42 = vector.shape_cast %41 : vector<1x384x128xbf16> to vector<384x128xbf16>
    %cst_57 = arith.constant dense<0.000000e+00> : vector<256x128xf32>
    %43 = tpu.matmul %40, %42, %cst_57 {dimension_numbers = #tpu.dot_dimension_numbers<[1], [0], [0], [1], [0, 0, 1, 1], [], []>} : vector<256x384xbf16>, vector<384x128xbf16>, vector<256x128xf32> -> vector<256x128xf32>
    %44 = arith.addf %35, %43 : vector<256x128xf32>
    %c0_58 = arith.constant 0 : index
    %c0_59 = arith.constant 0 : index
    %45 = vector.load %arg5[%c0_58, %c0_59] : memref<1x128xf32, #tpu.memory_space<vmem>>, vector<1x128xf32>
    %46 = vector.broadcast %45 : vector<1x128xf32> to vector<256x128xf32>
    %47 = arith.addf %44, %46 : vector<256x128xf32>
    %cst_60 = arith.constant 0.000000e+00 : f32
    %48 = vector.broadcast %cst_60 : f32 to vector<256x128xf32>
    %49 = arith.maximumf %47, %48 : vector<256x128xf32>
    %c0_61 = arith.constant 0 : index
    %c0_62 = arith.constant 0 : index
    %c0_63 = arith.constant 0 : index
    %50 = vector.load %arg6[%c0_61, %c0_62, %c0_63] : memref<1x256x128xf32, #tpu.memory_space<vmem>>, vector<1x256x128xf32>
    %51 = vector.shape_cast %50 : vector<1x256x128xf32> to vector<256x128xf32>
    %52 = vector.shape_cast %49 : vector<256x128xf32> to vector<1x256x128xf32>
    tpu.vector_store %arg6[%c0_61, %c0_62, %c0_63], %52 {strides = array<i32>} : memref<1x256x128xf32, #tpu.memory_space<vmem>>, vector<1x256x128xf32>,
    return
  }
  func.func @transform_0(%arg0: i32) -> (i32, i32, i32) {
    %c0_i32 = arith.constant 0 : i32
    %c0_i32_0 = arith.constant 0 : i32
    %c0_i32_1 = arith.constant 0 : i32
    return %arg0, %c0_i32, %c0_i32_0 : i32, i32, i32
  }
  func.func @transform_1(%arg0: i32) -> (i32, i32, i32) {
    %c0_i32 = arith.constant 0 : i32
    %c0_i32_0 = arith.constant 0 : i32
    %c0_i32_1 = arith.constant 0 : i32
    %c0_i32_2 = arith.constant 0 : i32
    return %c0_i32, %c0_i32_0, %c0_i32_1 : i32, i32, i32
  }
  func.func @transform_2(%arg0: i32) -> (i32, i32) {
    %c0_i32 = arith.constant 0 : i32
    %c0_i32_0 = arith.constant 0 : i32
    %c0_i32_1 = arith.constant 0 : i32
    return %c0_i32, %c0_i32_0 : i32, i32
  }
  func.func @transform_3(%arg0: i32) -> (i32, i32, i32) {
    %c0_i32 = arith.constant 0 : i32
    %c0_i32_0 = arith.constant 0 : i32
    %c0_i32_1 = arith.constant 0 : i32
    %c0_i32_2 = arith.constant 0 : i32
    return %c0_i32, %c0_i32_0, %c0_i32_1 : i32, i32, i32
  }
  func.func @transform_4(%arg0: i32) -> (i32, i32) {
    %c0_i32 = arith.constant 0 : i32
    %c0_i32_0 = arith.constant 0 : i32
    %c0_i32_1 = arith.constant 0 : i32
    return %c0_i32, %c0_i32_0 : i32, i32
  }
  func.func @transform_5(%arg0: i32) -> (i32, i32, i32) {
    %c0_i32 = arith.constant 0 : i32
    %c0_i32_0 = arith.constant 0 : i32
    %c0_i32_1 = arith.constant 0 : i32
    return %arg0, %c0_i32, %c0_i32_0 : i32, i32, i32
  }
}

</mosaic_0001>

<bundles_post_ra>
// kernel: tpu_custom_call.1
= control target key start
LH: loop header
LB: loop body
LE: loop exit
PB: predicated region body
PF: predicated region fallthrough
CT: control target
= control target key end

     0   :  { %10 = vsyncpa [#allocation4], 0  ;;  %s8377_s0 = inlined_call_operand.vmem [shape: bf16[2,256,36], index: 0, kind: input, shape index: {}]   ;;  %s8378_s1 = inlined_call_operand.vmem [shape: bf16[1,36,128], index: 1, kind: input, shape index: {}]   ;;  %s8379_s2 = inlined_call_operand.vmem [shape: f32[1,128], index: 2, kind: input, shape index: {}]   ;;  %s8380_s3 = inlined_call_operand.hbm [shape: bf16[3,384,128], index: 3, kind: input, shape index: {}]   ;;  %s8381_s4 = inlined_call_operand.vmem [shape: f32[1,128], index: 4, kind: input, shape index: {}]   ;;  %s8382_s5 = inlined_call_operand.hbm [shape: f32[2,256,128], index: 5, kind: output, shape index: {}]  }
   0x1   :  { %11 = vsyncpa [#allocation5], 0 }
   0x2   :  { %13 = vsyncpa [#allocation5 + $0x1], 0  ;;  %s7140_s18 = smov 0   ;;  %s7142_s19 = smov 0  }
   0x3   :  { %s7144_s20 = smov 0   ;;  %s7146_s21 = smov 0  }
   0x4 LB: > { %s7161_s22 = sadd.s32 4294967295, %s7102_s21   ;;  %s5839_s23 = sadd.s32 4294967294, %s7102_s21   ;;  %s7102_s21 = sphi %s7146_s21, %s8642_s21   ;;  %s7098_s20 = sphi %s7144_s20, %s8641_s20   ;;  %s7094_s19 = sphi %s7142_s19, %s8640_s19   ;;  %s7090_s18 = sphi %s7140_s18, %s8639_s18  }
   0x5   : > { %s7165_s24 = sadd.s32 1, %s7102_s21   ;;  %s136_s25 = sadd.s32 1, %s7098_s20 }
   0x6   : > { %s133_s26 = ssub.s32 %s7102_s21, %s7165_s24  ;;  %p146_p0 = scmp.ne.s32.totalorder %s7098_s20, %s7094_s19 }
   0x7   : > { %p134_p1 = scmp.eq.s32.totalorder %s133_s26, 0  ;;  %p147_p2 = scmp.eq.s32.totalorder %s7161_s22, 1 }
   0x8   : > { %p152_p3 = scmp.ne.s32.totalorder %s7094_s19, %s7090_s18  ;;  %p153_p4 = scmp.eq.s32.totalorder %s5839_s23, 1 }
   0x9   : > { %s7176_s27 = scalar_select %p134_p1, %s7098_s20, %s136_s25  }
   0xa   : > { %p7178_p5 = por %p147_p2, %p146_p0  ;;  %p7182_p6 = por %p153_p4, %p152_p3 }
   0xb   : > { %p5840_p7 = scmp.ge.s32.totalorder %s7102_s21, 1  ;;  %p160_p8 = scmp.lt.s32.totalorder %s7102_s21, 3 }
   0xc   : > { %p6922_p9 = scmp.eq.s32.totalorder %s7161_s22, 0  ;;  %s177_s7 = sshll.u32 %s8380_s3, 4  ;;  %s178_s7 = int_to_ptr.hbm [resolvable:$true] %s177_s7 }
   0xd   : > { %p161_p10 = pnand %p5840_p7, %p160_p8  ;;  %s7104_s8 = smov [#allocation3]  }
   0xe   : > { %s179_s9 = sshll.u32 %s7104_s8, 4  ;;  %s7105_s10 = smov 64   ;;  %s180_s9 = int_to_ptr.vmem [resolvable:$true] %s179_s9 }
   0xf   : > { %p6914_p11 = pneg %p161_p10  ;;  %s7106_s11 = smov 4  }
  0x10   : > { %206 = sbr.rel (%p161_p10) target bundleno = 1100 (0x44c), region = 40 }
  0x11   : > { %p6915_p12 = pnand %p6922_p9, %p6914_p11 }
  0x13   : > { %6917 = dma.hbm_to_vmem [thread:$0]  (!%p6915_p12), %s178_s7, 9216, %s180_s9, [#allocation4], %s7105_s10, %s7105_s10, %s7106_s11  }
  0x15   : > { %7081 = dma.done.wait (%p6922_p9), [#allocation4], 9216  }
  0x16   : > { %7083 = vsyncadd (%p6922_p9), [#allocation4], 4294958080  ;;  %p235_p13 = scmp.lt.s32.totalorder %s7161_s22, 1  ;;  %v277_v0 = vld [vmem:[%s8378_s1 + $0x10] sm:$0x3]  ;;  %vm426_vm0 = vcmask 1041408  }
  0x17   : > { %v371_v1 = vunpack.c.l.b16 %v277_v0  ;;  %v6247_v4 = vld [vmem:[%s8378_s1 + $0x8] sm:$0xff]  ;;  %v6246_v5 = vld [vmem:[%s8378_s1] sm:$0xff]  ;;  %vm377_vm1 = vcmask 293888   ;;  %v6253_v20 = vld [vmem:[#allocation3 + $0x28] sm:$0xff]  ;;  %v7107_v27 = vmov 0   ;;  %vm648_vm2 = vcmask 1040384  }
  0x18   : > { %s236_s14 = scalar_select %p235_p13, %s7161_s22, 1  ;;  %v6255_v17 = vld [vmem:[#allocation3 + $0x38] sm:$0xff]  ;;  %v6254_v18 = vld [vmem:[#allocation3 + $0x30] sm:$0xff]  ;;  %v6252_v23 = vld [vmem:[#allocation3 + $0x20] sm:$0xff]  ;;  %584 = vst [vmem:[#allocation2 + $0x4] sm:$0xf] %v7107_v27 }
  0x19   : > { %v374_v2 = vpack.c.b16 %v371_v1, %v371_v1  ;;  %v6295_v21 = vld [vmem:[#allocation3 + $0x178] sm:$0xff]  ;;  %v6294_v22 = vld [vmem:[#allocation3 + $0x170] sm:$0xff]  ;;  %v6293_v26 = vld [vmem:[#allocation3 + $0x168] sm:$0xff]  ;;  %585 = vst [vmem:[#allocation2 + $0x8] sm:$0xf] %v7107_v27  ;;  %vm597_vm5 = vcmask 1043459  }
  0x1a   : > { %s6229_s17 = sshll.u32 %s236_s14, 7  ;;  %v6279_v25 = vld [vmem:[#allocation3 + $0xf8] sm:$0xff]  ;;  %v6278_v29 = vld [vmem:[#allocation3 + $0xf0] sm:$0xff]  ;;  %586 = vst [vmem:[#allocation2 + $0xc] sm:$0xf] %v7107_v27  ;;  %v6292_v30 = vld [vmem:[#allocation3 + $0x160] sm:$0xff] }
  0x1b   : > { %v428_v3 = vsel %vm426_vm0, %v374_v2, 0  ;;  %s7212_s6 = scalar_lea.vmem %s8377_s0, %s6229_s17  ;;  %3310 = vmatpush.bf16.msra.mxu1 %v6279_v25  ;;  %6852 = vmatpush.bf16.msra.mxu2 %v6279_v25  ;;  %v6251_v28 = vld [vmem:[#allocation3 + $0x18] sm:$0xff]  ;;  %vm649_vm3 = vsmask.f32 256  ;;  %v6250_v31 = vld [vmem:[#allocation3 + $0x10] sm:$0xff]  ;;  %v6277_v34 = vld [vmem:[#allocation3 + $0xe8] sm:$0xff] }
  0x1c   : > { %435 = vmatpush.bf16.msra.mxu0 %v428_v3  ;;  %6849 = vmatpush.bf16.msra.mxu3 %v428_v3  ;;  %v6230_v6 = vld [vmem:[%s7212_s6] sm:$0xff]  ;;  %v6239_v7 = vld [vmem:[%s7212_s6 + $0x48] sm:$0xff]  ;;  %v6240_v9 = vld [vmem:[%s7212_s6 + $0x50] sm:$0xff]  ;;  %587 = vst [vmem:[#allocation2 + $0x10] sm:$0xf] %v7107_v27  ;;  %vm1115_vm9 = vcmask 1042432  }
  0x1d   : > { %v6231_v8 = vld [vmem:[%s7212_s6 + $0x8] sm:$0xff]  ;;  %v6232_v10 = vld [vmem:[%s7212_s6 + $0x10] sm:$0xff]  ;;  %v6241_v11 = vld [vmem:[%s7212_s6 + $0x58] sm:$0xff]  ;;  %591 = vst [vmem:[#allocation2 + $0x19c] sm:$0xf] %v7107_v27  ;;  %s232_s11 = sand.u32 1, %s7094_s19  }
  0x1e   : > { %v6233_v12 = vld [vmem:[%s7212_s6 + $0x18] sm:$0xff]  ;;  %v6242_v13 = vld [vmem:[%s7212_s6 + $0x60] sm:$0xff]  ;;  %v6243_v15 = vld [vmem:[%s7212_s6 + $0x68] sm:$0xff]  ;;  %592 = vst [vmem:[#allocation2 + $0x1a0] sm:$0xf] %v7107_v27  ;;  %s5845_s14 = sshll.u32 %s232_s11, 8 }
  0x1f   : > { %v6234_v14 = vld [vmem:[%s7212_s6 + $0x20] sm:$0xff]  ;;  %v6235_v16 = vld [vmem:[%s7212_s6 + $0x28] sm:$0xff]  ;;  %v6244_v19 = vld [vmem:[%s7212_s6 + $0x70] sm:$0xff]  ;;  %3311 = vmatpush.bf16.msra.mxu1 %v6278_v29  ;;  %6853 = vmatpush.bf16.msra.mxu2 %v6278_v29  ;;  %593 = vst [vmem:[#allocation2 + $0x1a4] sm:$0xf] %v7107_v27  ;;  %s8006_s15 = scalar_lea.vmem [#allocation6], %s5845_s14 }
  0x20   : > { %436 = vmatpush.bf16.msra.mxu0 %v6247_v4  ;;  %6850 = vmatpush.bf16.msra.mxu3 %v6247_v4  ;;  %v6236_v24 = vld [vmem:[%s7212_s6 + $0x30] sm:$0xff]  ;;  %vm7240_vm4 = vmand %vm648_vm2, %vm649_vm3  ;;  %v651_v33 = vld [vmem:[#allocation2 + $0x28] sm:$0x1]  ;;  %594 = vst [vmem:[#allocation2 + $0x1a8] sm:$0xf] %v7107_v27  ;;  %s6320_s23 = sshll.u32 %s7161_s22, 8 }
  0x21   : > { %v6245_v35 = vld [vmem:[%s7212_s6 + $0x78] sm:$0xff]  ;;  %v6291_v36 = vld [vmem:[#allocation3 + $0x158] sm:$0xff]  ;;  %v652_v37 = vsel %vm7240_vm4, 0, %v651_v33  ;;  %v6276_v39 = vld [vmem:[#allocation3 + $0xe0] sm:$0xff]  ;;  %vm598_vm6 = vsmask.f32 7950  ;;  %s5761_s30 = scalar_lea.hbm %s8382_s5, %s6320_s23 }
  0x22   : > { %v6249_v38 = vld [vmem:[#allocation3 + $0x8] sm:$0xff]  ;;  %v6290_v40 = vld [vmem:[#allocation3 + $0x150] sm:$0xff]  ;;  %653 = vst [vmem:[#allocation2 + $0x28] sm:$0x1] %v652_v37  ;;  %v6248_v42 = vld [vmem:[#allocation3] sm:$0xff]  ;;  %s5764_s7 = sshll.u32 %s5761_s30, 4  ;;  %s5765_s7 = int_to_ptr.hbm [resolvable:$true] %s5764_s7 }
  0x23   : > { %3312 = vmatpush.bf16.msra.mxu1 %v6277_v34  ;;  %6854 = vmatpush.bf16.msra.mxu2 %v6277_v34  ;;  %v600_v41 = vld [vmem:[#allocation2 + $0x1c] sm:$0x8]  ;;  %vm7248_vm7 = vmand %vm597_vm5, %vm598_vm6  ;;  %v6275_v45 = vld [vmem:[#allocation3 + $0xd8] sm:$0xff]  ;;  %vm1164_vm8 = vsmask.f32 4352  ;;  %s5750_s22 = scalar_lea.sflag [#allocation5], %s232_s11 }
  0x24   : > { %437 = vmatpush.bf16.msra.mxu0 %v6246_v5  ;;  %6851 = vmatpush.bf16.msra.mxu3 %v6246_v5  ;;  %v6237_v44 = vld [vmem:[%s7212_s6 + $0x38] sm:$0xff]  ;;  %v601_v46 = vsel %vm7248_vm7, 0, %v600_v41  ;;  %v654_v48 = vld [vmem:[#allocation2 + $0x40] sm:$0x1]  ;;  %v6288_v51 = vld [vmem:[#allocation3 + $0x140] sm:$0xff]  ;;  %s7050_s8 = sshra.s32 %s5765_s7, 4  ;;  %s7051_s8 = int_to_ptr.hbm [resolvable:$true] %s7050_s8 }
  0x25   : > { %v6289_v47 = vld [vmem:[#allocation3 + $0x148] sm:$0xff]  ;;  %602 = vst [vmem:[#allocation2 + $0x1c] sm:$0x8] %v601_v46  ;;  %v6274_v49 = vld [vmem:[#allocation3 + $0xd0] sm:$0xff]  ;;  %v655_v50 = vsel %vm7240_vm4, 0, %v654_v48  ;;  %v6609_v53 = vld [vmem:[#allocation2 + $0x8] sm:$0xff]   ;;  %p7057_p3 = scmp.lt.s32.totalorder %s7051_s8, %s8382_s5 }
  0x26   : > { %656 = vst [vmem:[#allocation2 + $0x40] sm:$0x1] %v655_v50  ;;  %v6273_v52 = vld [vmem:[#allocation3 + $0xc8] sm:$0xff]  ;;  %v6272_v54 = vld [vmem:[#allocation3 + $0xc0] sm:$0xff]  ;;  %v6404_v55 = vunpack.c.h.b16 %v6609_v53  ;;  %v6659_v56 = vld [vmem:[#allocation2 + $0x4] sm:$0x8] }
  0x27   : > { %5920 = vmatmul.msk.bf16.vlgmr.msra.gmra.mxu0 %vm377_vm1, %v6230_v6  ;;  %5929 = vmatmul.msk.bf16.vlgmr.msra.gmra.mxu3 %vm377_vm1, %v6239_v7  ;;  %v6860_v57 = vld [vmem:[#allocation2 + $0x4] sm:$0xf0]   ;;  %v603_v58 = vld [vmem:[#allocation2 + $0x34] sm:$0x8]  ;;  %v6238_v59 = vld [vmem:[%s7212_s6 + $0x40] sm:$0xff]  ;;  %s5762_s6 = sshll.u32 %s8006_s15, 4  ;;  %s5763_s6 = int_to_ptr.vmem [resolvable:$true] %s5762_s6 }
  0x28   : > { %3721 = vmatpush.bf16.msrb.mxu0 %v6255_v17  ;;  %3488 = vmatpush.bf16.msrb.mxu3 %v6295_v21  ;;  %v604_v60 = vsel %vm7248_vm7, 0, %v603_v58  ;;  %v6660_v62 = vor.u32 %v6860_v57, %v6659_v56  ;;  %v892_v63 = vpack.c.b16 %v6404_v55, %v6404_v55  ;;  %v657_v1 = vld [vmem:[#allocation2 + $0x58] sm:$0x1]  ;;  %v7264_v2 = vld [vmem:[%s8379_s2] ss:$0 sm:$0xff]  ;;  %s7052_s9 = scalar_lea.hbm %s7051_s8, 256 }
  0x29   : > { %3313 = vmatpush.bf16.msra.mxu1 %v6276_v39  ;;  %6855 = vmatpush.bf16.msra.mxu2 %v6276_v39  ;;  %605 = vst [vmem:[#allocation2 + $0x34] sm:$0x8] %v604_v60  ;;  %v1997_v0 = vld [vmem:[#allocation2 + $0x28] sm:$0x1]  ;;  %v658_v3 = vsel %vm7240_vm4, 0, %v657_v1  ;;  %p7053_p0 = scmp.ne.s32.totalorder %s7051_s8, %s7052_s9  ;;  %s7056_s13 = scalar_lea.hbm %s8382_s5, 512 }
  0x2a   : > { %v1166_v4 = vshrl.u32 %v6660_v62, 16  ;;  %v1169_v5 = vshll.u32 %v6660_v62, 16  ;;  %v1174_v6 = vshrl.u32 %v892_v63, 16  ;;  %v1177_v7 = vshll.u32 %v892_v63, 16  ;;  %659 = vst [vmem:[#allocation2 + $0x58] sm:$0x1] %v658_v3  ;;  %p7058_p4 = scmp.lt.s32.totalorder %s7056_s13, %s7052_s9 }
  0x2b   : > { %p7054_p1 = pnand %p7053_p0, %p7178_p5 }
  0x2c   : > { %3722 = vmatpush.bf16.msrb.mxu0 %v6254_v18  ;;  %3489 = vmatpush.bf16.msrb.mxu3 %v6294_v22  ;;  %v6723_v41 = vld [vmem:[#allocation2 + $0x1c] sm:$0x8]  ;;  %p7059_p7 = por %p7058_p4, %p7057_p3 }
  0x2d   : > { %3314 = vmatpush.bf16.msra.mxu1 %v6275_v45  ;;  %6856 = vmatpush.bf16.msra.mxu2 %v6275_v45  ;;  %v6663_v48 = vld [vmem:[#allocation2 + $0x1c] sm:$0x8]  ;;  %p7055_p2 = pneg %p7054_p1 }
  0x2f   : > { %p7060_p8 = pnand %p7059_p7, %p7055_p2 }
  0x30   : > { %3723 = vmatpush.bf16.msrb.mxu0 %v6253_v20  ;;  %3490 = vmatpush.bf16.msrb.mxu3 %v6293_v26 }
  0x31   : > { %3315 = vmatpush.bf16.msra.mxu1 %v6274_v49  ;;  %6857 = vmatpush.bf16.msra.mxu2 %v6274_v49 }
  0x34   : > { %3724 = vmatpush.bf16.msrb.mxu0 %v6252_v23  ;;  %3491 = vmatpush.bf16.msrb.mxu3 %v6292_v30  ;;  %v1998_v30 = vld [vmem:[#allocation2 + $0x40] sm:$0x1] }
  0x35   : > { %3316 = vmatpush.bf16.msra.mxu1 %v6273_v52  ;;  %6858 = vmatpush.bf16.msra.mxu2 %v6273_v52 }
  0x37   : > { %5921 = vmatmul.msk.bf16.gmra.mxu0 %vm377_vm1, %v6231_v8  ;;  %5930 = vmatmul.msk.bf16.gmra.mxu3 %vm377_vm1, %v6240_v9  ;;  %v2301_v8 = vunpack.c.l.b16 %v1997_v0 }
  0x38   : > { %3725 = vmatpush.bf16.msrb.mxu0 %v6251_v28  ;;  %3492 = vmatpush.bf16.msrb.mxu3 %v6291_v36 }
  0x39   : > { %3317 = vmatpush.bf16.msra.mxu1 %v6272_v54  ;;  %6859 = vmatpush.bf16.msra.mxu2 %v6272_v54 }
  0x3c   : > { %3726 = vmatpush.bf16.msrb.mxu0 %v6250_v31  ;;  %3493 = vmatpush.bf16.msrb.mxu3 %v6290_v40 }
  0x40   : > { %3727 = vmatpush.bf16.msrb.mxu0 %v6249_v38  ;;  %3494 = vmatpush.bf16.msrb.mxu3 %v6289_v47  ;;  %v660_v38 = vld [vmem:[#allocation2 + $0x70] sm:$0x1] }
  0x44   : > { %3728 = vmatpush.bf16.msrb.mxu0 %v6248_v42  ;;  %3495 = vmatpush.bf16.msrb.mxu3 %v6288_v51  ;;  %v2302_v42 = vunpack.c.l.b16 %v1998_v30  ;;  %v661_v51 = vsel %vm7240_vm4, 0, %v660_v38  ;;  %v6727_v38 = vld [vmem:[#allocation2 + $0x34] sm:$0x8] }
  0x45   : > { %662 = vst [vmem:[#allocation2 + $0x70] sm:$0x1] %v661_v51 }
  0x46   : > { %v2318_v62 = vpack.c.b16 %v2302_v42, %v2302_v42 }
  0x47   : > { %5922 = vmatmul.msk.bf16.gmra.mxu0 %vm377_vm1, %v6232_v10  ;;  %5931 = vmatmul.msk.bf16.gmra.mxu3 %vm377_vm1, %v6241_v11  ;;  %v1168_v11 = vrot.slane %v1166_v4, 3 }
  0x57   : > { %5923 = vmatmul.msk.bf16.gmra.mxu0 %vm377_vm1, %v6233_v12  ;;  %5932 = vmatmul.msk.bf16.gmra.mxu3 %vm377_vm1, %v6242_v13  ;;  %v1171_v12 = vrot.slane %v1169_v5, 4  ;;  %v1176_v13 = vrot.slane %v1174_v6, 3 }
  0x67   : > { %5924 = vmatmul.msk.bf16.gmra.mxu0 %vm377_vm1, %v6234_v14  ;;  %5933 = vmatmul.msk.bf16.gmra.mxu3 %vm377_vm1, %v6243_v15  ;;  %v1179_v14 = vrot.slane %v1177_v7, 4 }
  0x69   : > { %v1180_v20 = vor.u32 %v1179_v14, %v1176_v13 }
  0x77   : > { %5925 = vmatmul.msk.bf16.gmra.mxu0 %vm377_vm1, %v6235_v16  ;;  %5934 = vmatmul.msk.bf16.gmra.mxu3 %vm377_vm1, %v6244_v19  ;;  %v2317_v16 = vpack.c.b16 %v2301_v8, %v2301_v8  ;;  %v1172_v19 = vor.u32 %v1171_v12, %v1168_v11 }
  0x79   : > { %v2334_v22 = vrot.slane %v2317_v16, 5  ;;  %v1181_v29 = vsel %vm1164_vm8, %v1172_v19, %v1180_v20 }
  0x87   : > { %5926 = vmatmul.msk.bf16.gmra.mxu0 %vm377_vm1, %v6236_v24  ;;  %5935 = vmatmul.msk.bf16.gmra.mxu3 %vm377_vm1, %v6245_v35  ;;  %v606_v24 = vld [vmem:[#allocation2 + $0x4c] sm:$0x8] }
  0x88   : > { %v607_v27 = vsel %vm7248_vm7, 0, %v606_v24 }
  0x89   : > { %608 = vst [vmem:[#allocation2 + $0x4c] sm:$0x8] %v607_v27 }
  0x97   : > { %5927 = vmatmul.msk.bf16.gmra.mxu0 %vm377_vm1, %v6237_v44 }
  0xa4   : > { %v439_v61 = vpop.f32.mrf.mxu0 }
  0xa5   : > { %v440_v9 = vadd.f32 %v7264_v2, %v439_v61 }
  0xa7   : > { %5928 = vmatmul.msk.bf16.gmra.mxu0 %vm377_vm1, %v6238_v59  ;;  %v519_v17 = vmax.f32 %v440_v9, 0.0 }
  0xaa   : > { %v484_v23 = vpop.f32.mrf.mxu3 }
  0xab   : > { %v485_v11 = vadd.f32 %v7264_v2, %v484_v23 }
  0xac   : > { %v441_v10 = vpop.f32.mrf.mxu0 }
  0xad   : > { %v442_v15 = vadd.f32 %v7264_v2, %v441_v10 }
  0xaf   : > { %v520_v18 = vmax.f32 %v442_v15, 0.0  ;;  %v2337_v15 = vrot.slane %v2318_v62, 5 }
  0xb1   : > { %v6324_v21 = vpack.c.bf16 %v520_v18, %v519_v17  ;;  %v609_v18 = vld [vmem:[#allocation2 + $0x64] sm:$0x8] }
  0xb2   : > { %v486_v50 = vpop.f32.mrf.mxu3  ;;  %v610_v23 = vsel %vm7248_vm7, 0, %v609_v18  ;;  %v612_v18 = vld [vmem:[#allocation2 + $0x7c] sm:$0x8] }
  0xb3   : > { %6593 = vst [vmem:[#allocation2 + $0x20] sm:$0xff] %v6324_v21   ;;  %v2333_v25 = vrot.slane %v6324_v21, 5  ;;  %v6468_v26 = vunpack.c.h.b16 %v6324_v21 }
  0xb4   : > { %v444_v28 = vpop.f32.mrf.mxu0  ;;  %611 = vst [vmem:[#allocation2 + $0x64] sm:$0x8] %v610_v23 }
  0xb5   : > { %v2335_v31 = vsel %vm1115_vm9, %v2333_v25, %v2334_v22  ;;  %v2408_v33 = vshrl.u32 %v2333_v25, 16  ;;  %v2411_v34 = vshll.u32 %v2333_v25, 16  ;;  %v2110_v37 = vpack.c.b16 %v6468_v26, %v6468_v26  ;;  %v1999_v26 = vld [vmem:[#allocation2 + $0x58] sm:$0x1] }
  0xb6   : > { %v2416_v35 = vshrl.u32 %v2335_v31, 16  ;;  %v2419_v36 = vshll.u32 %v2335_v31, 16  ;;  %v445_v52 = vadd.f32 %v7264_v2, %v444_v28  ;;  %v487_v22 = vadd.f32 %v7264_v2, %v486_v50 }
  0xb7   : > { %3729 = vmatmul.bf16.vlgmr.msrb.gmra.mxu0 %v1181_v29  ;;  %v2410_v39 = vrot.slane %v2408_v33, 3  ;;  %v2413_v40 = vrot.slane %v2411_v34, 4  ;;  %v2390_v46 = vshrl.u32 %v2110_v37, 16  ;;  %v2393_v47 = vshll.u32 %v2110_v37, 16 }
  0xb8   : > { %v2418_v44 = vrot.slane %v2416_v35, 3  ;;  %v2421_v45 = vrot.slane %v2419_v36, 4  ;;  %v521_v4 = vmax.f32 %v445_v52, 0.0  ;;  %v537_v25 = vmax.f32 %v485_v11, 0.0 }
  0xb9   : > { %v2414_v49 = vor.u32 %v2413_v40, %v2410_v39  ;;  %v2392_v60 = vrot.slane %v2390_v46, 3  ;;  %v2395_v61 = vrot.slane %v2393_v47, 4  ;;  %v538_v35 = vmax.f32 %v487_v22, 0.0  ;;  %v6667_v39 = vld [vmem:[#allocation2 + $0x34] sm:$0x8] }
  0xba   : > { %v2422_v53 = vor.u32 %v2421_v45, %v2418_v44  ;;  %v6876_v54 = vld [vmem:[#allocation2 + $0x1c] sm:$0xf0]   ;;  %v489_v16 = vpop.f32.mrf.mxu3  ;;  %v2303_v40 = vunpack.c.l.b16 %v1999_v26  ;;  %v663_v46 = vld [vmem:[#allocation2 + $0x88] sm:$0x1]  ;;  %v2000_v26 = vld [vmem:[#allocation2 + $0x70] sm:$0x1] }
  0xbb   : > { %v6861_v55 = vld [vmem:[#allocation2 + $0x1c] sm:$0xf0]   ;;  %v6724_v56 = vor.u32 %v6876_v54, %v6723_v41  ;;  %v2396_v14 = vor.u32 %v2395_v61, %v2392_v60 }
  0xbc   : > { %v6664_v57 = vor.u32 %v6861_v55, %v6663_v48  ;;  %v446_v58 = vpop.f32.mrf.mxu0  ;;  %v2423_v59 = vsel %vm1164_vm8, %v2414_v49, %v2422_v53  ;;  %v6369_v48 = vpack.c.bf16 %v538_v35, %v537_v25  ;;  %v2319_v61 = vpack.c.b16 %v2303_v40, %v2303_v40 }
  0xbd   : > { %v447_v63 = vadd.f32 %v7264_v2, %v446_v58  ;;  %3496 = vmatmul.bf16.vlgmr.msrb.gmra.mxu3 %v2423_v59  ;;  %v2382_v0 = vshrl.u32 %v6724_v56, 16  ;;  %v2385_v1 = vshll.u32 %v6724_v56, 16  ;;  %v664_v56 = vsel %vm7240_vm4, 0, %v663_v46 }
  0xbe   : > { %v1209_v3 = vshrl.u32 %v6664_v57, 16  ;;  %v1212_v5 = vshll.u32 %v6664_v57, 16  ;;  %6602 = vst [vmem:[#allocation2 + $0xf8] sm:$0xff] %v6369_v48  }
  0xbf   : > { %v522_v6 = vmax.f32 %v447_v63, 0.0  ;;  %v2384_v7 = vrot.slane %v2382_v0, 3  ;;  %v2387_v8 = vrot.slane %v2385_v1, 4  ;;  %665 = vst [vmem:[#allocation2 + $0x88] sm:$0x1] %v664_v56 }
  0xc0   : > { %v1211_v9 = vrot.slane %v1209_v3, 3  ;;  %v1214_v10 = vrot.slane %v1212_v5, 4 }
  0xc1   : > { %v6329_v12 = vpack.c.bf16 %v522_v6, %v521_v4  ;;  %v2388_v13 = vor.u32 %v2387_v8, %v2384_v7 }
  0xc2   : > { %v1215_v17 = vor.u32 %v1214_v10, %v1211_v9  ;;  %v491_v49 = vpop.f32.mrf.mxu3  ;;  %v490_v10 = vadd.f32 %v7264_v2, %v489_v16  ;;  %v613_v16 = vsel %vm7248_vm7, 0, %v612_v18  ;;  %v615_v18 = vld [vmem:[#allocation2 + $0x94] sm:$0x8] }
  0xc3   : > { %6594 = vst [vmem:[#allocation2 + $0x38] sm:$0xff] %v6329_v12   ;;  %v2397_v19 = vsel %vm1164_vm8, %v2388_v13, %v2396_v14  ;;  %v2336_v20 = vrot.slane %v6329_v12, 5  ;;  %v6472_v21 = vunpack.c.h.b16 %v6329_v12  ;;  %v492_v22 = vadd.f32 %v7264_v2, %v491_v49 }
  0xc4   : > { %v449_v24 = vpop.f32.mrf.mxu0  ;;  %3318 = vmatmul.bf16.vlgmr.msra.gmra.mxu1 %v2397_v19  ;;  %v1224_v27 = vsel %vm1164_vm8, %v1215_v17, %v2396_v14  ;;  %v2340_v14 = vrot.slane %v2319_v61, 5  ;;  %v539_v25 = vmax.f32 %v490_v10, 0.0  ;;  %614 = vst [vmem:[#allocation2 + $0x7c] sm:$0x8] %v613_v16 }
  0xc5   : > { %v2338_v28 = vsel %vm1115_vm9, %v2336_v20, %v2337_v15  ;;  %v2451_v29 = vshrl.u32 %v2336_v20, 16  ;;  %v2454_v30 = vshll.u32 %v2336_v20, 16  ;;  %v2112_v34 = vpack.c.b16 %v6472_v21, %v6472_v21 }
  0xc6   : > { %v2459_v31 = vshrl.u32 %v2338_v28, 16  ;;  %v2462_v33 = vshll.u32 %v2338_v28, 16  ;;  %v450_v50 = vadd.f32 %v7264_v2, %v449_v24 }
  0xc7   : > { %3734 = vmatmul.bf16.gmra.mxu0 %v1224_v27  ;;  %v2453_v36 = vrot.slane %v2451_v29, 3  ;;  %v2456_v37 = vrot.slane %v2454_v30, 4  ;;  %v2433_v44 = vshrl.u32 %v2112_v34, 16  ;;  %v2436_v45 = vshll.u32 %v2112_v34, 16 }
  0xc8   : > { %v2461_v41 = vrot.slane %v2459_v31, 3  ;;  %v2464_v42 = vrot.slane %v2462_v33, 4  ;;  %v523_v3 = vmax.f32 %v450_v50, 0.0  ;;  %v540_v34 = vmax.f32 %v492_v22, 0.0 }
  0xc9   : > { %v2457_v47 = vor.u32 %v2456_v37, %v2453_v36  ;;  %v2435_v59 = vrot.slane %v2433_v44, 3  ;;  %v2438_v60 = vrot.slane %v2436_v45, 4  ;;  %v6731_v37 = vld [vmem:[#allocation2 + $0x4c] sm:$0x8]  ;;  %v666_v45 = vld [vmem:[#allocation2 + $0xa0] sm:$0x1] }
  0xca   : > { %v2465_v51 = vor.u32 %v2464_v42, %v2461_v41  ;;  %v6877_v52 = vld [vmem:[#allocation2 + $0x34] sm:$0xf0]   ;;  %v494_v15 = vpop.f32.mrf.mxu3 }
  0xcb   : > { %v6862_v53 = vld [vmem:[#allocation2 + $0x34] sm:$0xf0]   ;;  %v6728_v54 = vor.u32 %v6877_v52, %v6727_v38  ;;  %v2439_v13 = vor.u32 %v2438_v60, %v2435_v59  ;;  %v6671_v38 = vld [vmem:[#allocation2 + $0x4c] sm:$0x8] }
  0xcc   : > { %v6668_v55 = vor.u32 %v6862_v53, %v6667_v39  ;;  %v451_v57 = vpop.f32.mrf.mxu0  ;;  %v2466_v58 = vsel %vm1164_vm8, %v2457_v47, %v2465_v51  ;;  %v2304_v39 = vunpack.c.l.b16 %v2000_v26  ;;  %v6374_v47 = vpack.c.bf16 %v540_v34, %v539_v25  ;;  %v2001_v26 = vld [vmem:[#allocation2 + $0x88] sm:$0x1]  ;;  %v7516_v43 = vld [vmem:[#allocation2 + $0x38] sm:$0xff]  }
  0xcd   : > { %v452_v62 = vadd.f32 %v7264_v2, %v451_v57  ;;  %3501 = vmatmul.bf16.gmra.mxu3 %v2466_v58  ;;  %v2425_v63 = vshrl.u32 %v6728_v54, 16  ;;  %v2428_v0 = vshll.u32 %v6728_v54, 16 }
  0xce   : > { %v1252_v1 = vshrl.u32 %v6668_v55, 16  ;;  %v1255_v4 = vshll.u32 %v6668_v55, 16  ;;  %6603 = vst [vmem:[#allocation2 + $0x110] sm:$0xff] %v6374_v47   ;;  %v667_v55 = vsel %vm7240_vm4, 0, %v666_v45  ;;  %v2320_v60 = vpack.c.b16 %v2304_v39, %v2304_v39 }
  0xcf   : > { %v524_v5 = vmax.f32 %v452_v62, 0.0  ;;  %v2427_v6 = vrot.slane %v2425_v63, 3  ;;  %v2430_v7 = vrot.slane %v2428_v0, 4  ;;  %668 = vst [vmem:[#allocation2 + $0xa0] sm:$0x1] %v667_v55 }
  0xd0   : > { %v1254_v8 = vrot.slane %v1252_v1, 3  ;;  %v1257_v9 = vrot.slane %v1255_v4, 4 }
  0xd1   : > { %v6334_v11 = vpack.c.bf16 %v524_v5, %v523_v3  ;;  %v2431_v12 = vor.u32 %v2430_v7, %v2427_v6 }
  0xd2   : > { %v1258_v17 = vor.u32 %v1257_v9, %v1254_v8  ;;  %v496_v48 = vpop.f32.mrf.mxu3  ;;  %v495_v9 = vadd.f32 %v7264_v2, %v494_v15  ;;  %v616_v15 = vsel %vm7248_vm7, 0, %v615_v18  ;;  %v618_v18 = vld [vmem:[#allocation2 + $0xac] sm:$0x8] }
  0xd3   : > { %6595 = vst [vmem:[#allocation2 + $0x50] sm:$0xff] %v6334_v11   ;;  %v2440_v19 = vsel %vm1164_vm8, %v2431_v12, %v2439_v13  ;;  %v2339_v20 = vrot.slane %v6334_v11, 5  ;;  %v6476_v21 = vunpack.c.h.b16 %v6334_v11  ;;  %v497_v22 = vadd.f32 %v7264_v2, %v496_v48 }
  0xd4   : > { %v454_v24 = vpop.f32.mrf.mxu0  ;;  %3323 = vmatmul.bf16.gmra.mxu1 %v2440_v19  ;;  %v1267_v23 = vsel %vm1164_vm8, %v1258_v17, %v2439_v13  ;;  %v2343_v13 = vrot.slane %v2320_v60, 5  ;;  %v541_v25 = vmax.f32 %v495_v9, 0.0  ;;  %617 = vst [vmem:[#allocation2 + $0x94] sm:$0x8] %v616_v15 }
  0xd5   : > { %v2341_v27 = vsel %vm1115_vm9, %v2339_v20, %v2340_v14  ;;  %v2494_v28 = vshrl.u32 %v2339_v20, 16  ;;  %v2497_v29 = vshll.u32 %v2339_v20, 16  ;;  %v2114_v33 = vpack.c.b16 %v6476_v21, %v6476_v21 }
  0xd6   : > { %v2502_v30 = vshrl.u32 %v2341_v27, 16  ;;  %v2505_v31 = vshll.u32 %v2341_v27, 16  ;;  %v455_v49 = vadd.f32 %v7264_v2, %v454_v24 }
  0xd7   : > { %3739 = vmatmul.bf16.gmra.mxu0 %v1267_v23  ;;  %v2496_v35 = vrot.slane %v2494_v28, 3  ;;  %v2499_v36 = vrot.slane %v2497_v29, 4  ;;  %v2476_v42 = vshrl.u32 %v2114_v33, 16  ;;  %v2479_v44 = vshll.u32 %v2114_v33, 16 }
  0xd8   : > { %v2504_v40 = vrot.slane %v2502_v30, 3  ;;  %v2507_v41 = vrot.slane %v2505_v31, 4  ;;  %v525_v1 = vmax.f32 %v455_v49, 0.0  ;;  %v542_v33 = vmax.f32 %v497_v22, 0.0 }
  0xd9   : > { %v2500_v46 = vor.u32 %v2499_v36, %v2496_v35  ;;  %v2478_v58 = vrot.slane %v2476_v42, 3  ;;  %v2481_v59 = vrot.slane %v2479_v44, 4  ;;  %v6735_v36 = vld [vmem:[#allocation2 + $0x64] sm:$0x8]  ;;  %v669_v44 = vld [vmem:[#allocation2 + $0xb8] sm:$0x1] }
  0xda   : > { %v2508_v50 = vor.u32 %v2507_v41, %v2504_v40  ;;  %v6878_v51 = vld [vmem:[#allocation2 + $0x4c] sm:$0xf0]   ;;  %v499_v14 = vpop.f32.mrf.mxu3 }
  0xdb   : > { %v6863_v52 = vld [vmem:[#allocation2 + $0x4c] sm:$0xf0]   ;;  %v6732_v53 = vor.u32 %v6878_v51, %v6731_v37  ;;  %v2482_v12 = vor.u32 %v2481_v59, %v2478_v58  ;;  %v6675_v37 = vld [vmem:[#allocation2 + $0x64] sm:$0x8] }
  0xdc   : > { %v6672_v54 = vor.u32 %v6863_v52, %v6671_v38  ;;  %v456_v56 = vpop.f32.mrf.mxu0  ;;  %v2509_v57 = vsel %vm1164_vm8, %v2500_v46, %v2508_v50  ;;  %v2305_v38 = vunpack.c.l.b16 %v2001_v26  ;;  %v6379_v46 = vpack.c.bf16 %v542_v33, %v541_v25  ;;  %v2002_v26 = vld [vmem:[#allocation2 + $0xa0] sm:$0x1] }
  0xdd   : > { %v457_v61 = vadd.f32 %v7264_v2, %v456_v56  ;;  %3506 = vmatmul.bf16.gmra.mxu3 %v2509_v57  ;;  %v2468_v62 = vshrl.u32 %v6732_v53, 16  ;;  %v2471_v63 = vshll.u32 %v6732_v53, 16 }
  0xde   : > { %v1295_v0 = vshrl.u32 %v6672_v54, 16  ;;  %v1298_v3 = vshll.u32 %v6672_v54, 16  ;;  %6604 = vst [vmem:[#allocation2 + $0x128] sm:$0xff] %v6379_v46   ;;  %v670_v54 = vsel %vm7240_vm4, 0, %v669_v44  ;;  %v2321_v59 = vpack.c.b16 %v2305_v38, %v2305_v38 }
  0xdf   : > { %v526_v4 = vmax.f32 %v457_v61, 0.0  ;;  %v2470_v5 = vrot.slane %v2468_v62, 3  ;;  %v2473_v6 = vrot.slane %v2471_v63, 4  ;;  %671 = vst [vmem:[#allocation2 + $0xb8] sm:$0x1] %v670_v54 }
  0xe0   : > { %v1297_v7 = vrot.slane %v1295_v0, 3  ;;  %v1300_v8 = vrot.slane %v1298_v3, 4 }
  0xe1   : > { %v6339_v10 = vpack.c.bf16 %v526_v4, %v525_v1  ;;  %v2474_v11 = vor.u32 %v2473_v6, %v2470_v5 }
  0xe2   : > { %v1301_v17 = vor.u32 %v1300_v8, %v1297_v7  ;;  %v501_v47 = vpop.f32.mrf.mxu3  ;;  %v500_v8 = vadd.f32 %v7264_v2, %v499_v14  ;;  %v619_v14 = vsel %vm7248_vm7, 0, %v618_v18  ;;  %v621_v18 = vld [vmem:[#allocation2 + $0xc4] sm:$0x8] }
  0xe3   : > { %6596 = vst [vmem:[#allocation2 + $0x68] sm:$0xff] %v6339_v10   ;;  %v2483_v19 = vsel %vm1164_vm8, %v2474_v11, %v2482_v12  ;;  %v2342_v20 = vrot.slane %v6339_v10, 5  ;;  %v6480_v21 = vunpack.c.h.b16 %v6339_v10  ;;  %v502_v22 = vadd.f32 %v7264_v2, %v501_v47 }
  0xe4   : > { %v459_v24 = vpop.f32.mrf.mxu0  ;;  %3328 = vmatmul.bf16.gmra.mxu1 %v2483_v19  ;;  %v1310_v16 = vsel %vm1164_vm8, %v1301_v17, %v2482_v12  ;;  %v2346_v12 = vrot.slane %v2321_v59, 5  ;;  %v543_v25 = vmax.f32 %v500_v8, 0.0  ;;  %620 = vst [vmem:[#allocation2 + $0xac] sm:$0x8] %v619_v14  ;;  %v622_v14 = vsel %vm7248_vm7, 0, %v621_v18 }
  0xe5   : > { %v2344_v23 = vsel %vm1115_vm9, %v2342_v20, %v2343_v13  ;;  %v2537_v27 = vshrl.u32 %v2342_v20, 16  ;;  %v2540_v28 = vshll.u32 %v2342_v20, 16  ;;  %v2116_v31 = vpack.c.b16 %v6480_v21, %v6480_v21  ;;  %623 = vst [vmem:[#allocation2 + $0xc4] sm:$0x8] %v622_v14  ;;  %v678_v14 = vld [vmem:[#allocation2 + $0x100] sm:$0x1] }
  0xe6   : > { %v2545_v29 = vshrl.u32 %v2344_v23, 16  ;;  %v2548_v30 = vshll.u32 %v2344_v23, 16  ;;  %v460_v48 = vadd.f32 %v7264_v2, %v459_v24 }
  0xe7   : > { %3744 = vmatmul.bf16.gmra.mxu0 %v1310_v16  ;;  %v2539_v34 = vrot.slane %v2537_v27, 3  ;;  %v2542_v35 = vrot.slane %v2540_v28, 4  ;;  %v2519_v41 = vshrl.u32 %v2116_v31, 16  ;;  %v2522_v42 = vshll.u32 %v2116_v31, 16 }
  0xe8   : > { %v2547_v39 = vrot.slane %v2545_v29, 3  ;;  %v2550_v40 = vrot.slane %v2548_v30, 4  ;;  %v527_v0 = vmax.f32 %v460_v48, 0.0  ;;  %v544_v31 = vmax.f32 %v502_v22, 0.0 }
  0xe9   : > { %v2543_v45 = vor.u32 %v2542_v35, %v2539_v34  ;;  %v2521_v57 = vrot.slane %v2519_v41, 3  ;;  %v2524_v58 = vrot.slane %v2522_v42, 4  ;;  %v6739_v35 = vld [vmem:[#allocation2 + $0x7c] sm:$0x8]  ;;  %v672_v42 = vld [vmem:[#allocation2 + $0xd0] sm:$0x1] }
  0xea   : > { %v2551_v49 = vor.u32 %v2550_v40, %v2547_v39  ;;  %v6879_v50 = vld [vmem:[#allocation2 + $0x64] sm:$0xf0]   ;;  %v504_v13 = vpop.f32.mrf.mxu3 }
  0xeb   : > { %v6864_v51 = vld [vmem:[#allocation2 + $0x64] sm:$0xf0]   ;;  %v6736_v52 = vor.u32 %v6879_v50, %v6735_v36  ;;  %v2525_v11 = vor.u32 %v2524_v58, %v2521_v57  ;;  %v6679_v36 = vld [vmem:[#allocation2 + $0x7c] sm:$0x8] }
  0xec   : > { %v6676_v53 = vor.u32 %v6864_v51, %v6675_v37  ;;  %v461_v55 = vpop.f32.mrf.mxu0  ;;  %v2552_v56 = vsel %vm1164_vm8, %v2543_v45, %v2551_v49  ;;  %v2306_v37 = vunpack.c.l.b16 %v2002_v26  ;;  %v6384_v45 = vpack.c.bf16 %v544_v31, %v543_v25  ;;  %v2003_v26 = vld [vmem:[#allocation2 + $0xb8] sm:$0x1] }
  0xed   : > { %v462_v60 = vadd.f32 %v7264_v2, %v461_v55  ;;  %3511 = vmatmul.bf16.gmra.mxu3 %v2552_v56  ;;  %v2511_v61 = vshrl.u32 %v6736_v52, 16  ;;  %v2514_v62 = vshll.u32 %v6736_v52, 16 }
  0xee   : > { %v1338_v63 = vshrl.u32 %v6676_v53, 16  ;;  %v1341_v1 = vshll.u32 %v6676_v53, 16  ;;  %6605 = vst [vmem:[#allocation2 + $0x140] sm:$0xff] %v6384_v45   ;;  %v673_v53 = vsel %vm7240_vm4, 0, %v672_v42  ;;  %v2322_v58 = vpack.c.b16 %v2306_v37, %v2306_v37 }
  0xef   : > { %v528_v3 = vmax.f32 %v462_v60, 0.0  ;;  %v2513_v4 = vrot.slane %v2511_v61, 3  ;;  %v2516_v5 = vrot.slane %v2514_v62, 4  ;;  %674 = vst [vmem:[#allocation2 + $0xd0] sm:$0x1] %v673_v53  ;;  %v2307_v37 = vunpack.c.l.b16 %v2003_v26 }
  0xf0   : > { %v1340_v6 = vrot.slane %v1338_v63, 3  ;;  %v1343_v7 = vrot.slane %v1341_v1, 4 }
  0xf1   : > { %v6344_v9 = vpack.c.bf16 %v528_v3, %v527_v0  ;;  %v2517_v10 = vor.u32 %v2516_v5, %v2513_v4 }
  0xf2   : > { %v1344_v17 = vor.u32 %v1343_v7, %v1340_v6  ;;  %v506_v46 = vpop.f32.mrf.mxu3  ;;  %v505_v7 = vadd.f32 %v7264_v2, %v504_v13  ;;  %v6263_v13 = vld [vmem:[#allocation3 + $0x78] sm:$0xff] }
  0xf3   : > { %6597 = vst [vmem:[#allocation2 + $0x80] sm:$0xff] %v6344_v9   ;;  %v2526_v19 = vsel %vm1164_vm8, %v2517_v10, %v2525_v11  ;;  %v2345_v20 = vrot.slane %v6344_v9, 5  ;;  %v6484_v21 = vunpack.c.h.b16 %v6344_v9  ;;  %v507_v22 = vadd.f32 %v7264_v2, %v506_v46  ;;  %3810 = vmatpush.bf16.msrb.mxu1 %v6263_v13 }
  0xf4   : > { %v464_v24 = vpop.f32.mrf.mxu0  ;;  %3333 = vmatmul.bf16.gmra.mxu1 %v2526_v19  ;;  %v1353_v15 = vsel %vm1164_vm8, %v1344_v17, %v2525_v11  ;;  %v2349_v11 = vrot.slane %v2322_v58, 5  ;;  %v545_v25 = vmax.f32 %v505_v7, 0.0 }
  0xf5   : > { %v2347_v16 = vsel %vm1115_vm9, %v2345_v20, %v2346_v12  ;;  %v2580_v23 = vshrl.u32 %v2345_v20, 16  ;;  %v2583_v27 = vshll.u32 %v2345_v20, 16  ;;  %v2118_v30 = vpack.c.b16 %v6484_v21, %v6484_v21 }
  0xf6   : > { %v2588_v28 = vshrl.u32 %v2347_v16, 16  ;;  %v2591_v29 = vshll.u32 %v2347_v16, 16  ;;  %v465_v47 = vadd.f32 %v7264_v2, %v464_v24 }
  0xf7   : > { %3749 = vmatmul.bf16.gmra.mxu0 %v1353_v15  ;;  %v2582_v33 = vrot.slane %v2580_v23, 3  ;;  %v2585_v34 = vrot.slane %v2583_v27, 4  ;;  %v2562_v40 = vshrl.u32 %v2118_v30, 16  ;;  %v2565_v41 = vshll.u32 %v2118_v30, 16  ;;  %v6743_v30 = vld [vmem:[#allocation2 + $0x94] sm:$0x8] }
  0xf8   : > { %v2590_v38 = vrot.slane %v2588_v28, 3  ;;  %v2593_v39 = vrot.slane %v2591_v29, 4  ;;  %v529_v63 = vmax.f32 %v465_v47, 0.0 }
  0xf9   : > { %v2586_v44 = vor.u32 %v2585_v34, %v2582_v33  ;;  %v2564_v56 = vrot.slane %v2562_v40, 3  ;;  %v2567_v57 = vrot.slane %v2565_v41, 4  ;;  %v546_v33 = vmax.f32 %v507_v22, 0.0  ;;  %v624_v22 = vld [vmem:[#allocation2 + $0xdc] sm:$0x8] }
  0xfa   : > { %v2594_v48 = vor.u32 %v2593_v39, %v2590_v38  ;;  %v6880_v49 = vld [vmem:[#allocation2 + $0x7c] sm:$0xf0]   ;;  %v7329_v12 = vpop.f32.mrf.mxu3 }
  0xfb   : > { %v6865_v50 = vld [vmem:[#allocation2 + $0x7c] sm:$0xf0]   ;;  %v6740_v51 = vor.u32 %v6880_v49, %v6739_v35  ;;  %v2568_v10 = vor.u32 %v2567_v57, %v2564_v56  ;;  %v6389_v46 = vpack.c.bf16 %v546_v33, %v545_v25 }
  0xfc   : > { %v6680_v52 = vor.u32 %v6865_v50, %v6679_v36  ;;  %v466_v54 = vpop.f32.mrf.mxu0  ;;  %v2595_v55 = vsel %vm1164_vm8, %v2586_v44, %v2594_v48  ;;  %v6683_v36 = vld [vmem:[#allocation2 + $0x94] sm:$0x8]  ;;  %v6262_v38 = vld [vmem:[#allocation3 + $0x70] sm:$0xff]  ;;  %v675_v44 = vld [vmem:[#allocation2 + $0xe8] sm:$0x1] }
  0xfd   : > { %v467_v59 = vadd.f32 %v7264_v2, %v466_v54  ;;  %3516 = vmatmul.bf16.gmra.mxu3 %v2595_v55  ;;  %v2554_v60 = vshrl.u32 %v6740_v51, 16  ;;  %v2557_v61 = vshll.u32 %v6740_v51, 16  ;;  %3811 = vmatpush.bf16.msrb.mxu1 %v6262_v38  ;;  %6606 = vst [vmem:[#allocation2 + $0x158] sm:$0xff] %v6389_v46   ;;  %v676_v54 = vsel %vm7240_vm4, 0, %v675_v44  ;;  %v6258_v44 = vld [vmem:[#allocation3 + $0x50] sm:$0xff] }
  0xfe   : > { %v1381_v62 = vshrl.u32 %v6680_v52, 16  ;;  %v1384_v0 = vshll.u32 %v6680_v52, 16  ;;  %677 = vst [vmem:[#allocation2 + $0xe8] sm:$0x1] %v676_v54 }
  0xff   : > { %v530_v1 = vmax.f32 %v467_v59, 0.0  ;;  %v2556_v3 = vrot.slane %v2554_v60, 3  ;;  %v2559_v4 = vrot.slane %v2557_v61, 4  ;;  %v2323_v59 = vpack.c.b16 %v2307_v37, %v2307_v37  ;;  %v6261_v60 = vld [vmem:[#allocation3 + $0x68] sm:$0xff] }
 0x100   : > { %v1383_v5 = vrot.slane %v1381_v62, 3  ;;  %v1386_v6 = vrot.slane %v1384_v0, 4 }
 0x101   : > { %v6349_v8 = vpack.c.bf16 %v530_v1, %v529_v63  ;;  %v2560_v9 = vor.u32 %v2559_v4, %v2556_v3  ;;  %3812 = vmatpush.bf16.msrb.mxu1 %v6261_v60 }
 0x102   : > { %v1387_v17 = vor.u32 %v1386_v6, %v1383_v5  ;;  %v511_v47 = vpop.f32.mrf.mxu3 }
 0x103   : > { %6598 = vst [vmem:[#allocation2 + $0x98] sm:$0xff] %v6349_v8   ;;  %v2569_v19 = vsel %vm1164_vm8, %v2560_v9, %v2568_v10  ;;  %v2348_v20 = vrot.slane %v6349_v8, 5  ;;  %v6488_v21 = vunpack.c.h.b16 %v6349_v8  ;;  %v510_v9 = vadd.f32 %v7264_v2, %v7329_v12 }
 0x104   : > { %v469_v24 = vpop.f32.mrf.mxu0  ;;  %3338 = vmatmul.bf16.gmra.mxu1 %v2569_v19  ;;  %v1396_v15 = vsel %vm1164_vm8, %v1387_v17, %v2568_v10  ;;  %v6260_v10 = vld [vmem:[#allocation3 + $0x60] sm:$0xff]  ;;  %v2352_v19 = vrot.slane %v2323_v59, 5  ;;  %v512_v13 = vadd.f32 %v7264_v2, %v511_v47 }
 0x105   : > { %v2350_v16 = vsel %vm1115_vm9, %v2348_v20, %v2349_v11  ;;  %v2623_v23 = vshrl.u32 %v2348_v20, 16  ;;  %v2626_v27 = vshll.u32 %v2348_v20, 16  ;;  %v2120_v31 = vpack.c.b16 %v6488_v21, %v6488_v21  ;;  %3813 = vmatpush.bf16.msrb.mxu1 %v6260_v10 }
 0x106   : > { %v2631_v28 = vshrl.u32 %v2350_v16, 16  ;;  %v2634_v29 = vshll.u32 %v2350_v16, 16  ;;  %v470_v48 = vadd.f32 %v7264_v2, %v469_v24  ;;  %v547_v12 = vmax.f32 %v510_v9, 0.0  ;;  %v2004_v16 = vld [vmem:[#allocation2 + $0xd0] sm:$0x1] }
 0x107   : > { %3754 = vmatmul.bf16.gmra.mxu0 %v1396_v15  ;;  %v2625_v34 = vrot.slane %v2623_v23, 3  ;;  %v2628_v35 = vrot.slane %v2626_v27, 4  ;;  %v2605_v41 = vshrl.u32 %v2120_v31, 16  ;;  %v2608_v42 = vshll.u32 %v2120_v31, 16  ;;  %v6259_v23 = vld [vmem:[#allocation3 + $0x58] sm:$0xff] }
 0x108   : > { %v2633_v39 = vrot.slane %v2631_v28, 3  ;;  %v2636_v40 = vrot.slane %v2634_v29, 4  ;;  %v531_v1 = vmax.f32 %v470_v48, 0.0  ;;  %v625_v27 = vsel %vm7248_vm7, 0, %v624_v22 }
 0x109   : > { %v2629_v45 = vor.u32 %v2628_v35, %v2625_v34  ;;  %v2607_v57 = vrot.slane %v2605_v41, 3  ;;  %v2610_v58 = vrot.slane %v2608_v42, 4  ;;  %v679_v28 = vsel %vm7240_vm4, 0, %v678_v14  ;;  %626 = vst [vmem:[#allocation2 + $0xdc] sm:$0x8] %v625_v27  ;;  %3814 = vmatpush.bf16.msrb.mxu1 %v6259_v23 }
 0x10a   : > { %v2637_v49 = vor.u32 %v2636_v40, %v2633_v39  ;;  %v6881_v50 = vld [vmem:[#allocation2 + $0x94] sm:$0xf0]   ;;  %v514_v20 = vpop.f32.mrf.mxu3  ;;  %v548_v37 = vmax.f32 %v512_v13, 0.0  ;;  %680 = vst [vmem:[#allocation2 + $0x100] sm:$0x1] %v679_v28  ;;  %v2308_v41 = vunpack.c.l.b16 %v2004_v16 }
 0x10b   : > { %v6866_v51 = vld [vmem:[#allocation2 + $0x94] sm:$0xf0]   ;;  %v6744_v52 = vor.u32 %v6881_v50, %v6743_v30  ;;  %v2611_v18 = vor.u32 %v2610_v58, %v2607_v57  ;;  %v6747_v40 = vld [vmem:[#allocation2 + $0xac] sm:$0x8]  ;;  %v515_v42 = vadd.f32 %v7264_v2, %v514_v20 }
 0x10c   : > { %v6684_v53 = vor.u32 %v6866_v51, %v6683_v36  ;;  %v471_v55 = vpop.f32.mrf.mxu0  ;;  %v2638_v56 = vsel %vm1164_vm8, %v2629_v45, %v2637_v49  ;;  %v6687_v49 = vld [vmem:[#allocation2 + $0xac] sm:$0x8]  ;;  %v6394_v51 = vpack.c.bf16 %v548_v37, %v547_v12  ;;  %v2324_v58 = vpack.c.b16 %v2308_v41, %v2308_v41  ;;  %v2005_v12 = vld [vmem:[#allocation2 + $0xe8] sm:$0x1]  ;;  %v6751_v41 = vld [vmem:[#allocation2 + $0xc4] sm:$0x8] }
 0x10d   : > { %v472_v61 = vadd.f32 %v7264_v2, %v471_v55  ;;  %3521 = vmatmul.bf16.gmra.mxu3 %v2638_v56  ;;  %v2597_v62 = vshrl.u32 %v6744_v52, 16  ;;  %v2600_v63 = vshll.u32 %v6744_v52, 16  ;;  %3815 = vmatpush.bf16.msrb.mxu1 %v6258_v44  ;;  %v549_v59 = vmax.f32 %v515_v42, 0.0  ;;  %v6965_v42 = vld [vmem:[#allocation2 + $0x8] sm:$0xff]  }
 0x10e   : > { %v1424_v0 = vshrl.u32 %v6684_v53, 16  ;;  %v1427_v3 = vshll.u32 %v6684_v53, 16  ;;  %6607 = vst [vmem:[#allocation2 + $0x170] sm:$0xff] %v6394_v51   ;;  %v2355_v22 = vrot.slane %v2324_v58, 5  ;;  %v940_v44 = vshrl.u32 %v6965_v42, 16 }
 0x10f   : > { %v532_v4 = vmax.f32 %v472_v61, 0.0  ;;  %v2599_v5 = vrot.slane %v2597_v62, 3  ;;  %v2602_v6 = vrot.slane %v2600_v63, 4 }
 0x110   : > { %v1426_v7 = vrot.slane %v1424_v0, 3  ;;  %v1429_v8 = vrot.slane %v1427_v3, 4 }
 0x111   : > { %v6354_v11 = vpack.c.bf16 %v532_v4, %v531_v1  ;;  %v2603_v17 = vor.u32 %v2602_v6, %v2599_v5  ;;  %v6257_v1 = vld [vmem:[#allocation3 + $0x48] sm:$0xff] }
 0x112   : > { %v1430_v21 = vor.u32 %v1429_v8, %v1426_v7  ;;  %v516_v60 = vpop.f32.mrf.mxu3  ;;  %3816 = vmatpush.bf16.msrb.mxu1 %v6257_v1 }
 0x113   : > { %6599 = vst [vmem:[#allocation2 + $0xb0] sm:$0xff] %v6354_v11   ;;  %v2612_v24 = vsel %vm1164_vm8, %v2603_v17, %v2611_v18  ;;  %v2351_v25 = vrot.slane %v6354_v11, 5  ;;  %v6492_v26 = vunpack.c.h.b16 %v6354_v11  ;;  %v517_v3 = vadd.f32 %v7264_v2, %v516_v60  ;;  %v627_v11 = vld [vmem:[#allocation2 + $0xf4] sm:$0x8] }
 0x114   : > { %v474_v15 = vpop.f32.mrf.mxu0  ;;  %3343 = vmatmul.bf16.gmra.mxu1 %v2612_v24  ;;  %v1439_v29 = vsel %vm1164_vm8, %v1430_v21, %v2611_v18  ;;  %v628_v14 = vsel %vm7248_vm7, 0, %v627_v11  ;;  %v942_v60 = vrot.slane %v940_v44, 4 }
 0x115   : > { %v2353_v30 = vsel %vm1115_vm9, %v2351_v25, %v2352_v19  ;;  %v2666_v31 = vshrl.u32 %v2351_v25, 16  ;;  %v2669_v33 = vshll.u32 %v2351_v25, 16  ;;  %v2122_v36 = vpack.c.b16 %v6492_v26, %v6492_v26  ;;  %v6256_v25 = vld [vmem:[#allocation3 + $0x40] sm:$0xff]  ;;  %629 = vst [vmem:[#allocation2 + $0xf4] sm:$0x8] %v628_v14 }
 0x116   : > { %v2674_v34 = vshrl.u32 %v2353_v30, 16  ;;  %v2677_v35 = vshll.u32 %v2353_v30, 16  ;;  %v475_v52 = vadd.f32 %v7264_v2, %v474_v15  ;;  %v550_v10 = vmax.f32 %v517_v3, 0.0  ;;  %3817 = vmatpush.bf16.msrb.mxu1 %v6256_v25 }
 0x117   : > { %3759 = vmatmul.bf16.gmra.mxu0 %v1439_v29  ;;  %v2668_v38 = vrot.slane %v2666_v31, 3  ;;  %v2671_v39 = vrot.slane %v2669_v33, 4  ;;  %v2648_v47 = vshrl.u32 %v2122_v36, 16  ;;  %v2651_v48 = vshll.u32 %v2122_v36, 16  ;;  %v6287_v29 = vld [vmem:[#allocation3 + $0x138] sm:$0xff] }
 0x118   : > { %v2676_v45 = vrot.slane %v2674_v34, 3  ;;  %v2679_v46 = vrot.slane %v2677_v35, 4  ;;  %v533_v8 = vmax.f32 %v475_v52, 0.0  ;;  %v6399_v24 = vpack.c.bf16 %v550_v10, %v549_v59  ;;  %3399 = vmatpush.bf16.msrb.mxu2 %v6287_v29  ;;  %v6966_v52 = vld [vmem:[%s8379_s2] ss:$0 sm:$0xff] }
 0x119   : > { %v2672_v50 = vor.u32 %v2671_v39, %v2668_v38  ;;  %v2650_v63 = vrot.slane %v2648_v47, 3  ;;  %v2653_v0 = vrot.slane %v2651_v48, 4  ;;  %v2309_v34 = vunpack.c.l.b16 %v2005_v12 }
 0x11a   : > { %v2680_v53 = vor.u32 %v2679_v46, %v2676_v45  ;;  %v6882_v54 = vld [vmem:[#allocation2 + $0xac] sm:$0xf0]   ;;  %6608 = vst [vmem:[#allocation2 + $0x188] sm:$0xff] %v6399_v24   ;;  %v943_v45 = vshll.u32 %v6965_v42, 16 }
 0x11b   : > { %v6867_v55 = vld [vmem:[#allocation2 + $0xac] sm:$0xf0]   ;;  %v6748_v56 = vor.u32 %v6882_v54, %v6747_v40  ;;  %v2325_v59 = vpack.c.b16 %v2309_v34, %v2309_v34 }
 0x11c   : > { %v6688_v57 = vor.u32 %v6867_v55, %v6687_v49  ;;  %v476_v61 = vpop.f32.mrf.mxu0  ;;  %v2681_v62 = vsel %vm1164_vm8, %v2672_v50, %v2680_v53  ;;  %v6691_v50 = vld [vmem:[#allocation2 + $0xc4] sm:$0x8]  ;;  %v945_v3 = vrot.slane %v943_v45, 5 }
 0x11d   : > { %v477_v4 = vadd.f32 %v7264_v2, %v476_v61  ;;  %3526 = vmatmul.bf16.gmra.mxu3 %v2681_v62  ;;  %v2640_v5 = vshrl.u32 %v6748_v56, 16  ;;  %v2643_v6 = vshll.u32 %v6748_v56, 16  ;;  %v2654_v2 = vor.u32 %v2653_v0, %v2650_v63  ;;  %v2006_v61 = vld [vmem:[#allocation2 + $0x100] sm:$0x1] }
 0x11e   : > { %v1467_v7 = vshrl.u32 %v6688_v57, 16  ;;  %v1470_v9 = vshll.u32 %v6688_v57, 16  ;;  %v2310_v10 = vunpack.c.l.b16 %v2006_v61 }
 0x11f   : > { %v534_v17 = vmax.f32 %v477_v4, 0.0  ;;  %v2642_v18 = vrot.slane %v2640_v5, 3  ;;  %v2645_v19 = vrot.slane %v2643_v6, 4 }
 0x120   : > { %v1469_v20 = vrot.slane %v1467_v7, 3  ;;  %v1472_v21 = vrot.slane %v1470_v9, 4  ;;  %v2326_v12 = vpack.c.b16 %v2310_v10, %v2310_v10 }
 0x121   : > { %v6359_v26 = vpack.c.bf16 %v534_v17, %v533_v8  ;;  %v2646_v13 = vor.u32 %v2645_v19, %v2642_v18 }
 0x122   : > { %v1473_v15 = vor.u32 %v1472_v21, %v1469_v20  ;;  %v946_v21 = vor.u32 %v945_v3, %v942_v60  ;;  %v2361_v44 = vrot.slane %v2326_v12, 5 }
 0x123   : > { %6600 = vst [vmem:[#allocation2 + $0xc8] sm:$0xff] %v6359_v26   ;;  %v2655_v16 = vsel %vm1164_vm8, %v2646_v13, %v2654_v2  ;;  %v2354_v23 = vrot.slane %v6359_v26, 5  ;;  %v6496_v27 = vunpack.c.h.b16 %v6359_v26  ;;  %v2358_v26 = vrot.slane %v2325_v59, 5 }
 0x124   : > { %v479_v28 = vpop.f32.mrf.mxu0  ;;  %3348 = vmatmul.bf16.gmra.mxu1 %v2655_v16  ;;  %v1482_v35 = vsel %vm1164_vm8, %v1473_v15, %v2654_v2 }
 0x125   : > { %v2356_v30 = vsel %vm1115_vm9, %v2354_v23, %v2355_v22  ;;  %v2709_v31 = vshrl.u32 %v2354_v23, 16  ;;  %v2712_v33 = vshll.u32 %v2354_v23, 16  ;;  %v2124_v38 = vpack.c.b16 %v6496_v27, %v6496_v27  ;;  %v7369_v27 = vld [vmem:[#allocation2 + $0xf8] sm:$0xff]  }
 0x126   : > { %v2717_v36 = vshrl.u32 %v2356_v30, 16  ;;  %v2720_v37 = vshll.u32 %v2356_v30, 16  ;;  %v480_v53 = vadd.f32 %v6966_v52, %v479_v28  ;;  %v1183_v23 = vshrl.u32 %v946_v21, 16  ;;  %v6286_v28 = vld [vmem:[#allocation3 + $0x130] sm:$0xff] }
 0x127   : > { %3764 = vmatmul.bf16.gmra.mxu0 %v1482_v35  ;;  %v2711_v39 = vrot.slane %v2709_v31, 3  ;;  %v2714_v40 = vrot.slane %v2712_v33, 4  ;;  %v2691_v48 = vshrl.u32 %v2124_v38, 16  ;;  %v2694_v49 = vshll.u32 %v2124_v38, 16  ;;  %3400 = vmatpush.bf16.msrb.mxu2 %v6286_v28  ;;  %v681_v38 = vld [vmem:[#allocation2 + $0x118] sm:$0x1] }
 0x128   : > { %v2719_v46 = vrot.slane %v2717_v36, 3  ;;  %v2722_v47 = vrot.slane %v2720_v37, 4  ;;  %v535_v8 = vmax.f32 %v480_v53, 0.0  ;;  %v1186_v37 = vshll.u32 %v946_v21, 16 }
 0x129   : > { %v2715_v51 = vor.u32 %v2714_v40, %v2711_v39  ;;  %v2693_v0 = vrot.slane %v2691_v48, 3  ;;  %v2696_v1 = vrot.slane %v2694_v49, 4  ;;  %v7374_v42 = vrot.slane %v7369_v27, 5  ;;  %v6695_v49 = vld [vmem:[#allocation2 + $0xdc] sm:$0x8] }
 0x12a   : > { %v2723_v54 = vor.u32 %v2722_v47, %v2719_v46  ;;  %v6883_v55 = vld [vmem:[#allocation2 + $0xc4] sm:$0xf0]   ;;  %v1188_v59 = vrot.slane %v1186_v37, 4 }
 0x12b   : > { %v6868_v56 = vld [vmem:[#allocation2 + $0xc4] sm:$0xf0]   ;;  %v6752_v57 = vor.u32 %v6883_v55, %v6751_v41  ;;  %v2697_v25 = vor.u32 %v2696_v1, %v2693_v0  ;;  %v6755_v41 = vld [vmem:[#allocation2 + $0xdc] sm:$0x8]  ;;  %v630_v55 = vld [vmem:[#allocation2 + $0x10c] sm:$0x8] }
 0x12c   : > { %v6692_v58 = vor.u32 %v6868_v56, %v6691_v50  ;;  %v481_v62 = vpop.f32.mrf.mxu0  ;;  %v2724_v63 = vsel %vm1164_vm8, %v2715_v51, %v2723_v54  ;;  %v6967_v51 = vld [vmem:[#allocation2 + $0x20] sm:$0xff]  ;;  %v682_v54 = vsel %vm7240_vm4, 0, %v681_v38 }
 0x12d   : > { %v482_v4 = vadd.f32 %v6966_v52, %v481_v62  ;;  %3531 = vmatmul.bf16.gmra.mxu3 %v2724_v63  ;;  %v2683_v5 = vshrl.u32 %v6752_v57, 16  ;;  %v2686_v6 = vshll.u32 %v6752_v57, 16  ;;  %v948_v52 = vshrl.u32 %v6967_v51, 16  ;;  %683 = vst [vmem:[#allocation2 + $0x118] sm:$0x1] %v682_v54 }
 0x12e   : > { %v1510_v7 = vshrl.u32 %v6692_v58, 16  ;;  %v1513_v9 = vshll.u32 %v6692_v58, 16  ;;  %v951_v53 = vshll.u32 %v6967_v51, 16  ;;  %v1185_v58 = vrot.slane %v1183_v23, 3 }
 0x12f   : > { %v536_v11 = vmax.f32 %v482_v4, 0.0  ;;  %v2685_v17 = vrot.slane %v2683_v5, 3  ;;  %v2688_v18 = vrot.slane %v2686_v6, 4  ;;  %v2362_v63 = vsel %vm1115_vm9, %v7374_v42, %v2361_v44  ;;  %v6285_v44 = vld [vmem:[#allocation3 + $0x128] sm:$0xff] }
 0x130   : > { %v1512_v19 = vrot.slane %v1510_v7, 3  ;;  %v1515_v20 = vrot.slane %v1513_v9, 4  ;;  %v631_v5 = vsel %vm7248_vm7, 0, %v630_v55  ;;  %v1189_v10 = vor.u32 %v1188_v59, %v1185_v58  ;;  %3401 = vmatpush.bf16.msrb.mxu2 %v6285_v44 }
 0x131   : > { %v6364_v22 = vpack.c.bf16 %v536_v11, %v535_v8  ;;  %v2689_v24 = vor.u32 %v2688_v18, %v2685_v17  ;;  %632 = vst [vmem:[#allocation2 + $0x10c] sm:$0x8] %v631_v5  ;;  %v6885_v11 = vld [vmem:[#allocation2 + $0xf4] sm:$0xf0]   ;;  %v6504_v17 = vunpack.c.h.b16 %v7369_v27  ;;  %v950_v18 = vrot.slane %v948_v52, 4 }
 0x132   : > { %v1516_v13 = vor.u32 %v1515_v20, %v1512_v19  ;;  %v953_v19 = vrot.slane %v951_v53, 5  ;;  %v684_v53 = vld [vmem:[#allocation2 + $0x130] sm:$0x1] }
 0x133   : > { %6601 = vst [vmem:[#allocation2 + $0xe0] sm:$0xff] %v6364_v22   ;;  %v2698_v2 = vsel %vm1164_vm8, %v2689_v24, %v2697_v25  ;;  %v2357_v14 = vrot.slane %v6364_v22, 5  ;;  %v6500_v15 = vunpack.c.h.b16 %v6364_v22  ;;  %v685_v58 = vsel %vm7240_vm4, 0, %v684_v53 }
 0x134   : > { %v7367_v16 = vpop.f32.mrf.mxu0  ;;  %3353 = vmatmul.bf16.gmra.mxu1 %v2698_v2  ;;  %v1525_v34 = vsel %vm1164_vm8, %v1516_v13, %v2697_v25  ;;  %v6759_v25 = vld [vmem:[#allocation2 + $0xf4] sm:$0x8]  ;;  %v2795_v13 = vshrl.u32 %v7374_v42, 16  ;;  %v2798_v2 = vshll.u32 %v7374_v42, 16  ;;  %686 = vst [vmem:[#allocation2 + $0x130] sm:$0x1] %v685_v58 }
 0x135   : > { %v2359_v29 = vsel %vm1115_vm9, %v2357_v14, %v2358_v26  ;;  %v2752_v30 = vshrl.u32 %v2357_v14, 16  ;;  %v2755_v31 = vshll.u32 %v2357_v14, 16  ;;  %v2126_v33 = vpack.c.b16 %v6500_v15, %v6500_v15 }
 0x136   : > { %v2760_v35 = vshrl.u32 %v2359_v29, 16  ;;  %v2763_v36 = vshll.u32 %v2359_v29, 16  ;;  %v2803_v14 = vshrl.u32 %v2362_v63, 16  ;;  %v2806_v15 = vshll.u32 %v2362_v63, 16 }
 0x137   : > { %3769 = vmatmul.bf16.gmra.mxu0 %v1525_v34  ;;  %v2754_v39 = vrot.slane %v2752_v30, 3  ;;  %v2757_v40 = vrot.slane %v2755_v31, 4  ;;  %v2734_v47 = vshrl.u32 %v2126_v33, 16  ;;  %v2737_v48 = vshll.u32 %v2126_v33, 16  ;;  %v2007_v30 = vld [vmem:[#allocation2 + $0x118] sm:$0x1] }
 0x138   : > { %v2762_v45 = vrot.slane %v2760_v35, 3  ;;  %v2765_v46 = vrot.slane %v2763_v36, 4  ;;  %v6760_v29 = vor.u32 %v6885_v11, %v6759_v25  ;;  %v2128_v33 = vpack.c.b16 %v6504_v17, %v6504_v17  ;;  %v6699_v35 = vld [vmem:[#allocation2 + $0xf4] sm:$0x8]  ;;  %v6870_v36 = vld [vmem:[#allocation2 + $0xf4] sm:$0xf0]  }
 0x139   : > { %v2758_v50 = vor.u32 %v2757_v40, %v2754_v39  ;;  %v2736_v3 = vrot.slane %v2734_v47, 3  ;;  %v2739_v4 = vrot.slane %v2737_v48, 4  ;;  %v954_v34 = vor.u32 %v953_v19, %v950_v18  ;;  %v6968_v17 = vld [vmem:[#allocation2 + $0x38] sm:$0xff]  ;;  %v6703_v44 = vld [vmem:[#allocation2 + $0x10c] sm:$0x8] }
 0x13a   : > { %v2766_v56 = vor.u32 %v2765_v46, %v2762_v45  ;;  %v6884_v57 = vld [vmem:[#allocation2 + $0xdc] sm:$0xf0]   ;;  %v2311_v37 = vunpack.c.l.b16 %v2007_v30  ;;  %v2797_v39 = vrot.slane %v2795_v13, 3  ;;  %v2800_v40 = vrot.slane %v2798_v2, 4  ;;  %v6763_v30 = vld [vmem:[#allocation2 + $0x10c] sm:$0x8] }
 0x13b   : > { %v6869_v60 = vld [vmem:[#allocation2 + $0xdc] sm:$0xf0]   ;;  %v6756_v61 = vor.u32 %v6884_v57, %v6755_v41  ;;  %v2740_v28 = vor.u32 %v2739_v4, %v2736_v3  ;;  %v2805_v41 = vrot.slane %v2803_v14, 3  ;;  %v2808_v42 = vrot.slane %v2806_v15, 4  ;;  %v6886_v15 = vld [vmem:[#allocation2 + $0x10c] sm:$0xf0]  }
 0x13c   : > { %v6696_v62 = vor.u32 %v6869_v60, %v6695_v49  ;;  %v7380_v0 = vpop.f32.mrf.mxu0  ;;  %v2767_v1 = vsel %vm1164_vm8, %v2758_v50, %v2766_v56  ;;  %v2327_v45 = vpack.c.b16 %v2311_v37, %v2311_v37  ;;  %v2769_v47 = vshrl.u32 %v6760_v29, 16  ;;  %v6635_v50 = vld [vmem:[#allocation2 + $0x110] sm:$0xff]  }
 0x13d   : > { %3536 = vmatmul.bf16.gmra.mxu3 %v2767_v1  ;;  %v2726_v6 = vshrl.u32 %v6756_v61, 16  ;;  %v2729_v7 = vshll.u32 %v6756_v61, 16  ;;  %v2772_v48 = vshll.u32 %v6760_v29, 16  ;;  %v6700_v49 = vor.u32 %v6870_v36, %v6699_v35 }
 0x13e   : > { %v1553_v8 = vshrl.u32 %v6696_v62, 16  ;;  %v1556_v9 = vshll.u32 %v6696_v62, 16  ;;  %v2777_v51 = vshrl.u32 %v2128_v33, 16  ;;  %v2780_v52 = vshll.u32 %v2128_v33, 16 }
 0x13f   : > { %v2728_v20 = vrot.slane %v2726_v6, 3  ;;  %v2731_v21 = vrot.slane %v2729_v7, 4  ;;  %v2801_v55 = vor.u32 %v2800_v40, %v2797_v39  ;;  %v2809_v56 = vor.u32 %v2808_v42, %v2805_v41 }
 0x140   : > { %v1555_v22 = vrot.slane %v1553_v8, 3  ;;  %v1558_v24 = vrot.slane %v1556_v9, 4  ;;  %v7386_v26 = vpop.f32.mrf.mxu3  ;;  %v1226_v57 = vshrl.u32 %v954_v34, 16  ;;  %v1229_v60 = vshll.u32 %v954_v34, 16 }
 0x141   : > { %v7390_v12 = vpop.f32.mrf.mxu1  ;;  %v2732_v23 = vor.u32 %v2731_v21, %v2728_v20  ;;  %v2363_v61 = vrot.slane %v6635_v50, 5  ;;  %v2364_v62 = vrot.slane %v2327_v45, 5  ;;  %v2771_v63 = vrot.slane %v2769_v47, 3  ;;  %v6871_v45 = vld [vmem:[#allocation2 + $0x10c] sm:$0xf0]  }
 0x142   : > { %v1559_v27 = vor.u32 %v1558_v24, %v1555_v22  ;;  %v2774_v1 = vrot.slane %v2772_v48, 4  ;;  %v1596_v3 = vshrl.u32 %v6700_v49, 16  ;;  %v1599_v4 = vshll.u32 %v6700_v49, 16 }
 0x143   : > { %v2741_v31 = vsel %vm1164_vm8, %v2732_v23, %v2740_v28  ;;  %v2779_v5 = vrot.slane %v2777_v51, 3  ;;  %v2782_v6 = vrot.slane %v2780_v52, 4  ;;  %v2810_v8 = vsel %vm1164_vm8, %v2801_v55, %v2809_v56  ;;  %v6284_v51 = vld [vmem:[#allocation3 + $0x120] sm:$0xff] }
 0x144   : > { %v7393_v38 = vpop.f32.mrf.mxu0  ;;  %3358 = vmatmul.bf16.vlgmr.msra.gmra.mxu2 %v2741_v31  ;;  %3818 = vmatmul.bf16.vlgmr.msrb.gmra.mxu1 %v1189_v10  ;;  %v1568_v46 = vsel %vm1164_vm8, %v1559_v27, %v2740_v28  ;;  %v1228_v9 = vrot.slane %v1226_v57, 3  ;;  %v633_v10 = vld [vmem:[#allocation2 + $0x124] sm:$0x8]  ;;  %v2365_v11 = vsel %vm1115_vm9, %v2363_v61, %v2364_v62  ;;  %v956_v18 = vshrl.u32 %v6968_v17, 16  ;;  %v2008_v31 = vld [vmem:[#allocation2 + $0x130] sm:$0x1] }
 0x145   : > { %v959_v19 = vshll.u32 %v6968_v17, 16  ;;  %v634_v20 = vsel %vm7248_vm7, 0, %v633_v10  ;;  %v2775_v21 = vor.u32 %v2774_v1, %v2771_v63  ;;  %v1231_v22 = vrot.slane %v1229_v60, 4  ;;  %v6636_v57 = vld [vmem:[#allocation2 + $0x128] sm:$0xff]   ;;  %3402 = vmatpush.bf16.msrb.mxu2 %v6284_v51 }
 0x146   : > { %v1598_v24 = vrot.slane %v1596_v3, 3  ;;  %v1601_v25 = vrot.slane %v1599_v4, 4  ;;  %635 = vst [vmem:[#allocation2 + $0x124] sm:$0x8] %v634_v20  ;;  %v2783_v13 = vor.u32 %v2782_v6, %v2779_v5  ;;  %v2838_v2 = vshrl.u32 %v2363_v61, 16 }
 0x147   : > { %3774 = vmatmul.bf16.gmra.mxu0 %v1568_v46  ;;  %v2841_v14 = vshll.u32 %v2363_v61, 16  ;;  %v6508_v23 = vunpack.c.h.b16 %v6635_v50  ;;  %v2846_v27 = vshrl.u32 %v2365_v11, 16  ;;  %v2849_v29 = vshll.u32 %v2365_v11, 16 }
 0x148   : > { %v7396_v54 = vpop.f32.mrf.mxu3  ;;  %v958_v34 = vrot.slane %v956_v18, 4  ;;  %v961_v35 = vrot.slane %v959_v19, 5  ;;  %v2312_v36 = vunpack.c.l.b16 %v2008_v31  ;;  %v1232_v37 = vor.u32 %v1231_v22, %v1228_v9  ;;  %v687_v9 = vld [vmem:[#allocation2 + $0x148] sm:$0x1] }
 0x149   : > { %v7400_v59 = vpop.f32.mrf.mxu1  ;;  %v1602_v39 = vor.u32 %v1601_v25, %v1598_v24  ;;  %v2784_v40 = vsel %vm1164_vm8, %v2775_v21, %v2783_v13  ;;  %v6764_v41 = vor.u32 %v6886_v15, %v6763_v30  ;;  %v2130_v42 = vpack.c.b16 %v6508_v23, %v6508_v23  ;;  %v6969_v15 = vld [vmem:[#allocation2 + $0x50] sm:$0xff] }
 0x14a   : > { %v2840_v47 = vrot.slane %v2838_v2, 3  ;;  %v2843_v48 = vrot.slane %v2841_v14, 4  ;;  %v2848_v49 = vrot.slane %v2846_v27, 3  ;;  %v2851_v50 = vrot.slane %v2849_v29, 4 }
 0x14b   : > { %v962_v52 = vor.u32 %v961_v35, %v958_v34  ;;  %v2328_v53 = vpack.c.b16 %v2312_v36, %v2312_v36  ;;  %v1611_v55 = vsel %vm1164_vm8, %v1602_v39, %v2783_v13  ;;  %v6704_v56 = vor.u32 %v6871_v45, %v6703_v44  ;;  %v636_v13 = vld [vmem:[#allocation2 + $0x13c] sm:$0x8] }
 0x14c   : > { %v7402_v7 = vpop.f32.mrf.mxu0  ;;  %v2812_v58 = vshrl.u32 %v6764_v41, 16  ;;  %v2815_v60 = vshll.u32 %v6764_v41, 16  ;;  %v2820_v61 = vshrl.u32 %v2130_v42, 16  ;;  %v2823_v62 = vshll.u32 %v2130_v42, 16 }
 0x14d   : > { %8389 = vst [vmem:[#allocation9_spill] sm:$0xff] %v7402_v7  ;;  %3541 = vmatmul.bf16.gmra.mxu3 %v2810_v8  ;;  %v2844_v1 = vor.u32 %v2843_v48, %v2840_v47  ;;  %v2852_v3 = vor.u32 %v2851_v50, %v2848_v49  ;;  %v1269_v5 = vshrl.u32 %v962_v52, 16  ;;  %v2366_v6 = vrot.slane %v6636_v57, 5  ;;  %v6767_v39 = vld [vmem:[#allocation2 + $0x124] sm:$0x8] }
 0x14e   : > { %v2367_v8 = vrot.slane %v2328_v53, 5  ;;  %v1272_v10 = vshll.u32 %v962_v52, 16  ;;  %v1639_v11 = vshrl.u32 %v6704_v56, 16  ;;  %v1642_v17 = vshll.u32 %v6704_v56, 16 }
 0x14f   : > { %v2814_v18 = vrot.slane %v2812_v58, 3  ;;  %v2817_v19 = vrot.slane %v2815_v60, 4  ;;  %v2822_v20 = vrot.slane %v2820_v61, 3  ;;  %v2825_v21 = vrot.slane %v2823_v62, 4  ;;  %v6707_v60 = vld [vmem:[#allocation2 + $0x124] sm:$0x8] }
 0x150   : > { %v7408_v28 = vpop.f32.mrf.mxu3  ;;  %v2853_v24 = vsel %vm1164_vm8, %v2844_v1, %v2852_v3  ;;  %v688_v25 = vsel %vm7240_vm4, 0, %v687_v9  ;;  %v1271_v2 = vrot.slane %v1269_v5, 3  ;;  %v2368_v14 = vsel %vm1115_vm9, %v2366_v6, %v2367_v8  ;;  %v6872_v61 = vld [vmem:[#allocation2 + $0x124] sm:$0xf0]  }
 0x151   : > { %v7410_v33 = vpop.f32.mrf.mxu1  ;;  %v964_v23 = vshrl.u32 %v6969_v15, 16  ;;  %689 = vst [vmem:[#allocation2 + $0x148] sm:$0x1] %v688_v25  ;;  %v637_v27 = vsel %vm7248_vm7, 0, %v636_v13  ;;  %v1274_v29 = vrot.slane %v1272_v10, 4  ;;  %v1641_v30 = vrot.slane %v1639_v11, 3 }
 0x152   : > { %v1644_v31 = vrot.slane %v1642_v17, 4  ;;  %v967_v34 = vshll.u32 %v6969_v15, 16  ;;  %638 = vst [vmem:[#allocation2 + $0x13c] sm:$0x8] %v637_v27  ;;  %v2818_v35 = vor.u32 %v2817_v19, %v2814_v18  ;;  %v2826_v36 = vor.u32 %v2825_v21, %v2822_v20  ;;  %v6637_v18 = vld [vmem:[#allocation2 + $0x140] sm:$0xff]  }
 0x153   : > { %v6512_v41 = vunpack.c.h.b16 %v6636_v57  ;;  %v2884_v44 = vshll.u32 %v2366_v6, 16  ;;  %v2889_v45 = vshrl.u32 %v2368_v14, 16  ;;  %v2892_v47 = vshll.u32 %v2368_v14, 16 }
 0x154   : > { %v7413_v46 = vpop.f32.mrf.mxu0  ;;  %3363 = vmatmul.bf16.gmra.mxu2 %v2784_v40  ;;  %3823 = vmatmul.bf16.gmra.mxu1 %v1232_v37  ;;  %v2881_v37 = vshrl.u32 %v2366_v6, 16  ;;  %v6887_v40 = vld [vmem:[#allocation2 + $0x124] sm:$0xf0]   ;;  %v966_v49 = vrot.slane %v964_v23, 4  ;;  %v7432_v50 = vor.u32 %v1274_v29, %v1271_v2  ;;  %v1645_v51 = vor.u32 %v1644_v31, %v1641_v30 }
 0x155   : > { %8390 = vst [vmem:[#allocation10_spill] sm:$0xff] %v7413_v46  ;;  %v6768_v52 = vor.u32 %v6887_v40, %v6767_v39  ;;  %v969_v53 = vrot.slane %v967_v34, 5  ;;  %v2132_v58 = vpack.c.b16 %v6512_v41, %v6512_v41  ;;  %v2886_v62 = vrot.slane %v2884_v44, 4  ;;  %v6283_v6 = vld [vmem:[#allocation3 + $0x118] sm:$0xff]  ;;  %v690_v34 = vld [vmem:[#allocation2 + $0x160] sm:$0x1] }
 0x156   : > { %v2883_v56 = vrot.slane %v2881_v37, 3  ;;  %v2891_v1 = vrot.slane %v2889_v45, 3  ;;  %v2894_v3 = vrot.slane %v2892_v47, 4  ;;  %v1654_v9 = vsel %vm1164_vm8, %v1645_v51, %v2826_v36  ;;  %3403 = vmatpush.bf16.msrb.mxu2 %v6283_v6  ;;  %v6970_v44 = vld [vmem:[#allocation2 + $0x68] sm:$0xff]  ;;  %v639_v47 = vld [vmem:[#allocation2 + $0x154] sm:$0x8] }
 0x157   : > { %3779 = vmatmul.bf16.gmra.mxu0 %v1611_v55  ;;  %v2827_v55 = vsel %vm1164_vm8, %v2818_v35, %v2826_v36  ;;  %v2855_v10 = vshrl.u32 %v6768_v52, 16  ;;  %v970_v11 = vor.u32 %v969_v53, %v966_v49  ;;  %v6708_v17 = vor.u32 %v6872_v61, %v6707_v60 }
 0x158   : > { %v7416_v63 = vpop.f32.mrf.mxu3  ;;  %v2009_v5 = vld [vmem:[#allocation2 + $0x148] sm:$0x1]  ;;  %v2858_v19 = vshll.u32 %v6768_v52, 16  ;;  %v2863_v20 = vshrl.u32 %v2132_v58, 16  ;;  %v2866_v21 = vshll.u32 %v2132_v58, 16  ;;  %v2887_v13 = vor.u32 %v2886_v62, %v2883_v56 }
 0x159   : > { %v7418_v4 = vpop.f32.mrf.mxu1  ;;  %v2313_v8 = vunpack.c.l.b16 %v2009_v5  ;;  %v2895_v2 = vor.u32 %v2894_v3, %v2891_v1  ;;  %v2369_v15 = vrot.slane %v6637_v18, 5  ;;  %v1312_v27 = vshrl.u32 %v970_v11, 16  ;;  %v6888_v1 = vld [vmem:[#allocation2 + $0x13c] sm:$0xf0]  }
 0x15a   : > { %v1315_v29 = vshll.u32 %v970_v11, 16  ;;  %v1682_v30 = vshrl.u32 %v6708_v17, 16  ;;  %v1685_v31 = vshll.u32 %v6708_v17, 16  ;;  %v2857_v35 = vrot.slane %v2855_v10, 3  ;;  %v6771_v11 = vld [vmem:[#allocation2 + $0x13c] sm:$0x8] }
 0x15b   : > { %v2860_v36 = vrot.slane %v2858_v19, 4  ;;  %v2865_v37 = vrot.slane %v2863_v20, 3  ;;  %v2868_v39 = vrot.slane %v2866_v21, 4  ;;  %v2896_v41 = vsel %vm1164_vm8, %v2887_v13, %v2895_v2 }
 0x15c   : > { %v7420_v22 = vpop.f32.mrf.mxu0  ;;  %v972_v45 = vshrl.u32 %v6970_v44, 16  ;;  %v975_v51 = vshll.u32 %v6970_v44, 16  ;;  %v691_v52 = vsel %vm7240_vm4, 0, %v690_v34  ;;  %v640_v53 = vsel %vm7248_vm7, 0, %v639_v47  ;;  %v6638_v44 = vld [vmem:[#allocation2 + $0x158] sm:$0xff]  }
 0x15d   : > { %8391 = vst [vmem:[#allocation11_spill] sm:$0xff] %v7420_v22  ;;  %3546 = vmatmul.bf16.gmra.mxu3 %v2853_v24  ;;  %v2329_v24 = vpack.c.b16 %v2313_v8, %v2313_v8  ;;  %v1317_v56 = vrot.slane %v1315_v29, 4  ;;  %v1684_v58 = vrot.slane %v1682_v30, 3  ;;  %v1687_v60 = vrot.slane %v1685_v31, 4 }
 0x15e   : > { %692 = vst [vmem:[#allocation2 + $0x160] sm:$0x1] %v691_v52  ;;  %v2861_v61 = vor.u32 %v2860_v36, %v2857_v35  ;;  %v2869_v62 = vor.u32 %v2868_v39, %v2865_v37  ;;  %v6516_v3 = vunpack.c.h.b16 %v6637_v18  ;;  %v2924_v6 = vshrl.u32 %v2369_v15, 16  ;;  %v6711_v18 = vld [vmem:[#allocation2 + $0x13c] sm:$0x8]  ;;  %v6282_v35 = vld [vmem:[#allocation3 + $0x110] sm:$0xff] }
 0x15f   : > { %v2370_v23 = vrot.slane %v2329_v24, 5  ;;  %641 = vst [vmem:[#allocation2 + $0x154] sm:$0x8] %v640_v53  ;;  %v2927_v8 = vshll.u32 %v2369_v15, 16  ;;  %v974_v19 = vrot.slane %v972_v45, 4  ;;  %v977_v20 = vrot.slane %v975_v51, 5  ;;  %3404 = vmatpush.bf16.msrb.mxu2 %v6282_v35 }
 0x160   : > { %v7428_v42 = vpop.f32.mrf.mxu3  ;;  %v1688_v24 = vor.u32 %v1687_v60, %v1684_v58  ;;  %v2870_v13 = vsel %vm1164_vm8, %v2861_v61, %v2869_v62  ;;  %v6772_v2 = vor.u32 %v6888_v1, %v6771_v11  ;;  %v6311_v53 = vld [vmem:[#allocation3 + $0x1f8] sm:$0xff] }
 0x161   : > { %8392 = vst [vmem:[#allocation12_spill] sm:$0xff] %v7428_v42  ;;  %v7430_v48 = vpop.f32.mrf.mxu1  ;;  %v2371_v49 = vsel %vm1115_vm9, %v2369_v15, %v2370_v23  ;;  %v2134_v23 = vpack.c.b16 %v6516_v3, %v6516_v3  ;;  %v2926_v15 = vrot.slane %v2924_v6, 3  ;;  %v2929_v30 = vrot.slane %v2927_v8, 4  ;;  %5439 = vmatpush.bf16.msra.mxu0 %v6311_v53  ;;  %v693_v6 = vld [vmem:[#allocation2 + $0x178] sm:$0x1] }
 0x162   : > { %8393 = vst [vmem:[#allocation13_spill] sm:$0xff] %v7430_v48  ;;  %v2935_v10 = vshll.u32 %v2371_v49, 16  ;;  %v978_v36 = vor.u32 %v977_v20, %v974_v19  ;;  %v1697_v39 = vsel %vm1164_vm8, %v1688_v24, %v2869_v62  ;;  %v2898_v47 = vshrl.u32 %v6772_v2, 16  ;;  %v6889_v53 = vld [vmem:[#allocation2 + $0x154] sm:$0xf0]  }
 0x163   : > { %v2906_v51 = vshrl.u32 %v2134_v23, 16  ;;  %v2909_v52 = vshll.u32 %v2134_v23, 16  ;;  %v2372_v62 = vrot.slane %v6638_v44, 5  ;;  %v6971_v23 = vld [vmem:[#allocation2 + $0x80] sm:$0xff] }
 0x164   : > { %v7435_v57 = vpop.f32.mrf.mxu0  ;;  %3368 = vmatmul.bf16.gmra.mxu2 %v2827_v55  ;;  %3828 = vmatmul.bf16.gmra.mxu1 %v7432_v50  ;;  %v1314_v55 = vrot.slane %v1312_v27, 3  ;;  %v6873_v27 = vld [vmem:[#allocation2 + $0x13c] sm:$0xf0]   ;;  %v2937_v34 = vrot.slane %v2935_v10, 4  ;;  %v1355_v1 = vshrl.u32 %v978_v36, 16  ;;  %v1358_v3 = vshll.u32 %v978_v36, 16 }
 0x165   : > { %8394 = vst [vmem:[#allocation14_spill] sm:$0xff] %v7435_v57  ;;  %v2010_v37 = vld [vmem:[#allocation2 + $0x160] sm:$0x1]  ;;  %v2900_v11 = vrot.slane %v2898_v47, 3  ;;  %v2908_v20 = vrot.slane %v2906_v51, 3  ;;  %v2911_v24 = vrot.slane %v2909_v52, 4 }
 0x166   : > { %v7455_v21 = vor.u32 %v1317_v56, %v1314_v55  ;;  %v2314_v45 = vunpack.c.l.b16 %v2010_v37  ;;  %v2930_v56 = vor.u32 %v2929_v30, %v2926_v15  ;;  %v694_v15 = vsel %vm7240_vm4, 0, %v693_v6  ;;  %v642_v30 = vld [vmem:[#allocation2 + $0x16c] sm:$0x8] }
 0x167   : > { %3784 = vmatmul.bf16.gmra.mxu0 %v1654_v9  ;;  %v2932_v9 = vshrl.u32 %v2371_v49, 16  ;;  %v2901_v49 = vshll.u32 %v6772_v2, 16  ;;  %v983_v36 = vshll.u32 %v6971_v23, 16  ;;  %695 = vst [vmem:[#allocation2 + $0x178] sm:$0x1] %v694_v15  ;;  %v643_v47 = vsel %vm7248_vm7, 0, %v642_v30 }
 0x168   : > { %v7439_v25 = vpop.f32.mrf.mxu3  ;;  %v2330_v60 = vpack.c.b16 %v2314_v45, %v2314_v45  ;;  %v6309_v45 = vld [vmem:[#allocation3 + $0x1e8] sm:$0xff]  ;;  %v2912_v51 = vor.u32 %v2911_v24, %v2908_v20  ;;  %v2967_v52 = vshrl.u32 %v2372_v62, 16  ;;  %644 = vst [vmem:[#allocation2 + $0x16c] sm:$0x8] %v643_v47  ;;  %v6715_v24 = vld [vmem:[#allocation2 + $0x154] sm:$0x8] }
 0x169   : > { %8395 = vst [vmem:[#allocation15_spill] sm:$0xff] %v7439_v25  ;;  %v7441_v14 = vpop.f32.mrf.mxu1  ;;  %v2934_v31 = vrot.slane %v2932_v9, 3  ;;  %v2903_v19 = vrot.slane %v2901_v49, 4  ;;  %v6308_v30 = vld [vmem:[#allocation3 + $0x1e0] sm:$0xff] }
 0x16a   : > { %8396 = vst [vmem:[#allocation16_spill] sm:$0xff] %v7441_v14  ;;  %v2373_v10 = vrot.slane %v2330_v60, 5  ;;  %v7485_v47 = vld [vmem:[#allocation2 + $0x170] sm:$0xff]  }
 0x16b   : > { %v2938_v58 = vor.u32 %v2937_v34, %v2934_v31  ;;  %v1357_v31 = vrot.slane %v1355_v1, 3  ;;  %v1360_v34 = vrot.slane %v1358_v3, 4  ;;  %v2904_v49 = vor.u32 %v2903_v19, %v2900_v11  ;;  %v6775_v3 = vld [vmem:[#allocation2 + $0x154] sm:$0x8] }
 0x16c   : > { %v7443_v40 = vpop.f32.mrf.mxu0  ;;  %v2374_v35 = vsel %vm1115_vm9, %v2372_v62, %v2373_v10  ;;  %v2969_v19 = vrot.slane %v2967_v52, 3  ;;  %v6776_v20 = vor.u32 %v6889_v53, %v6775_v3 }
 0x16d   : > { %8397 = vst [vmem:[#allocation17_spill] sm:$0xff] %v7443_v40  ;;  %3551 = vmatmul.bf16.gmra.mxu3 %v2896_v41  ;;  %v6712_v41 = vor.u32 %v6873_v27, %v6711_v18  ;;  %v2939_v2 = vsel %vm1164_vm8, %v2930_v56, %v2938_v58  ;;  %v980_v18 = vshrl.u32 %v6971_v23, 16  ;;  %v6310_v27 = vld [vmem:[#allocation3 + $0x1f0] sm:$0xff]  ;;  %v2970_v58 = vshll.u32 %v2372_v62, 16  ;;  %v6874_v23 = vld [vmem:[#allocation2 + $0x154] sm:$0xf0]  }
 0x16e   : > { %5440 = vmatpush.bf16.msra.mxu0 %v6310_v27  ;;  %v2975_v60 = vshrl.u32 %v2374_v35, 16  ;;  %v2978_v1 = vshll.u32 %v2374_v35, 16  ;;  %v2913_v11 = vsel %vm1164_vm8, %v2904_v49, %v2912_v51  ;;  %v6281_v35 = vld [vmem:[#allocation3 + $0x108] sm:$0xff]  ;;  %v2941_v49 = vshrl.u32 %v6776_v20, 16 }
 0x16f   : > { %v1725_v8 = vshrl.u32 %v6712_v41, 16  ;;  %v1728_v9 = vshll.u32 %v6712_v41, 16  ;;  %v6520_v41 = vunpack.c.h.b16 %v6638_v44  ;;  %v7478_v44 = vor.u32 %v1360_v34, %v1357_v31  ;;  %v2011_v31 = vld [vmem:[#allocation2 + $0x178] sm:$0x1]  ;;  %3405 = vmatpush.bf16.msrb.mxu2 %v6281_v35 }
 0x170   : > { %v7451_v5 = vpop.f32.mrf.mxu3  ;;  %v2972_v62 = vrot.slane %v2970_v58, 4  ;;  %v2977_v15 = vrot.slane %v2975_v60, 3  ;;  %v2315_v34 = vunpack.c.l.b16 %v2011_v31  ;;  %v2944_v52 = vshll.u32 %v6776_v20, 16  ;;  %v6307_v60 = vld [vmem:[#allocation3 + $0x1d8] sm:$0xff]  ;;  %v6302_v31 = vld [vmem:[#allocation3 + $0x1b0] sm:$0xff] }
 0x171   : > { %8398 = vst [vmem:[#allocation18_spill] sm:$0xff] %v7451_v5  ;;  %v7453_v17 = vpop.f32.mrf.mxu1  ;;  %v1727_v37 = vrot.slane %v1725_v8, 3  ;;  %v982_v8 = vrot.slane %v980_v18, 4  ;;  %v2136_v10 = vpack.c.b16 %v6520_v41, %v6520_v41  ;;  %v2980_v18 = vrot.slane %v2978_v1, 4 }
 0x172   : > { %8399 = vst [vmem:[#allocation19_spill] sm:$0xff] %v7453_v17  ;;  %5441 = vmatpush.bf16.msra.mxu0 %v6309_v45  ;;  %v6716_v45 = vor.u32 %v6874_v23, %v6715_v24  ;;  %v2331_v58 = vpack.c.b16 %v2315_v34, %v2315_v34  ;;  %v2973_v3 = vor.u32 %v2972_v62, %v2969_v19  ;;  %v2946_v20 = vrot.slane %v2944_v52, 4  ;;  %v6306_v62 = vld [vmem:[#allocation3 + $0x1d0] sm:$0xff] }
 0x173   : > { %v2952_v53 = vshll.u32 %v2136_v10, 16 }
 0x174   : > { %v7458_v29 = vpop.f32.mrf.mxu0  ;;  %3373 = vmatmul.bf16.gmra.mxu2 %v2870_v13  ;;  %3833 = vmatmul.bf16.gmra.mxu1 %v7455_v21  ;;  %v1768_v23 = vshrl.u32 %v6716_v45, 16 }
 0x175   : > { %8400 = vst [vmem:[#allocation20_spill] sm:$0xff] %v7458_v29  ;;  %v2954_v35 = vrot.slane %v2952_v53, 4 }
 0x176   : > { %5442 = vmatpush.bf16.msra.mxu0 %v6308_v30  ;;  %v1771_v30 = vshll.u32 %v6716_v45, 16 }
 0x177   : > { %3789 = vmatmul.bf16.gmra.mxu0 %v1697_v39  ;;  %v1730_v39 = vrot.slane %v1728_v9, 4 }
 0x178   : > { %v7462_v55 = vpop.f32.mrf.mxu3 }
 0x179   : > { %8401 = vst [vmem:[#allocation21_spill] sm:$0xff] %v7462_v55  ;;  %v7464_v61 = vpop.f32.mrf.mxu1  ;;  %v1731_v9 = vor.u32 %v1730_v39, %v1727_v37  ;;  %v2949_v39 = vshrl.u32 %v2136_v10, 16  ;;  %v2943_v10 = vrot.slane %v2941_v49, 3  ;;  %v1773_v49 = vrot.slane %v1771_v30, 4 }
 0x17a   : > { %8402 = vst [vmem:[#allocation22_spill] sm:$0xff] %v7464_v61  ;;  %5443 = vmatpush.bf16.msra.mxu0 %v6307_v60  ;;  %v1770_v60 = vrot.slane %v1768_v23, 3  ;;  %v6300_v23 = vld [vmem:[#allocation3 + $0x1a0] sm:$0xff] }
 0x17b   : > { %v1740_v37 = vsel %vm1164_vm8, %v1731_v9, %v2912_v51  ;;  %v2376_v9 = vrot.slane %v2331_v58, 5  ;;  %v2951_v34 = vrot.slane %v2949_v39, 3  ;;  %v6305_v39 = vld [vmem:[#allocation3 + $0x1c8] sm:$0xff]  ;;  %v2947_v52 = vor.u32 %v2946_v20, %v2943_v10 }
 0x17c   : > { %v7466_v13 = vpop.f32.mrf.mxu0  ;;  %v1774_v10 = vor.u32 %v1773_v49, %v1770_v60 }
 0x17d   : > { %8403 = vst [vmem:[#allocation23_spill] sm:$0xff] %v7466_v13  ;;  %3556 = vmatmul.bf16.gmra.mxu3 %v2939_v2  ;;  %v985_v2 = vrot.slane %v983_v36, 5  ;;  %v6303_v36 = vld [vmem:[#allocation3 + $0x1b8] sm:$0xff]  ;;  %v2955_v53 = vor.u32 %v2954_v35, %v2951_v34  ;;  %v6890_v13 = vld [vmem:[#allocation2 + $0x16c] sm:$0xf0]  }
 0x17e   : > { %5350 = vmatpush.bf16.msra.mxu3 %v6303_v36  ;;  %v6972_v36 = vld [vmem:[#allocation2 + $0x98] sm:$0xff]  ;;  %5444 = vmatpush.bf16.msra.mxu0 %v6306_v62  ;;  %v6719_v62 = vld [vmem:[#allocation2 + $0x16c] sm:$0x8] }
 0x17f   : > { %v986_v41 = vor.u32 %v985_v2, %v982_v8  ;;  %v2375_v8 = vrot.slane %v7485_v47, 5  ;;  %v988_v58 = vshrl.u32 %v6972_v36, 16  ;;  %v2956_v20 = vsel %vm1164_vm8, %v2947_v52, %v2955_v53  ;;  %v6299_v52 = vld [vmem:[#allocation3 + $0x198] sm:$0xff] }
 0x180   : > { %v7474_v56 = vpop.f32.mrf.mxu3 }
 0x181   : > { %8404 = vst [vmem:[#allocation24_spill] sm:$0xff] %v7474_v56  ;;  %v7476_v6 = vpop.f32.mrf.mxu1  ;;  %v1398_v2 = vshrl.u32 %v986_v41, 16  ;;  %v1401_v24 = vshll.u32 %v986_v41, 16  ;;  %v991_v41 = vshll.u32 %v6972_v36, 16 }
 0x182   : > { %8405 = vst [vmem:[#allocation25_spill] sm:$0xff] %v7476_v6  ;;  %5351 = vmatpush.bf16.msra.mxu3 %v6302_v31  ;;  %v3013_v31 = vshll.u32 %v2375_v8, 16  ;;  %5445 = vmatpush.bf16.msra.mxu0 %v6305_v39  ;;  %v6280_v39 = vld [vmem:[#allocation3 + $0x100] sm:$0xff] }
 0x183   : > { %v1403_v45 = vrot.slane %v1401_v24, 4  ;;  %v993_v24 = vrot.slane %v991_v41, 5  ;;  %v6304_v41 = vld [vmem:[#allocation3 + $0x1c0] sm:$0xff]  ;;  %3406 = vmatpush.bf16.msrb.mxu2 %v6280_v39 }
 0x184   : > { %v7481_v27 = vpop.f32.mrf.mxu0  ;;  %3378 = vmatmul.bf16.gmra.mxu2 %v2913_v11  ;;  %3838 = vmatmul.bf16.gmra.mxu1 %v7478_v44  ;;  %v2981_v11 = vor.u32 %v2980_v18, %v2977_v15  ;;  %v6301_v15 = vld [vmem:[#allocation3 + $0x1a8] sm:$0xff]  ;;  %v2377_v18 = vsel %vm1115_vm9, %v2375_v8, %v2376_v9  ;;  %v6973_v39 = vld [vmem:[#allocation2 + $0xb0] sm:$0xff] }
 0x185   : > { %8406 = vst [vmem:[#allocation26_spill] sm:$0xff] %v7481_v27  ;;  %v1400_v27 = vrot.slane %v1398_v2, 3  ;;  %v3021_v9 = vshll.u32 %v2377_v18, 16  ;;  %v990_v2 = vrot.slane %v988_v58, 4 }
 0x186   : > { %v2982_v19 = vsel %vm1164_vm8, %v2973_v3, %v2981_v11  ;;  %v6524_v3 = vunpack.c.h.b16 %v7485_v47  ;;  %5352 = vmatpush.bf16.msra.mxu3 %v6301_v15  ;;  %v3015_v15 = vrot.slane %v3013_v31, 4  ;;  %5446 = vmatpush.bf16.msra.mxu0 %v6304_v41  ;;  %v6298_v41 = vld [vmem:[#allocation3 + $0x190] sm:$0xff] }
 0x187   : > { %3794 = vmatmul.bf16.gmra.mxu0 %v1740_v37  ;;  %v7501_v30 = vor.u32 %v1403_v45, %v1400_v27  ;;  %v3023_v58 = vrot.slane %v3021_v9, 4  ;;  %v696_v27 = vld [vmem:[#allocation2 + $0x190] sm:$0x1]  ;;  %v994_v45 = vor.u32 %v993_v24, %v990_v2 }
 0x188   : > { %v7487_v1 = vpop.f32.mrf.mxu3  ;;  %v2138_v35 = vpack.c.b16 %v6524_v3, %v6524_v3  ;;  %v697_v60 = vsel %vm7240_vm4, 0, %v696_v27 }
 0x189   : > { %8407 = vst [vmem:[#allocation27_spill] sm:$0xff] %v7487_v1  ;;  %v7489_v51 = vpop.f32.mrf.mxu1  ;;  %v6779_v1 = vld [vmem:[#allocation2 + $0x16c] sm:$0x8] }
 0x18a   : > { %8408 = vst [vmem:[#allocation28_spill] sm:$0xff] %v7489_v51  ;;  %v6780_v47 = vor.u32 %v6890_v13, %v6779_v1  ;;  %5353 = vmatpush.bf16.msra.mxu3 %v6300_v23  ;;  %v1783_v13 = vsel %vm1164_vm8, %v1774_v10, %v2955_v53  ;;  %v2995_v9 = vshll.u32 %v2138_v35, 16  ;;  %v1441_v23 = vshrl.u32 %v994_v45, 16 }
 0x18b   : > { %698 = vst [vmem:[#allocation2 + $0x190] sm:$0x1] %v697_v60  ;;  %v1444_v10 = vshll.u32 %v994_v45, 16 }
 0x18c   : > { %v7492_v37 = vpop.f32.mrf.mxu0  ;;  %v2984_v3 = vshrl.u32 %v6780_v47, 16  ;;  %v2987_v31 = vshll.u32 %v6780_v47, 16  ;;  %v2997_v60 = vrot.slane %v2995_v9, 4  ;;  %v1443_v45 = vrot.slane %v1441_v23, 3  ;;  %v6891_v23 = vld [vmem:[#allocation2 + $0x184] sm:$0xf0]  }
 0x18d   : > { %8409 = vst [vmem:[#allocation29_spill] sm:$0xff] %v7492_v37  ;;  %3561 = vmatmul.bf16.gmra.mxu3 %v2982_v19  ;;  %v3010_v37 = vshrl.u32 %v2375_v8, 16  ;;  %v3018_v19 = vshrl.u32 %v2377_v18, 16  ;;  %v6875_v8 = vld [vmem:[#allocation2 + $0x16c] sm:$0xf0]  }
 0x18e   : > { %v6720_v1 = vor.u32 %v6875_v8, %v6719_v62  ;;  %5354 = vmatpush.bf16.msra.mxu3 %v6299_v52  ;;  %v2986_v47 = vrot.slane %v2984_v3, 3  ;;  %v2989_v27 = vrot.slane %v2987_v31, 4  ;;  %v999_v52 = vshll.u32 %v6973_v39, 16 }
 0x18f   : > { %v3012_v34 = vrot.slane %v3010_v37, 3  ;;  %v3020_v18 = vrot.slane %v3018_v19, 3  ;;  %v645_v37 = vld [vmem:[#allocation2 + $0x184] sm:$0x8]  ;;  %v2992_v19 = vshrl.u32 %v2138_v35, 16 }
 0x190   : > { %v7497_v11 = vpop.f32.mrf.mxu3  ;;  %v646_v49 = vsel %vm7248_vm7, 0, %v645_v37  ;;  %v1811_v62 = vshrl.u32 %v6720_v1, 16  ;;  %v1814_v8 = vshll.u32 %v6720_v1, 16  ;;  %v996_v1 = vshrl.u32 %v6973_v39, 16 }
 0x191   : > { %8410 = vst [vmem:[#allocation30_spill] sm:$0xff] %v7497_v11  ;;  %v7499_v36 = vpop.f32.mrf.mxu1  ;;  %v3016_v32 = vor.u32 %v3015_v15, %v3012_v34  ;;  %v3024_v24 = vor.u32 %v3023_v58, %v3020_v18  ;;  %v2994_v35 = vrot.slane %v2992_v19, 3  ;;  %v4198_v18 = vshrl.u32 %v7516_v43, 16 }
 0x192   : > { %8411 = vst [vmem:[#allocation31_spill] sm:$0xff] %v7499_v36  ;;  %v4201_v58 = vshll.u32 %v7516_v43, 16  ;;  %v1813_v3 = vrot.slane %v1811_v62, 3  ;;  %v1816_v31 = vrot.slane %v1814_v8, 4  ;;  %5355 = vmatpush.bf16.msra.mxu3 %v6298_v41  ;;  %v998_v39 = vrot.slane %v996_v1, 4 }
 0x193   : > { %647 = vst [vmem:[#allocation2 + $0x184] sm:$0x8] %v646_v49  ;;  %v3025_v34 = vsel %vm1164_vm8, %v3016_v32, %v3024_v24  ;;  %v2012_v49 = vld [vmem:[#allocation2 + $0x190] sm:$0x1]  ;;  %v2998_v32 = vor.u32 %v2997_v60, %v2994_v35  ;;  %v4200_v62 = vrot.slane %v4198_v18, 4  ;;  %v1001_v51 = vrot.slane %v999_v52, 5 }
 0x194   : > { %v7504_v11 = vpop.f32.mrf.mxu0  ;;  %3383 = vmatmul.bf16.gmra.mxu2 %v2956_v20  ;;  %3843 = vmatmul.bf16.gmra.mxu1 %v7501_v30  ;;  %v6640_v20 = vld [vmem:[#allocation2 + $0x188] sm:$0xff]   ;;  %v2316_v19 = vunpack.c.l.b16 %v2012_v49  ;;  %v4203_v8 = vrot.slane %v4201_v58, 5  ;;  %v1817_v49 = vor.u32 %v1816_v31, %v1813_v3  ;;  %v6532_v52 = vunpack.c.h.b16 %v7516_v43 }
 0x195   : > { %8412 = vst [vmem:[#allocation32_spill] sm:$0xff] %v7504_v11  ;;  %v2378_v15 = vrot.slane %v6640_v20, 5  ;;  %v6528_v9 = vunpack.c.h.b16 %v6640_v20  ;;  %v2990_v11 = vor.u32 %v2989_v27, %v2986_v47  ;;  %v6296_v47 = vld [vmem:[#allocation3 + $0x180] sm:$0xff]  ;;  %v6271_v18 = vld [vmem:[#allocation3 + $0xb8] sm:$0xff] }
 0x196   : > { %3899 = vmatpush.bf16.msra.mxu2 %v6271_v18 }
 0x197   : > { %3799 = vmatmul.bf16.gmra.mxu0 %v1783_v13  ;;  %v1446_v13 = vrot.slane %v1444_v10, 4  ;;  %v3056_v36 = vshll.u32 %v2378_v15, 16  ;;  %v2140_v41 = vpack.c.b16 %v6528_v9, %v6528_v9  ;;  %v2999_v27 = vsel %vm1164_vm8, %v2990_v11, %v2998_v32 }
 0x198   : > { %v7512_v2 = vpop.f32.mrf.mxu3 }
 0x199   : > { %8413 = vst [vmem:[#allocation33_spill] sm:$0xff] %v7512_v2  ;;  %v7514_v53 = vpop.f32.mrf.mxu1  ;;  %v2332_v2 = vpack.c.b16 %v2316_v19, %v2316_v19  ;;  %v7527_v29 = vor.u32 %v1446_v13, %v1443_v45  ;;  %v3058_v1 = vrot.slane %v3056_v36, 4  ;;  %v3035_v31 = vshrl.u32 %v2140_v41, 16 }
 0x19a   : > { %8414 = vst [vmem:[#allocation34_spill] sm:$0xff] %v7514_v53  ;;  %v3053_v53 = vshrl.u32 %v2378_v15, 16  ;;  %v3038_v11 = vshll.u32 %v2140_v41, 16  ;;  %v1002_v19 = vor.u32 %v1001_v51, %v998_v39  ;;  %v4150_v41 = vpack.c.b16 %v6532_v52, %v6532_v52 }
 0x19b   : > { %v2379_v20 = vrot.slane %v2332_v2, 5  ;;  %v4204_v2 = vor.u32 %v4203_v8, %v4200_v62 }
 0x19c   : > { %v7518_v37 = vpop.f32.mrf.mxu0  ;;  %v3055_v13 = vrot.slane %v3053_v53, 3  ;;  %v1484_v43 = vshrl.u32 %v1002_v19, 16 }
 0x19d   : > { %8415 = vst [vmem:[#allocation35_spill] sm:$0xff] %v7518_v37  ;;  %3566 = vmatmul.bf16.gmra.mxu3 %v3025_v34  ;;  %v6297_v37 = vld [vmem:[#allocation3 + $0x188] sm:$0xff]  ;;  %v6783_v34 = vld [vmem:[#allocation2 + $0x184] sm:$0x8]  ;;  %v2380_v45 = vsel %vm1115_vm9, %v2378_v15, %v2379_v20  ;;  %v4439_v8 = vshrl.u32 %v4204_v2, 16 }
 0x19e   : > { %5356 = vmatpush.bf16.msra.mxu3 %v6297_v37  ;;  %v6784_v35 = vor.u32 %v6891_v23, %v6783_v34  ;;  %v3061_v58 = vshrl.u32 %v2380_v45, 16  ;;  %v3064_v3 = vshll.u32 %v2380_v45, 16  ;;  %v1826_v37 = vsel %vm1164_vm8, %v1817_v49, %v2998_v32  ;;  %v6787_v32 = vld [vmem:[#allocation2 + $0x34] sm:$0x8]  ;;  %v6892_v49 = vld [vmem:[#allocation2 + $0x34] sm:$0xf0]  }
 0x19f   : > { %v3059_v36 = vor.u32 %v3058_v1, %v3055_v13  ;;  %v3040_v45 = vrot.slane %v3038_v11, 4 }
 0x1a0   : > { %v7523_v24 = vpop.f32.mrf.mxu3  ;;  %v3063_v9 = vrot.slane %v3061_v58, 3  ;;  %v3066_v34 = vrot.slane %v3064_v3, 4  ;;  %v3027_v23 = vshrl.u32 %v6784_v35, 16  ;;  %v3030_v15 = vshll.u32 %v6784_v35, 16  ;;  %v6974_v3 = vld [vmem:[#allocation2 + $0x20] sm:$0xff] }
 0x1a1   : > { %8416 = vst [vmem:[#allocation36_spill] sm:$0xff] %v7523_v24  ;;  %v7525_v10 = vpop.f32.mrf.mxu1  ;;  %v4442_v58 = vshll.u32 %v4204_v2, 16  ;;  %v2158_v13 = vshrl.u32 %v6974_v3, 16  ;;  %v2161_v1 = vshll.u32 %v6974_v3, 16 }
 0x1a2   : > { %8417 = vst [vmem:[#allocation37_spill] sm:$0xff] %v7525_v10  ;;  %5357 = vmatpush.bf16.msra.mxu3 %v6296_v47  ;;  %v3067_v62 = vor.u32 %v3066_v34, %v3063_v9  ;;  %v3029_v51 = vrot.slane %v3027_v23, 3  ;;  %v3032_v39 = vrot.slane %v3030_v15, 4  ;;  %v3037_v47 = vrot.slane %v3035_v31, 3  ;;  %v6642_v23 = vld [vmem:[#allocation2 + $0x50] sm:$0xff]  }
 0x1a3   : > { %v6788_v9 = vor.u32 %v6892_v49, %v6787_v32  ;;  %v1486_v34 = vrot.slane %v1484_v43, 3  ;;  %v4430_v15 = vshrl.u32 %v4150_v41, 16  ;;  %v2163_v3 = vrot.slane %v2161_v1, 5 }
 0x1a4   : > { %v7530_v60 = vpop.f32.mrf.mxu0  ;;  %3388 = vmatmul.bf16.gmra.mxu2 %v2999_v27  ;;  %3848 = vmatmul.bf16.gmra.mxu1 %v7527_v29  ;;  %v1487_v27 = vshll.u32 %v1002_v19, 16  ;;  %v3068_v35 = vsel %vm1164_vm8, %v3059_v36, %v3067_v62  ;;  %v3033_v31 = vor.u32 %v3032_v39, %v3029_v51  ;;  %v3041_v11 = vor.u32 %v3040_v45, %v3037_v47 }
 0x1a5   : > { %8418 = vst [vmem:[#allocation38_spill] sm:$0xff] %v7530_v60  ;;  %v6975_v60 = vld [vmem:[#allocation2 + $0xc8] sm:$0xff]  ;;  %v4444_v36 = vrot.slane %v4442_v58, 4  ;;  %v2160_v62 = vrot.slane %v2158_v13, 4  ;;  %v4422_v32 = vshrl.u32 %v6788_v9, 16  ;;  %v4425_v43 = vshll.u32 %v6788_v9, 16 }
 0x1a6   : > { %v1489_v19 = vrot.slane %v1487_v27, 4  ;;  %v1007_v52 = vshll.u32 %v6975_v60, 16  ;;  %v4206_v27 = vshrl.u32 %v6642_v23, 16  ;;  %v4209_v49 = vshll.u32 %v6642_v23, 16 }
 0x1a7   : > { %3804 = vmatmul.bf16.gmra.mxu0 %v1826_v37  ;;  %v6319_v37 = vld [vmem:[#allocation3 + $0x238] sm:$0xff]  ;;  %v3042_v51 = vsel %vm1164_vm8, %v3033_v31, %v3041_v11  ;;  %v4432_v39 = vrot.slane %v4430_v15, 3  ;;  %v2164_v45 = vor.u32 %v2163_v3, %v2160_v62  ;;  %v4424_v58 = vrot.slane %v4422_v32, 3 }
 0x1a8   : > { %v7536_v53 = vpop.f32.mrf.mxu3  ;;  %5528 = vmatpush.bf16.msra.mxu1 %v6319_v37  ;;  %v1009_v37 = vrot.slane %v1007_v52, 5  ;;  %v4427_v13 = vrot.slane %v4425_v43, 4  ;;  %v4208_v1 = vrot.slane %v4206_v27, 4  ;;  %v4211_v9 = vrot.slane %v4209_v49, 5 }
 0x1a9   : > { %8419 = vst [vmem:[#allocation39_spill] sm:$0xff] %v7536_v53  ;;  %v7538_v20 = vpop.f32.mrf.mxu1  ;;  %v1004_v53 = vshrl.u32 %v6975_v60, 16  ;;  %v2402_v52 = vshll.u32 %v2164_v45, 16  ;;  %v6536_v31 = vunpack.c.h.b16 %v6642_v23 }
 0x1aa   : > { %8420 = vst [vmem:[#allocation40_spill] sm:$0xff] %v7538_v20  ;;  %v4441_v20 = vrot.slane %v4439_v8, 3  ;;  %v4428_v11 = vor.u32 %v4427_v13, %v4424_v58  ;;  %v4212_v15 = vor.u32 %v4211_v9, %v4208_v1  ;;  %v6643_v58 = vld [vmem:[#allocation2 + $0x68] sm:$0xff]  }
 0x1ab   : > { %v1006_v60 = vrot.slane %v1004_v53, 4  ;;  %v2404_v43 = vrot.slane %v2402_v52, 4  ;;  %v4152_v49 = vpack.c.b16 %v6536_v31, %v6536_v31  ;;  %v4214_v52 = vshrl.u32 %v6643_v58, 16 }
 0x1ac   : > { %v7540_v18 = vpop.f32.mrf.mxu0  ;;  %v4445_v47 = vor.u32 %v4444_v36, %v4441_v20  ;;  %v4217_v31 = vshll.u32 %v6643_v58, 16 }
 0x1ad   : > { %8421 = vst [vmem:[#allocation41_spill] sm:$0xff] %v7540_v18  ;;  %3571 = vmatmul.bf16.gmra.mxu3 %v3068_v35  ;;  %v4433_v18 = vshll.u32 %v4150_v41, 16  ;;  %v7547_v35 = vor.u32 %v1489_v19, %v1486_v34  ;;  %v2399_v19 = vshrl.u32 %v2164_v45, 16  ;;  %v4473_v9 = vshrl.u32 %v4152_v49, 16 }
 0x1af   : > { %v4435_v41 = vrot.slane %v4433_v18, 4  ;;  %v2401_v32 = vrot.slane %v2399_v19, 3 }
 0x1b0   : > { %v7543_v2 = vpop.f32.mrf.mxu3 }
 0x1b1   : > { %8422 = vst [vmem:[#allocation42_spill] sm:$0xff] %v7543_v2  ;;  %v7545_v24 = vpop.f32.mrf.mxu1  ;;  %v1010_v2 = vor.u32 %v1009_v37, %v1006_v60  ;;  %v4436_v34 = vor.u32 %v4435_v41, %v4432_v39  ;;  %v4482_v60 = vshrl.u32 %v4212_v15, 16  ;;  %v4485_v37 = vshll.u32 %v4212_v15, 16  ;;  %v6976_v41 = vld [vmem:[#allocation2 + $0xe0] sm:$0xff] }
 0x1b2   : > { %8423 = vst [vmem:[#allocation43_spill] sm:$0xff] %v7545_v24  ;;  %v1015_v45 = vshll.u32 %v6976_v41, 16  ;;  %v2405_v13 = vor.u32 %v2404_v43, %v2401_v32  ;;  %v4475_v32 = vrot.slane %v4473_v9, 3  ;;  %v6795_v9 = vld [vmem:[#allocation2 + $0x64] sm:$0x8] }
 0x1b3   : > { %v1527_v20 = vshrl.u32 %v1010_v2, 16  ;;  %v1530_v36 = vshll.u32 %v1010_v2, 16  ;;  %v4437_v62 = vsel %vm1164_vm8, %v4428_v11, %v4436_v34  ;;  %v4476_v34 = vshll.u32 %v4152_v49, 16  ;;  %v6895_v24 = vld [vmem:[#allocation2 + $0x7c] sm:$0xf0]  }
 0x1b4   : > { %v7550_v8 = vpop.f32.mrf.mxu0  ;;  %3393 = vmatmul.bf16.gmra.mxu2 %v3042_v51  ;;  %3853 = vmatmul.bf16.gmra.mxu1 %v7547_v35  ;;  %v6791_v51 = vld [vmem:[#allocation2 + $0x4c] sm:$0x8]  ;;  %v4484_v19 = vrot.slane %v4482_v60, 3 }
 0x1b5   : > { %8424 = vst [vmem:[#allocation44_spill] sm:$0xff] %v7550_v8  ;;  %v6893_v8 = vld [vmem:[#allocation2 + $0x4c] sm:$0xf0]   ;;  %v1529_v23 = vrot.slane %v1527_v20, 3  ;;  %v1532_v39 = vrot.slane %v1530_v36, 4  ;;  %v1017_v36 = vrot.slane %v1015_v45, 5 }
 0x1b6   : > { %v6792_v27 = vor.u32 %v6893_v8, %v6791_v51  ;;  %v4487_v8 = vrot.slane %v4485_v37, 4  ;;  %v4478_v43 = vrot.slane %v4476_v34, 4  ;;  %v6894_v34 = vld [vmem:[#allocation2 + $0x64] sm:$0xf0]  }
 0x1b7   : > { %5447 = vmatmul.bf16.vlgmr.msra.gmra.mxu0 %v4445_v47  ;;  %v1012_v47 = vshrl.u32 %v6976_v41, 16  ;;  %v7564_v51 = vor.u32 %v1532_v39, %v1529_v23  ;;  %v6270_v41 = vld [vmem:[#allocation3 + $0xb0] sm:$0xff] }
 0x1b8   : > { %v7553_v53 = vpop.f32.mrf.mxu3  ;;  %v4465_v2 = vshrl.u32 %v6792_v27, 16  ;;  %v4468_v15 = vshll.u32 %v6792_v27, 16  ;;  %v4488_v49 = vor.u32 %v4487_v8, %v4484_v19  ;;  %3900 = vmatpush.bf16.msra.mxu2 %v6270_v41  ;;  %v4479_v39 = vor.u32 %v4478_v43, %v4475_v32  ;;  %v6977_v43 = vld [vmem:[#allocation2 + $0xf8] sm:$0xff]  }
 0x1b9   : > { %8425 = vst [vmem:[#allocation45_spill] sm:$0xff] %v7553_v53  ;;  %v7555_v18 = vpop.f32.mrf.mxu1  ;;  %v1014_v20 = vrot.slane %v1012_v47, 4  ;;  %v6540_v47 = vunpack.c.h.b16 %v6643_v58 }
 0x1ba   : > { %8426 = vst [vmem:[#allocation46_spill] sm:$0xff] %v7555_v18  ;;  %v4467_v60 = vrot.slane %v4465_v2, 3  ;;  %v4470_v37 = vrot.slane %v4468_v15, 4 }
 0x1bb   : > { %v1018_v53 = vor.u32 %v1017_v36, %v1014_v20  ;;  %v4154_v15 = vpack.c.b16 %v6540_v47, %v6540_v47  ;;  %v6318_v20 = vld [vmem:[#allocation3 + $0x230] sm:$0xff] }
 0x1bc   : > { %v7558_v3 = vpop.f32.mrf.mxu0  ;;  %5529 = vmatpush.bf16.msra.mxu1 %v6318_v20 }
 0x1bd   : > { %8427 = vst [vmem:[#allocation47_spill] sm:$0xff] %v7558_v3  ;;  %5358 = vmatmul.bf16.vlgmr.msra.gmra.mxu3 %v4437_v62  ;;  %v4216_v3 = vrot.slane %v4214_v52, 4  ;;  %v1570_v19 = vshrl.u32 %v1018_v53, 16  ;;  %v1573_v8 = vshll.u32 %v1018_v53, 16 }
 0x1bf   : > { %v1572_v32 = vrot.slane %v1570_v19, 3  ;;  %v1575_v58 = vrot.slane %v1573_v8, 4 }
 0x1c0   : > { %v7560_v1 = vpop.f32.mrf.mxu3 }
 0x1c1   : > { %8428 = vst [vmem:[#allocation48_spill] sm:$0xff] %v7560_v1  ;;  %v7562_v11 = vpop.f32.mrf.mxu1  ;;  %v4219_v1 = vrot.slane %v4217_v31, 5  ;;  %v6796_v31 = vor.u32 %v6894_v34, %v6795_v9  ;;  %v7584_v19 = vor.u32 %v1575_v58, %v1572_v32 }
 0x1c3   : > { %v4511_v8 = vshll.u32 %v6796_v31, 16 }
 0x1c4   : > { %v7566_v62 = vpop.f32.mrf.mxu0  ;;  %3407 = vmatmul.bf16.vlgmr.msrb.gmra.mxu2 %v2405_v13  ;;  %3858 = vmatmul.bf16.gmra.mxu1 %v7564_v51  ;;  %v4220_v13 = vor.u32 %v4219_v1, %v4216_v3  ;;  %v1023_v3 = vshll.u32 %v6977_v43, 16  ;;  %v6644_v1 = vld [vmem:[#allocation2 + $0x80] sm:$0xff]  }
 0x1c5   : > { %8429 = vst [vmem:[#allocation49_spill] sm:$0xff] %v7566_v62  ;;  %v4471_v62 = vor.u32 %v4470_v37, %v4467_v60  ;;  %v4508_v37 = vshrl.u32 %v6796_v31, 16  ;;  %v4222_v34 = vshrl.u32 %v6644_v1, 16 }
 0x1c6   : > { %v4525_v36 = vshrl.u32 %v4220_v13, 16  ;;  %v4528_v41 = vshll.u32 %v4220_v13, 16  ;;  %v4225_v13 = vshll.u32 %v6644_v1, 16 }
 0x1c7   : > { %5452 = vmatmul.bf16.gmra.mxu0 %v4488_v49  ;;  %v7569_v23 = vpop.f32.mrf.mxu2  ;;  %v4480_v2 = vsel %vm1164_vm8, %v4471_v62, %v4479_v39  ;;  %v1020_v49 = vshrl.u32 %v6977_v43, 16  ;;  %v4519_v62 = vshll.u32 %v4154_v15, 16  ;;  %v1025_v43 = vrot.slane %v1023_v3, 5 }
 0x1c8   : > { %8430 = vst [vmem:[#allocation50_spill] sm:$0xff] %v7569_v23  ;;  %v7571_v27 = vpop.f32.mrf.mxu3  ;;  %v4527_v47 = vrot.slane %v4525_v36, 3  ;;  %v4530_v9 = vrot.slane %v4528_v41, 4  ;;  %v4227_v23 = vrot.slane %v4225_v13, 5  ;;  %v4510_v36 = vrot.slane %v4508_v37, 3 }
 0x1c9   : > { %8431 = vst [vmem:[#allocation51_spill] sm:$0xff] %v7571_v27  ;;  %v7573_v45 = vpop.f32.mrf.mxu1  ;;  %v4513_v41 = vrot.slane %v4511_v8, 4 }
 0x1cc   : > { %v7575_v52 = vpop.f32.mrf.mxu0 }
 0x1cd   : > { %8432 = vst [vmem:[#allocation52_spill] sm:$0xff] %v7575_v52  ;;  %5363 = vmatmul.bf16.gmra.mxu3 %v4480_v2  ;;  %v4516_v52 = vshrl.u32 %v4154_v15, 16  ;;  %v1022_v2 = vrot.slane %v1020_v49, 4  ;;  %v4531_v15 = vor.u32 %v4530_v9, %v4527_v47  ;;  %v6544_v49 = vunpack.c.h.b16 %v6644_v1  ;;  %v6978_v1 = vld [vmem:[#allocation2 + $0x110] sm:$0xff]  }
 0x1cf   : > { %v7578_v60 = vpop.f32.mrf.mxu2  ;;  %v4518_v20 = vrot.slane %v4516_v52, 3  ;;  %v1026_v18 = vor.u32 %v1025_v43, %v1022_v2  ;;  %v4514_v52 = vor.u32 %v4513_v41, %v4510_v36  ;;  %v4156_v13 = vpack.c.b16 %v6544_v49, %v6544_v49 }
 0x1d0   : > { %8433 = vst [vmem:[#allocation53_spill] sm:$0xff] %v7578_v60  ;;  %v7580_v53 = vpop.f32.mrf.mxu3  ;;  %v4224_v60 = vrot.slane %v4222_v34, 4 }
 0x1d1   : > { %8434 = vst [vmem:[#allocation54_spill] sm:$0xff] %v7580_v53  ;;  %v7582_v39 = vpop.f32.mrf.mxu1  ;;  %v4521_v53 = vrot.slane %v4519_v62, 4  ;;  %v1613_v62 = vshrl.u32 %v1026_v18, 16  ;;  %v1616_v47 = vshll.u32 %v1026_v18, 16  ;;  %v4559_v41 = vshrl.u32 %v4156_v13, 16 }
 0x1d3   : > { %v4522_v58 = vor.u32 %v4521_v53, %v4518_v20  ;;  %v1615_v43 = vrot.slane %v1613_v62, 3  ;;  %v1618_v53 = vrot.slane %v1616_v47, 4  ;;  %v1028_v20 = vshrl.u32 %v6978_v1, 16 }
 0x1d4   : > { %v7586_v27 = vpop.f32.mrf.mxu0  ;;  %3412 = vmatmul.bf16.gmra.mxu2 %v7432_v50  ;;  %3863 = vmatmul.bf16.gmra.mxu1 %v7584_v19  ;;  %v4228_v50 = vor.u32 %v4227_v23, %v4224_v60  ;;  %v6645_v23 = vld [vmem:[#allocation2 + $0x98] sm:$0xff]  }
 0x1d5   : > { %8435 = vst [vmem:[#allocation55_spill] sm:$0xff] %v7586_v27  ;;  %v6799_v27 = vld [vmem:[#allocation2 + $0x7c] sm:$0x8]  ;;  %v4523_v37 = vsel %vm1164_vm8, %v4514_v52, %v4522_v58  ;;  %v4230_v58 = vshrl.u32 %v6645_v23, 16  ;;  %v4233_v49 = vshll.u32 %v6645_v23, 16  ;;  %v1030_v62 = vrot.slane %v1028_v20, 4 }
 0x1d6   : > { %v6800_v34 = vor.u32 %v6895_v24, %v6799_v27  ;;  %v4568_v8 = vshrl.u32 %v4228_v50, 16  ;;  %v4571_v2 = vshll.u32 %v4228_v50, 16  ;;  %v7605_v50 = vor.u32 %v1618_v53, %v1615_v43 }
 0x1d7   : > { %5457 = vmatmul.bf16.gmra.mxu0 %v4531_v15  ;;  %v7590_v32 = vpop.f32.mrf.mxu2  ;;  %v1031_v15 = vshll.u32 %v6978_v1, 16  ;;  %v4561_v1 = vrot.slane %v4559_v41, 3  ;;  %v6548_v43 = vunpack.c.h.b16 %v6645_v23  ;;  %v6803_v41 = vld [vmem:[#allocation2 + $0x94] sm:$0x8] }
 0x1d8   : > { %8436 = vst [vmem:[#allocation56_spill] sm:$0xff] %v7590_v32  ;;  %v7592_v31 = vpop.f32.mrf.mxu3  ;;  %v4551_v18 = vshrl.u32 %v6800_v34, 16  ;;  %v4570_v24 = vrot.slane %v4568_v8, 3  ;;  %v4573_v27 = vrot.slane %v4571_v2, 4  ;;  %v4554_v52 = vshll.u32 %v6800_v34, 16 }
 0x1d9   : > { %8437 = vst [vmem:[#allocation57_spill] sm:$0xff] %v7592_v31  ;;  %v7594_v3 = vpop.f32.mrf.mxu1  ;;  %v1033_v47 = vrot.slane %v1031_v15, 5  ;;  %v4232_v32 = vrot.slane %v4230_v58, 4  ;;  %v4235_v8 = vrot.slane %v4233_v49, 5  ;;  %v4158_v58 = vpack.c.b16 %v6548_v43, %v6548_v43 }
 0x1da   : > { %8438 = vst [vmem:[#allocation58_spill] sm:$0xff] %v7594_v3  ;;  %v4553_v2 = vrot.slane %v4551_v18, 3  ;;  %v4556_v10 = vrot.slane %v4554_v52, 4  ;;  %v6317_v52 = vld [vmem:[#allocation3 + $0x228] sm:$0xff] }
 0x1db   : > { %v1034_v56 = vor.u32 %v1033_v47, %v1030_v62  ;;  %v4236_v15 = vor.u32 %v4235_v8, %v4232_v32  ;;  %v7620_v8 = vld [vmem:[#allocation2 + $0xb0] sm:$0xff]   ;;  %5530 = vmatpush.bf16.msra.mxu1 %v6317_v52 }
 0x1dc   : > { %v7596_v9 = vpop.f32.mrf.mxu0 }
 0x1dd   : > { %8439 = vst [vmem:[#allocation59_spill] sm:$0xff] %v7596_v9  ;;  %5368 = vmatmul.bf16.gmra.mxu3 %v4523_v37  ;;  %v4562_v9 = vshll.u32 %v4156_v13, 16  ;;  %v6269_v13 = vld [vmem:[#allocation3 + $0xa8] sm:$0xff]  ;;  %v4611_v23 = vshrl.u32 %v4236_v15, 16  ;;  %v4614_v62 = vshll.u32 %v4236_v15, 16 }
 0x1de   : > { %3901 = vmatpush.bf16.msra.mxu2 %v6269_v13 }
 0x1df   : > { %v7599_v60 = vpop.f32.mrf.mxu2  ;;  %v4616_v15 = vrot.slane %v4614_v62, 4 }
 0x1e0   : > { %8440 = vst [vmem:[#allocation60_spill] sm:$0xff] %v7599_v60  ;;  %v7601_v36 = vpop.f32.mrf.mxu3  ;;  %v4574_v60 = vor.u32 %v4573_v27, %v4570_v24  ;;  %v1656_v24 = vshrl.u32 %v1034_v56, 16  ;;  %v1659_v27 = vshll.u32 %v1034_v56, 16  ;;  %v4602_v56 = vshrl.u32 %v4158_v58, 16 }
 0x1e1   : > { %8441 = vst [vmem:[#allocation61_spill] sm:$0xff] %v7601_v36  ;;  %v7603_v31 = vpop.f32.mrf.mxu1  ;;  %v4564_v36 = vrot.slane %v4562_v9, 4  ;;  %v6896_v9 = vld [vmem:[#allocation2 + $0x94] sm:$0xf0]  }
 0x1e2   : > { %8442 = vst [vmem:[#allocation62_spill] sm:$0xff] %v7603_v31  ;;  %v1658_v47 = vrot.slane %v1656_v24, 3  ;;  %v4238_v24 = vshrl.u32 %v7620_v8, 16 }
 0x1e3   : > { %v4565_v20 = vor.u32 %v4564_v36, %v4561_v1  ;;  %v1661_v36 = vrot.slane %v1659_v27, 4  ;;  %v6979_v1 = vld [vmem:[#allocation2 + $0x128] sm:$0xff]   ;;  %v4241_v27 = vshll.u32 %v7620_v8, 16 }
 0x1e4   : > { %v7607_v37 = vpop.f32.mrf.mxu0  ;;  %3417 = vmatmul.bf16.gmra.mxu2 %v7455_v21  ;;  %3868 = vmatmul.bf16.gmra.mxu1 %v7605_v50  ;;  %v1036_v13 = vshrl.u32 %v6979_v1, 16  ;;  %v1039_v32 = vshll.u32 %v6979_v1, 16  ;;  %v4240_v62 = vrot.slane %v4238_v24, 4 }
 0x1e5   : > { %8443 = vst [vmem:[#allocation63_spill] sm:$0xff] %v7607_v37  ;;  %v4557_v37 = vor.u32 %v4556_v10, %v4553_v2  ;;  %v4605_v2 = vshll.u32 %v4158_v58, 16 }
 0x1e6   : > { %v1038_v1 = vrot.slane %v1036_v13, 4  ;;  %v1041_v52 = vrot.slane %v1039_v32, 5  ;;  %v6552_v13 = vunpack.c.h.b16 %v7620_v8 }
 0x1e7   : > { %5462 = vmatmul.bf16.gmra.mxu0 %v4574_v60  ;;  %v7611_v34 = vpop.f32.mrf.mxu2  ;;  %v4566_v49 = vsel %vm1164_vm8, %v4557_v37, %v4565_v20  ;;  %v6804_v60 = vor.u32 %v6896_v9, %v6803_v41  ;;  %v4613_v9 = vrot.slane %v4611_v23, 3 }
 0x1e8   : > { %8444 = vst [vmem:[#allocation64_spill] sm:$0xff] %v7611_v34  ;;  %v7613_v53 = vpop.f32.mrf.mxu3  ;;  %v1042_v34 = vor.u32 %v1041_v52, %v1038_v1 }
 0x1e9   : > { %8445 = vst [vmem:[#allocation65_spill] sm:$0xff] %v7613_v53  ;;  %v7615_v21 = vpop.f32.mrf.mxu1  ;;  %v4594_v37 = vshrl.u32 %v6804_v60, 16  ;;  %v4597_v20 = vshll.u32 %v6804_v60, 16  ;;  %v4607_v53 = vrot.slane %v4605_v2, 4  ;;  %v4617_v60 = vor.u32 %v4616_v15, %v4613_v9  ;;  %v6807_v2 = vld [vmem:[#allocation2 + $0xac] sm:$0x8] }
 0x1ea   : > { %8446 = vst [vmem:[#allocation66_spill] sm:$0xff] %v7615_v21  ;;  %v1702_v9 = vshll.u32 %v1042_v34, 16 }
 0x1eb   : > { %v4596_v58 = vrot.slane %v4594_v37, 3  ;;  %v4599_v23 = vrot.slane %v4597_v20, 4  ;;  %v1699_v37 = vshrl.u32 %v1042_v34, 16 }
 0x1ec   : > { %v7617_v18 = vpop.f32.mrf.mxu0  ;;  %v1704_v52 = vrot.slane %v1702_v9, 4 }
 0x1ed   : > { %8447 = vst [vmem:[#allocation67_spill] sm:$0xff] %v7617_v18  ;;  %5373 = vmatmul.bf16.gmra.mxu3 %v4566_v49  ;;  %v7630_v49 = vor.u32 %v1661_v36, %v1658_v47  ;;  %v4604_v18 = vrot.slane %v4602_v56, 3  ;;  %v4600_v56 = vor.u32 %v4599_v23, %v4596_v58  ;;  %v1701_v1 = vrot.slane %v1699_v37, 3  ;;  %v7646_v58 = vld [vmem:[#allocation2 + $0xc8] sm:$0xff]  }
 0x1ef   : > { %v7622_v10 = vpop.f32.mrf.mxu2  ;;  %v4608_v47 = vor.u32 %v4607_v53, %v4604_v18  ;;  %v7656_v37 = vor.u32 %v1704_v52, %v1701_v1 }
 0x1f0   : > { %8448 = vst [vmem:[#allocation68_spill] sm:$0xff] %v7622_v10  ;;  %v7624_v43 = vpop.f32.mrf.mxu3 }
 0x1f1   : > { %8449 = vst [vmem:[#allocation69_spill] sm:$0xff] %v7624_v43  ;;  %v7626_v41 = vpop.f32.mrf.mxu1  ;;  %v4243_v43 = vrot.slane %v4241_v27, 5  ;;  %v4609_v20 = vsel %vm1164_vm8, %v4600_v56, %v4608_v47  ;;  %v4160_v27 = vpack.c.b16 %v6552_v13, %v6552_v13 }
 0x1f2   : > { %8450 = vst [vmem:[#allocation70_spill] sm:$0xff] %v7626_v41 }
 0x1f3   : > { %v4648_v47 = vshll.u32 %v4160_v27, 16 }
 0x1f4   : > { %v7632_v10 = vpop.f32.mrf.mxu0  ;;  %3422 = vmatmul.bf16.gmra.mxu2 %v7478_v44  ;;  %3873 = vmatmul.bf16.gmra.mxu1 %v7630_v49  ;;  %v4244_v44 = vor.u32 %v4243_v43, %v4240_v62  ;;  %v4645_v62 = vshrl.u32 %v4160_v27, 16 }
 0x1f5   : > { %8451 = vst [vmem:[#allocation71_spill] sm:$0xff] %v7632_v10  ;;  %v6897_v10 = vld [vmem:[#allocation2 + $0xac] sm:$0xf0]  }
 0x1f6   : > { %v6808_v24 = vor.u32 %v6897_v10, %v6807_v2  ;;  %v4654_v53 = vshrl.u32 %v4244_v44, 16  ;;  %v4657_v18 = vshll.u32 %v4244_v44, 16  ;;  %v4246_v44 = vshrl.u32 %v7646_v58, 16 }
 0x1f7   : > { %5467 = vmatmul.bf16.gmra.mxu0 %v4617_v60  ;;  %v7636_v40 = vpop.f32.mrf.mxu2  ;;  %v6980_v60 = vld [vmem:[#allocation2 + $0x140] sm:$0xff]   ;;  %v4249_v2 = vshll.u32 %v7646_v58, 16  ;;  %v4647_v27 = vrot.slane %v4645_v62, 3 }
 0x1f8   : > { %8452 = vst [vmem:[#allocation72_spill] sm:$0xff] %v7636_v40  ;;  %v7638_v36 = vpop.f32.mrf.mxu3  ;;  %v1047_v40 = vshll.u32 %v6980_v60, 16  ;;  %v4637_v34 = vshrl.u32 %v6808_v24, 16  ;;  %v4656_v10 = vrot.slane %v4654_v53, 3  ;;  %v4659_v13 = vrot.slane %v4657_v18, 4 }
 0x1f9   : > { %8453 = vst [vmem:[#allocation73_spill] sm:$0xff] %v7638_v36  ;;  %v7641_v32 = vpop.f32.mrf.mxu1  ;;  %v1044_v36 = vshrl.u32 %v6980_v60, 16  ;;  %v4640_v9 = vshll.u32 %v6808_v24, 16  ;;  %v4248_v18 = vrot.slane %v4246_v44, 4  ;;  %v6811_v62 = vld [vmem:[#allocation2 + $0xc4] sm:$0x8] }
 0x1fa   : > { %8454 = vst [vmem:[#allocation74_spill] sm:$0xff] %v7641_v32  ;;  %v1049_v60 = vrot.slane %v1047_v40, 5  ;;  %v4660_v53 = vor.u32 %v4659_v13, %v4656_v10  ;;  %v4639_v32 = vrot.slane %v4637_v34, 3 }
 0x1fb   : > { %v4642_v6 = vrot.slane %v4640_v9, 4 }
 0x1fc   : > { %v7644_v15 = vpop.f32.mrf.mxu0 }
 0x1fd   : > { %8455 = vst [vmem:[#allocation75_spill] sm:$0xff] %v7644_v15  ;;  %5378 = vmatmul.bf16.gmra.mxu3 %v4609_v20  ;;  %v1046_v20 = vrot.slane %v1044_v36, 4  ;;  %v4643_v10 = vor.u32 %v4642_v6, %v4639_v32 }
 0x1ff   : > { %v7648_v43 = vpop.f32.mrf.mxu2  ;;  %v1050_v41 = vor.u32 %v1049_v60, %v1046_v20  ;;  %v6316_v20 = vld [vmem:[#allocation3 + $0x220] sm:$0xff] }
 0x200   : > { %8456 = vst [vmem:[#allocation76_spill] sm:$0xff] %v7648_v43  ;;  %v7650_v23 = vpop.f32.mrf.mxu3  ;;  %v6268_v43 = vld [vmem:[#allocation3 + $0xa0] sm:$0xff]  ;;  %5531 = vmatpush.bf16.msra.mxu1 %v6316_v20 }
 0x201   : > { %8457 = vst [vmem:[#allocation77_spill] sm:$0xff] %v7650_v23  ;;  %v7652_v56 = vpop.f32.mrf.mxu1  ;;  %v4650_v23 = vrot.slane %v4648_v47, 4  ;;  %3902 = vmatpush.bf16.msra.mxu2 %v6268_v43  ;;  %v6898_v47 = vld [vmem:[#allocation2 + $0xc4] sm:$0xf0]   ;;  %v1742_v13 = vshrl.u32 %v1050_v41, 16  ;;  %v1745_v44 = vshll.u32 %v1050_v41, 16 }
 0x202   : > { %8458 = vst [vmem:[#allocation78_spill] sm:$0xff] %v7652_v56  ;;  %v4251_v56 = vrot.slane %v4249_v2, 5  ;;  %v6812_v2 = vor.u32 %v6898_v47, %v6811_v62 }
 0x203   : > { %v4651_v36 = vor.u32 %v4650_v23, %v4647_v27  ;;  %v1744_v27 = vrot.slane %v1742_v13, 3 }
 0x204   : > { %v7658_v15 = vpop.f32.mrf.mxu0  ;;  %3427 = vmatmul.bf16.gmra.mxu2 %v7501_v30  ;;  %3878 = vmatmul.bf16.gmra.mxu1 %v7656_v37  ;;  %v6556_v30 = vunpack.c.h.b16 %v7646_v58  ;;  %v4252_v52 = vor.u32 %v4251_v56, %v4248_v18  ;;  %v7672_v18 = vld [vmem:[#allocation2 + $0xe0] sm:$0xff]   ;;  %v4680_v32 = vshrl.u32 %v6812_v2, 16 }
 0x205   : > { %8459 = vst [vmem:[#allocation79_spill] sm:$0xff] %v7658_v15  ;;  %v4652_v43 = vsel %vm1164_vm8, %v4643_v10, %v4651_v36  ;;  %v6981_v15 = vld [vmem:[#allocation2 + $0x158] sm:$0xff]   ;;  %v4257_v13 = vshll.u32 %v7672_v18, 16 }
 0x206   : > { %v4162_v9 = vpack.c.b16 %v6556_v30, %v6556_v30  ;;  %v4697_v60 = vshrl.u32 %v4252_v52, 16  ;;  %v4700_v23 = vshll.u32 %v4252_v52, 16  ;;  %v1055_v56 = vshll.u32 %v6981_v15, 16 }
 0x207   : > { %5472 = vmatmul.bf16.gmra.mxu0 %v4660_v53  ;;  %v7662_v24 = vpop.f32.mrf.mxu2  ;;  %v1747_v53 = vrot.slane %v1745_v44, 4  ;;  %v4254_v52 = vshrl.u32 %v7672_v18, 16 }
 0x208   : > { %8460 = vst [vmem:[#allocation80_spill] sm:$0xff] %v7662_v24  ;;  %v7664_v40 = vpop.f32.mrf.mxu3  ;;  %v4688_v36 = vshrl.u32 %v4162_v9, 16  ;;  %v4691_v62 = vshll.u32 %v4162_v9, 16  ;;  %v4699_v47 = vrot.slane %v4697_v60, 3  ;;  %v4702_v10 = vrot.slane %v4700_v23, 4 }
 0x209   : > { %8461 = vst [vmem:[#allocation81_spill] sm:$0xff] %v7664_v40  ;;  %v7667_v1 = vpop.f32.mrf.mxu1  ;;  %v1052_v40 = vshrl.u32 %v6981_v15, 16  ;;  %v7682_v44 = vor.u32 %v1747_v53, %v1744_v27  ;;  %v4683_v15 = vshll.u32 %v6812_v2, 16  ;;  %v1057_v20 = vrot.slane %v1055_v56, 5  ;;  %v6315_v2 = vld [vmem:[#allocation3 + $0x218] sm:$0xff] }
 0x20a   : > { %8462 = vst [vmem:[#allocation82_spill] sm:$0xff] %v7667_v1  ;;  %v4690_v9 = vrot.slane %v4688_v36, 3  ;;  %v4256_v60 = vrot.slane %v4254_v52, 4  ;;  %v4259_v23 = vrot.slane %v4257_v13, 5  ;;  %v4682_v24 = vrot.slane %v4680_v32, 3  ;;  %5532 = vmatpush.bf16.msra.mxu1 %v6315_v2 }
 0x20b   : > { %v6560_v56 = vunpack.c.h.b16 %v7672_v18  ;;  %v6815_v36 = vld [vmem:[#allocation2 + $0xdc] sm:$0x8] }
 0x20c   : > { %v7669_v34 = vpop.f32.mrf.mxu0 }
 0x20d   : > { %8463 = vst [vmem:[#allocation83_spill] sm:$0xff] %v7669_v34  ;;  %5383 = vmatmul.bf16.gmra.mxu3 %v4652_v43  ;;  %v1054_v43 = vrot.slane %v1052_v40, 4 }
 0x20f   : > { %v7674_v6 = vpop.f32.mrf.mxu2  ;;  %v1058_v1 = vor.u32 %v1057_v20, %v1054_v43  ;;  %v4164_v43 = vpack.c.b16 %v6560_v56, %v6560_v56 }
 0x210   : > { %8464 = vst [vmem:[#allocation84_spill] sm:$0xff] %v7674_v6  ;;  %v7676_v41 = vpop.f32.mrf.mxu3  ;;  %v4703_v6 = vor.u32 %v4702_v10, %v4699_v47  ;;  %v6314_v47 = vld [vmem:[#allocation3 + $0x210] sm:$0xff] }
 0x211   : > { %8465 = vst [vmem:[#allocation85_spill] sm:$0xff] %v7676_v41  ;;  %v7678_v30 = vpop.f32.mrf.mxu1  ;;  %v4693_v41 = vrot.slane %v4691_v62, 4  ;;  %v6899_v62 = vld [vmem:[#allocation2 + $0xdc] sm:$0xf0]   ;;  %v1785_v32 = vshrl.u32 %v1058_v1, 16  ;;  %v1788_v52 = vshll.u32 %v1058_v1, 16  ;;  %5533 = vmatpush.bf16.msra.mxu1 %v6314_v47 }
 0x212   : > { %8466 = vst [vmem:[#allocation86_spill] sm:$0xff] %v7678_v30  ;;  %v4685_v30 = vrot.slane %v4683_v15, 4  ;;  %v6816_v15 = vor.u32 %v6899_v62, %v6815_v36 }
 0x213   : > { %v4694_v53 = vor.u32 %v4693_v41, %v4690_v9  ;;  %v6313_v9 = vld [vmem:[#allocation3 + $0x208] sm:$0xff] }
 0x214   : > { %v7684_v34 = vpop.f32.mrf.mxu0  ;;  %3432 = vmatmul.bf16.gmra.mxu2 %v7527_v29  ;;  %3883 = vmatmul.bf16.gmra.mxu1 %v7682_v44  ;;  %v4686_v10 = vor.u32 %v4685_v30, %v4682_v24  ;;  %v4723_v1 = vshrl.u32 %v6816_v15, 16  ;;  %v4731_v30 = vshrl.u32 %v4164_v43, 16 }
 0x215   : > { %8467 = vst [vmem:[#allocation87_spill] sm:$0xff] %v7684_v34  ;;  %v4260_v34 = vor.u32 %v4259_v23, %v4256_v60  ;;  %v1790_v60 = vrot.slane %v1788_v52, 4  ;;  %v6982_v23 = vld [vmem:[#allocation2 + $0x170] sm:$0xff]   ;;  %5534 = vmatpush.bf16.msra.mxu1 %v6313_v9  ;;  %v4726_v52 = vshll.u32 %v6816_v15, 16 }
 0x216   : > { %v1063_v2 = vshll.u32 %v6982_v23, 16  ;;  %v4725_v9 = vrot.slane %v4723_v1, 3 }
 0x217   : > { %5477 = vmatmul.bf16.gmra.mxu0 %v4703_v6  ;;  %v7688_v27 = vpop.f32.mrf.mxu2  ;;  %v4695_v6 = vsel %vm1164_vm8, %v4686_v10, %v4694_v53  ;;  %v4740_v41 = vshrl.u32 %v4260_v34, 16  ;;  %v4743_v20 = vshll.u32 %v4260_v34, 16  ;;  %v7702_v53 = vld [vmem:[#allocation2 + $0xf8] sm:$0xff]   ;;  %v6312_v10 = vld [vmem:[#allocation3 + $0x200] sm:$0xff] }
 0x218   : > { %8468 = vst [vmem:[#allocation88_spill] sm:$0xff] %v7688_v27  ;;  %v7690_v40 = vpop.f32.mrf.mxu3  ;;  %v1060_v27 = vshrl.u32 %v6982_v23, 16  ;;  %v4262_v62 = vshrl.u32 %v7702_v53, 16  ;;  %v4265_v47 = vshll.u32 %v7702_v53, 16  ;;  %v1065_v23 = vrot.slane %v1063_v2, 5 }
 0x219   : > { %8469 = vst [vmem:[#allocation89_spill] sm:$0xff] %v7690_v40  ;;  %v7693_v29 = vpop.f32.mrf.mxu1  ;;  %v1787_v40 = vrot.slane %v1785_v32, 3  ;;  %v4742_v36 = vrot.slane %v4740_v41, 3  ;;  %v4745_v34 = vrot.slane %v4743_v20, 4  ;;  %v6267_v20 = vld [vmem:[#allocation3 + $0x98] sm:$0xff]  ;;  %5535 = vmatpush.bf16.msra.mxu1 %v6312_v10 }
 0x21a   : > { %8470 = vst [vmem:[#allocation90_spill] sm:$0xff] %v7693_v29  ;;  %v4264_v55 = vrot.slane %v4262_v62, 4  ;;  %v4267_v57 = vrot.slane %v4265_v47, 5  ;;  %3903 = vmatpush.bf16.msra.mxu2 %v6267_v20 }
 0x21b   : > { %v7708_v32 = vor.u32 %v1790_v60, %v1787_v40  ;;  %v4728_v40 = vrot.slane %v4726_v52, 4 }
 0x21c   : > { %v7695_v13 = vpop.f32.mrf.mxu0 }
 0x21d   : > { %8471 = vst [vmem:[#allocation91_spill] sm:$0xff] %v7695_v13  ;;  %5388 = vmatmul.bf16.gmra.mxu3 %v4695_v6  ;;  %v4734_v13 = vshll.u32 %v4164_v43, 16  ;;  %v1062_v6 = vrot.slane %v1060_v27, 4  ;;  %v4733_v43 = vrot.slane %v4731_v30, 3  ;;  %v6900_v30 = vld [vmem:[#allocation2 + $0xf4] sm:$0xf0]  }
 0x21f   : > { %v7698_v29 = vpop.f32.mrf.mxu2  ;;  %v4736_v41 = vrot.slane %v4734_v13, 4  ;;  %v1066_v60 = vor.u32 %v1065_v23, %v1062_v6  ;;  %v6564_v13 = vunpack.c.h.b16 %v7702_v53 }
 0x220   : > { %8472 = vst [vmem:[#allocation92_spill] sm:$0xff] %v7698_v29  ;;  %v7700_v24 = vpop.f32.mrf.mxu3  ;;  %v4037_v29 = vld [vmem:[#allocation2 + $0x40] sm:$0x1] }
 0x221   : > { %8473 = vst [vmem:[#allocation93_spill] sm:$0xff] %v7700_v24  ;;  %v7704_v56 = vpop.f32.mrf.mxu1  ;;  %v4341_v15 = vunpack.c.l.b16 %v4037_v29  ;;  %v1828_v62 = vshrl.u32 %v1066_v60, 16  ;;  %v1831_v1 = vshll.u32 %v1066_v60, 16  ;;  %v4166_v29 = vpack.c.b16 %v6564_v13, %v6564_v13 }
 0x222   : > { %8474 = vst [vmem:[#allocation94_spill] sm:$0xff] %v7704_v56  ;;  %v4746_v56 = vor.u32 %v4745_v34, %v4742_v36  ;;  %v4268_v36 = vor.u32 %v4267_v57, %v4264_v55  ;;  %v4729_v34 = vor.u32 %v4728_v40, %v4725_v9  ;;  %v6983_v57 = vld [vmem:[#allocation2 + $0x38] sm:$0xff]   ;;  %v7726_v40 = vld [vmem:[#allocation2 + $0x110] sm:$0xff]  }
 0x223   : > { %v4357_v10 = vpack.c.b16 %v4341_v15, %v4341_v15  ;;  %v4373_v55 = vrot.slane %v6983_v57, 5  ;;  %v4774_v60 = vshrl.u32 %v4166_v29, 16  ;;  %v4777_v15 = vshll.u32 %v4166_v29, 16 }
 0x224   : > { %v7710_v24 = vpop.f32.mrf.mxu0  ;;  %3437 = vmatmul.bf16.gmra.mxu2 %v7547_v35  ;;  %3888 = vmatmul.bf16.gmra.mxu1 %v7708_v32  ;;  %v4737_v35 = vor.u32 %v4736_v41, %v4733_v43  ;;  %v4783_v6 = vshrl.u32 %v4268_v36, 16  ;;  %v4786_v23 = vshll.u32 %v4268_v36, 16  ;;  %v1830_v43 = vrot.slane %v1828_v62, 3 }
 0x225   : > { %8475 = vst [vmem:[#allocation95_spill] sm:$0xff] %v7710_v24  ;;  %v6819_v24 = vld [vmem:[#allocation2 + $0xf4] sm:$0x8]  ;;  %v1833_v41 = vrot.slane %v1831_v1, 4  ;;  %v4374_v9 = vrot.slane %v4357_v10, 5  ;;  %v4779_v29 = vrot.slane %v4777_v15, 4 }
 0x226   : > { %v6820_v47 = vor.u32 %v6900_v30, %v6819_v24  ;;  %v4273_v30 = vshll.u32 %v7726_v40, 16  ;;  %v4785_v36 = vrot.slane %v4783_v6, 3  ;;  %v4451_v6 = vshll.u32 %v4373_v55, 16  ;;  %v6901_v15 = vld [vmem:[#allocation2 + $0x10c] sm:$0xf0]  }
 0x227   : > { %5482 = vmatmul.bf16.gmra.mxu0 %v4746_v56  ;;  %v7714_v27 = vpop.f32.mrf.mxu2  ;;  %v4738_v56 = vsel %vm1164_vm8, %v4729_v34, %v4737_v35  ;;  %v4270_v35 = vshrl.u32 %v7726_v40, 16  ;;  %v4788_v34 = vrot.slane %v4786_v23, 4  ;;  %v7734_v62 = vor.u32 %v1833_v41, %v1830_v43 }
 0x228   : > { %8476 = vst [vmem:[#allocation96_spill] sm:$0xff] %v7714_v27  ;;  %v7716_v2 = vpop.f32.mrf.mxu3  ;;  %v4769_v27 = vshll.u32 %v6820_v47, 16  ;;  %v4375_v10 = vsel %vm1115_vm9, %v4373_v55, %v4374_v9 }
 0x229   : > { %8477 = vst [vmem:[#allocation97_spill] sm:$0xff] %v7716_v2  ;;  %v7719_v61 = vpop.f32.mrf.mxu1  ;;  %v4766_v2 = vshrl.u32 %v6820_v47, 16  ;;  %v4272_v57 = vrot.slane %v4270_v35, 4  ;;  %v6568_v35 = vunpack.c.h.b16 %v7726_v40 }
 0x22a   : > { %8478 = vst [vmem:[#allocation98_spill] sm:$0xff] %v7719_v61  ;;  %v4771_v47 = vrot.slane %v4769_v27, 4  ;;  %v4459_v27 = vshll.u32 %v4375_v10, 16 }
 0x22b   : > { %v4768_v1 = vrot.slane %v4766_v2, 3  ;;  %v4456_v2 = vshrl.u32 %v4375_v10, 16  ;;  %v4168_v22 = vpack.c.b16 %v6568_v35, %v6568_v35 }
 0x22c   : > { %v7721_v52 = vpop.f32.mrf.mxu0 }
 0x22d   : > { %8479 = vst [vmem:[#allocation99_spill] sm:$0xff] %v7721_v52  ;;  %5393 = vmatmul.bf16.gmra.mxu3 %v4738_v56  ;;  %v4776_v56 = vrot.slane %v4774_v60, 3  ;;  %v4275_v52 = vrot.slane %v4273_v30, 5  ;;  %v6823_v60 = vld [vmem:[#allocation2 + $0x10c] sm:$0x8] }
 0x22e   : > { %v6824_v5 = vor.u32 %v6901_v15, %v6823_v60  ;;  %v4817_v60 = vshrl.u32 %v4168_v22, 16  ;;  %v7749_v15 = vld [vmem:[#allocation2 + $0x128] sm:$0xff]  }
 0x22f   : > { %v7724_v20 = vpop.f32.mrf.mxu2  ;;  %v4780_v9 = vor.u32 %v4779_v29, %v4776_v56  ;;  %v4276_v21 = vor.u32 %v4275_v52, %v4272_v57  ;;  %v6984_v57 = vld [vmem:[#allocation2 + $0x50] sm:$0xff]   ;;  %v4278_v35 = vshrl.u32 %v7749_v15, 16 }
 0x230   : > { %8480 = vst [vmem:[#allocation100_spill] sm:$0xff] %v7724_v20  ;;  %v7728_v24 = vpop.f32.mrf.mxu3  ;;  %v4789_v20 = vor.u32 %v4788_v34, %v4785_v36  ;;  %v4453_v34 = vrot.slane %v4451_v6, 4  ;;  %v4809_v29 = vshrl.u32 %v6824_v5, 16 }
 0x231   : > { %8481 = vst [vmem:[#allocation101_spill] sm:$0xff] %v7728_v24  ;;  %v7732_v13 = vpop.f32.mrf.mxu1  ;;  %v4038_v24 = vld [vmem:[#allocation2 + $0x58] sm:$0x1] }
 0x232   : > { %8482 = vst [vmem:[#allocation102_spill] sm:$0xff] %v7732_v13  ;;  %v4448_v13 = vshrl.u32 %v4373_v55, 16  ;;  %v4342_v43 = vunpack.c.l.b16 %v4038_v24  ;;  %v4458_v55 = vrot.slane %v4456_v2, 3  ;;  %v4826_v24 = vshrl.u32 %v4276_v21, 16 }
 0x234   : > { %3442 = vmatmul.bf16.gmra.mxu2 %v7564_v51  ;;  %3893 = vmatmul.bf16.gmra.mxu1 %v7734_v62  ;;  %v5448_v61 = vpop.f32.mrf.mxu0  ;;  %v4772_v51 = vor.u32 %v4771_v47, %v4768_v1  ;;  %v4450_v36 = vrot.slane %v4448_v13, 3  ;;  %v4829_v1 = vshll.u32 %v4276_v21, 16  ;;  %v4828_v6 = vrot.slane %v4826_v24, 3  ;;  %v6266_v24 = vld [vmem:[#allocation3 + $0x90] sm:$0xff] }
 0x235   : > { %3904 = vmatpush.bf16.msra.mxu2 %v6266_v24 }
 0x236   : > { %v4781_v10 = vsel %vm1164_vm8, %v4772_v51, %v4780_v9  ;;  %v4454_v47 = vor.u32 %v4453_v34, %v4450_v36  ;;  %v4831_v9 = vrot.slane %v4829_v1, 4  ;;  %v4281_v36 = vshll.u32 %v7749_v15, 16 }
 0x237   : > { %5487 = vmatmul.bf16.gmra.mxu0 %v4789_v20  ;;  %v7739_v23 = vpop.f32.mrf.mxu2  ;;  %v4461_v20 = vrot.slane %v4459_v27, 4  ;;  %v4812_v27 = vshll.u32 %v6824_v5, 16 }
 0x238   : > { %8483 = vst [vmem:[#allocation103_spill] sm:$0xff] %v7739_v23  ;;  %v7741_v41 = vpop.f32.mrf.mxu3  ;;  %v4358_v23 = vpack.c.b16 %v4342_v43, %v4342_v43  ;;  %v4820_v43 = vshll.u32 %v4168_v22, 16  ;;  %v4811_v22 = vrot.slane %v4809_v29, 3  ;;  %v4832_v1 = vor.u32 %v4831_v9, %v4828_v6  ;;  %v6827_v29 = vld [vmem:[#allocation2 + $0x124] sm:$0x8] }
 0x239   : > { %8484 = vst [vmem:[#allocation104_spill] sm:$0xff] %v7741_v41  ;;  %v7744_v30 = vpop.f32.mrf.mxu1  ;;  %v4462_v56 = vor.u32 %v4461_v20, %v4458_v55  ;;  %v4376_v41 = vrot.slane %v6984_v57, 5  ;;  %v4039_v55 = vld [vmem:[#allocation2 + $0x70] sm:$0x1]  ;;  %v4814_v5 = vrot.slane %v4812_v27, 4  ;;  %v4819_v20 = vrot.slane %v4817_v60, 3 }
 0x23a   : > { %8485 = vst [vmem:[#allocation105_spill] sm:$0xff] %v7744_v30  ;;  %v4377_v30 = vrot.slane %v4358_v23, 5  ;;  %v4283_v57 = vrot.slane %v4281_v36, 5  ;;  %v6902_v27 = vld [vmem:[#allocation2 + $0x124] sm:$0xf0]   ;;  %v6572_v60 = vunpack.c.h.b16 %v7749_v15 }
 0x23b   : > { %v4463_v34 = vsel %vm1164_vm8, %v4454_v47, %v4462_v56  ;;  %v4494_v47 = vshll.u32 %v4376_v41, 16  ;;  %v6828_v31 = vor.u32 %v6902_v27, %v6827_v29 }
 0x23c   : > { %v5450_v13 = vpop.f32.mrf.mxu0  ;;  %v4378_v23 = vsel %vm1115_vm9, %v4376_v41, %v4377_v30 }
 0x23d   : > { %5398 = vmatmul.bf16.gmra.mxu3 %v4781_v10  ;;  %v4822_v10 = vrot.slane %v4820_v43, 4  ;;  %v4499_v30 = vshrl.u32 %v4378_v23, 16  ;;  %v4502_v56 = vshll.u32 %v4378_v23, 16  ;;  %v4496_v24 = vrot.slane %v4494_v47, 4 }
 0x23f   : > { %v7747_v52 = vpop.f32.mrf.mxu2 }
 0x240   : > { %8486 = vst [vmem:[#allocation106_spill] sm:$0xff] %v7747_v52  ;;  %v5359_v2 = vpop.f32.mrf.mxu3  ;;  %v4343_v52 = vunpack.c.l.b16 %v4039_v55 }
 0x241   : > { %v7751_v51 = vpop.f32.mrf.mxu1  ;;  %v7753_v21 = vadd.f32 %v5448_v61, %v5359_v2  ;;  %v4280_v61 = vrot.slane %v4278_v35, 4  ;;  %v4491_v2 = vshrl.u32 %v4376_v41, 16  ;;  %v4504_v41 = vrot.slane %v4502_v56, 4 }
 0x242   : > { %8487 = vst [vmem:[#allocation107_spill] sm:$0xff] %v7751_v51  ;;  %v4359_v55 = vpack.c.b16 %v4343_v52, %v4343_v52  ;;  %v7770_v52 = vld [vmem:[#allocation2 + $0x140] sm:$0xff]  }
 0x243   : > { %v4284_v9 = vor.u32 %v4283_v57, %v4280_v61  ;;  %v4493_v36 = vrot.slane %v4491_v2, 3  ;;  %v4852_v61 = vshrl.u32 %v6828_v31, 16  ;;  %v4855_v57 = vshll.u32 %v6828_v31, 16 }
 0x244   : > { %3447 = vmatmul.bf16.gmra.mxu2 %v7584_v19  ;;  %5536 = vmatmul.bf16.vlgmr.msra.gmra.mxu1 %v4463_v34  ;;  %v4815_v19 = vor.u32 %v4814_v5, %v4811_v22  ;;  %v4823_v34 = vor.u32 %v4822_v10, %v4819_v20  ;;  %v5453_v35 = vpop.f32.mrf.mxu0  ;;  %v4170_v22 = vpack.c.b16 %v6572_v60, %v6572_v60  ;;  %v6985_v10 = vld [vmem:[#allocation2 + $0x68] sm:$0xff]   ;;  %v4380_v46 = vrot.slane %v4359_v55, 5 }
 0x245   : > { %v4869_v5 = vshrl.u32 %v4284_v9, 16  ;;  %v4872_v20 = vshll.u32 %v4284_v9, 16  ;;  %v4379_v25 = vrot.slane %v6985_v10, 5  ;;  %v4286_v56 = vshrl.u32 %v7770_v52, 16  ;;  %v4040_v10 = vld [vmem:[#allocation2 + $0x88] sm:$0x1] }
 0x246   : > { %v4824_v23 = vsel %vm1164_vm8, %v4815_v19, %v4823_v34  ;;  %v4860_v47 = vshrl.u32 %v4170_v22, 16  ;;  %v4289_v19 = vshll.u32 %v7770_v52, 16  ;;  %v4857_v55 = vrot.slane %v4855_v57, 4 }
 0x247   : > { %5492 = vmatmul.bf16.gmra.mxu0 %v4832_v1  ;;  %v7760_v51 = vpop.f32.mrf.mxu2  ;;  %v4501_v1 = vrot.slane %v4499_v30, 3  ;;  %v4863_v30 = vshll.u32 %v4170_v22, 16  ;;  %v4871_v29 = vrot.slane %v4869_v5, 3  ;;  %v4874_v27 = vrot.slane %v4872_v20, 4 }
 0x248   : > { %v5361_v17 = vpop.f32.mrf.mxu3  ;;  %v4381_v31 = vsel %vm1115_vm9, %v4379_v25, %v4380_v46  ;;  %v4291_v22 = vrot.slane %v4289_v19, 5  ;;  %v4534_v5 = vshrl.u32 %v4379_v25, 16  ;;  %v4537_v20 = vshll.u32 %v4379_v25, 16 }
 0x249   : > { %v7763_v43 = vpop.f32.mrf.mxu1  ;;  %v7765_v6 = vadd.f32 %v5450_v13, %v5361_v17  ;;  %v4497_v17 = vor.u32 %v4496_v24, %v4493_v36  ;;  %v4505_v13 = vor.u32 %v4504_v41, %v4501_v1  ;;  %v4854_v36 = vrot.slane %v4852_v61, 3 }
 0x24a   : > { %8488 = vst [vmem:[#allocation108_spill] sm:$0xff] %v7763_v43  ;;  %v4862_v1 = vrot.slane %v4860_v47, 3  ;;  %v4865_v41 = vrot.slane %v4863_v30, 4  ;;  %v4344_v61 = vunpack.c.l.b16 %v4040_v10  ;;  %v6576_v47 = vunpack.c.h.b16 %v7770_v52 }
 0x24b   : > { %v4506_v9 = vsel %vm1164_vm8, %v4497_v17, %v4505_v13  ;;  %v4542_v17 = vshrl.u32 %v4381_v31, 16  ;;  %v4545_v13 = vshll.u32 %v4381_v31, 16  ;;  %v4858_v46 = vor.u32 %v4857_v55, %v4854_v36 }
 0x24c   : > { %v5455_v24 = vpop.f32.mrf.mxu0  ;;  %v4536_v19 = vrot.slane %v4534_v5, 3  ;;  %v4539_v25 = vrot.slane %v4537_v20, 4  ;;  %v4360_v3 = vpack.c.b16 %v4344_v61, %v4344_v61  ;;  %v4172_v36 = vpack.c.b16 %v6576_v47, %v6576_v47 }
 0x24d   : > { %5403 = vmatmul.bf16.gmra.mxu3 %v4824_v23  ;;  %v4288_v23 = vrot.slane %v4286_v56, 4 }
 0x24e   : > { %v4383_v5 = vrot.slane %v4360_v3, 5  ;;  %v4906_v61 = vshll.u32 %v4172_v36, 16 }
 0x24f   : > { %v7768_v43 = vpop.f32.mrf.mxu2  ;;  %v4292_v14 = vor.u32 %v4291_v22, %v4288_v23 }
 0x250   : > { %v5364_v2 = vpop.f32.mrf.mxu3 }
 0x251   : > { %v7774_v34 = vpop.f32.mrf.mxu1  ;;  %v7776_v60 = vadd.f32 %v5453_v35, %v5364_v2  ;;  %v4866_v2 = vor.u32 %v4865_v41, %v4862_v1  ;;  %v4912_v10 = vshrl.u32 %v4292_v14, 16  ;;  %v4915_v55 = vshll.u32 %v4292_v14, 16 }
 0x252   : > { %8489 = vst [vmem:[#allocation109_spill] sm:$0xff] %v7774_v34  ;;  %v4875_v34 = vor.u32 %v4874_v27, %v4871_v29  ;;  %v4547_v29 = vrot.slane %v4545_v13, 4  ;;  %v4540_v41 = vor.u32 %v4539_v25, %v4536_v19 }
 0x253   : > { %v4867_v31 = vsel %vm1164_vm8, %v4858_v46, %v4866_v2  ;;  %v4914_v20 = vrot.slane %v4912_v10, 3  ;;  %v4917_v2 = vrot.slane %v4915_v55, 4  ;;  %v4908_v10 = vrot.slane %v4906_v61, 4 }
 0x254   : > { %3452 = vmatmul.bf16.gmra.mxu2 %v7605_v50  ;;  %5541 = vmatmul.bf16.gmra.mxu1 %v4506_v9  ;;  %v6831_v50 = vld [vmem:[#allocation2 + $0x13c] sm:$0x8]  ;;  %v6903_v9 = vld [vmem:[#allocation2 + $0x13c] sm:$0xf0]   ;;  %v5458_v1 = vpop.f32.mrf.mxu0 }
 0x255   : > { %v6832_v27 = vor.u32 %v6903_v9, %v6831_v50  ;;  %v4903_v50 = vshrl.u32 %v4172_v36, 16  ;;  %v7791_v9 = vld [vmem:[#allocation2 + $0x158] sm:$0xff]   ;;  %v4918_v55 = vor.u32 %v4917_v2, %v4914_v20  ;;  %v6835_v2 = vld [vmem:[#allocation2 + $0x154] sm:$0x8] }
 0x256   : > { %v4294_v47 = vshrl.u32 %v7791_v9, 16  ;;  %v4297_v19 = vshll.u32 %v7791_v9, 16  ;;  %v6265_v36 = vld [vmem:[#allocation3 + $0x88] sm:$0xff] }
 0x257   : > { %5497 = vmatmul.bf16.gmra.mxu0 %v4875_v34  ;;  %v7781_v35 = vpop.f32.mrf.mxu2  ;;  %v4544_v34 = vrot.slane %v4542_v17, 3  ;;  %v4898_v13 = vshll.u32 %v6832_v27, 16  ;;  %3905 = vmatpush.bf16.msra.mxu2 %v6265_v36 }
 0x258   : > { %v5366_v57 = vpop.f32.mrf.mxu3 }
 0x259   : > { %v7784_v30 = vpop.f32.mrf.mxu1  ;;  %v7786_v56 = vadd.f32 %v5455_v24, %v5366_v57  ;;  %v4548_v22 = vor.u32 %v4547_v29, %v4544_v34  ;;  %v6986_v24 = vld [vmem:[#allocation2 + $0x80] sm:$0xff]  }
 0x25a   : > { %8490 = vst [vmem:[#allocation110_spill] sm:$0xff] %v7784_v30  ;;  %v4895_v30 = vshrl.u32 %v6832_v27, 16  ;;  %v4382_v57 = vrot.slane %v6986_v24, 5  ;;  %v4041_v34 = vld [vmem:[#allocation2 + $0xa0] sm:$0x1]  ;;  %v4900_v27 = vrot.slane %v4898_v13, 4  ;;  %v6580_v13 = vunpack.c.h.b16 %v7791_v9 }
 0x25b   : > { %v4549_v25 = vsel %vm1164_vm8, %v4540_v41, %v4548_v22  ;;  %v4299_v24 = vrot.slane %v4297_v19, 5  ;;  %v4345_v42 = vunpack.c.l.b16 %v4041_v34 }
 0x25c   : > { %v4384_v3 = vsel %vm1115_vm9, %v4382_v57, %v4383_v5  ;;  %v4897_v29 = vrot.slane %v4895_v30, 3  ;;  %v4580_v41 = vshll.u32 %v4382_v57, 16  ;;  %v5460_v7 = vpop.f32.mrf.mxu0  ;;  %v4174_v48 = vpack.c.b16 %v6580_v13, %v6580_v13 }
 0x25d   : > { %5408 = vmatmul.bf16.gmra.mxu3 %v4867_v31  ;;  %v4905_v31 = vrot.slane %v4903_v50, 3  ;;  %v4585_v22 = vshrl.u32 %v4384_v3, 16  ;;  %v4588_v5 = vshll.u32 %v4384_v3, 16 }
 0x25e   : > { %v4582_v36 = vrot.slane %v4580_v41, 4  ;;  %v4946_v41 = vshrl.u32 %v4174_v48, 16 }
 0x25f   : > { %v7789_v23 = vpop.f32.mrf.mxu2  ;;  %v4909_v30 = vor.u32 %v4908_v10, %v4905_v31 }
 0x260   : > { %v5369_v17 = vpop.f32.mrf.mxu3 }
 0x261   : > { %v7793_v46 = vpop.f32.mrf.mxu1  ;;  %v7795_v14 = vadd.f32 %v5458_v1, %v5369_v17  ;;  %v4296_v1 = vrot.slane %v4294_v47, 4  ;;  %v4577_v17 = vshrl.u32 %v4382_v57, 16  ;;  %v6904_v47 = vld [vmem:[#allocation2 + $0x154] sm:$0xf0]   ;;  %v4590_v57 = vrot.slane %v4588_v5, 4  ;;  %v7812_v5 = vld [vmem:[#allocation2 + $0x170] sm:$0xff]  }
 0x262   : > { %8491 = vst [vmem:[#allocation111_spill] sm:$0xff] %v7793_v46  ;;  %v6836_v34 = vor.u32 %v6904_v47, %v6835_v2  ;;  %v4302_v13 = vshrl.u32 %v7812_v5, 16 }
 0x263   : > { %v4300_v61 = vor.u32 %v4299_v24, %v4296_v1  ;;  %v4579_v19 = vrot.slane %v4577_v17, 3 }
 0x264   : > { %3457 = vmatmul.bf16.gmra.mxu2 %v7630_v49  ;;  %5546 = vmatmul.bf16.gmra.mxu1 %v4549_v25  ;;  %v4901_v25 = vor.u32 %v4900_v27, %v4897_v29  ;;  %v4941_v17 = vshll.u32 %v6836_v34, 16 }
 0x265   : > { %v4955_v29 = vshrl.u32 %v4300_v61, 16  ;;  %v4958_v27 = vshll.u32 %v4300_v61, 16  ;;  %v4583_v10 = vor.u32 %v4582_v36, %v4579_v19  ;;  %v4305_v61 = vshll.u32 %v7812_v5, 16 }
 0x266   : > { %v4910_v3 = vsel %vm1164_vm8, %v4901_v25, %v4909_v30  ;;  %v4943_v19 = vrot.slane %v4941_v17, 4 }
 0x267   : > { %5502 = vmatmul.bf16.gmra.mxu0 %v4918_v55  ;;  %v7802_v46 = vpop.f32.mrf.mxu2  ;;  %v4587_v55 = vrot.slane %v4585_v22, 3  ;;  %v4949_v22 = vshll.u32 %v4174_v48, 16  ;;  %v4957_v25 = vrot.slane %v4955_v29, 3  ;;  %v4960_v30 = vrot.slane %v4958_v27, 4 }
 0x268   : > { %8492 = vst [vmem:[#allocation112_spill] sm:$0xff] %v7802_v46  ;;  %v5371_v49 = vpop.f32.mrf.mxu3  ;;  %v4361_v46 = vpack.c.b16 %v4345_v42, %v4345_v42  ;;  %v4948_v48 = vrot.slane %v4946_v41, 3  ;;  %v6839_v41 = vld [vmem:[#allocation2 + $0x16c] sm:$0x8] }
 0x269   : > { %v7805_v50 = vpop.f32.mrf.mxu1  ;;  %v7807_v20 = vadd.f32 %v5460_v7, %v5371_v49  ;;  %v4591_v7 = vor.u32 %v4590_v57, %v4587_v55  ;;  %v6987_v49 = vld [vmem:[#allocation2 + $0x98] sm:$0xff]   ;;  %v4951_v36 = vrot.slane %v4949_v22, 4  ;;  %v4961_v57 = vor.u32 %v4960_v30, %v4957_v25  ;;  %v6905_v22 = vld [vmem:[#allocation2 + $0x16c] sm:$0xf0]  }
 0x26a   : > { %8493 = vst [vmem:[#allocation113_spill] sm:$0xff] %v7805_v50  ;;  %v4385_v1 = vrot.slane %v6987_v49, 5  ;;  %v4386_v24 = vrot.slane %v4361_v46, 5  ;;  %v4938_v50 = vshrl.u32 %v6836_v34, 16  ;;  %v4042_v55 = vld [vmem:[#allocation2 + $0xb8] sm:$0x1] }
 0x26b   : > { %v4592_v2 = vsel %vm1164_vm8, %v4583_v10, %v4591_v7  ;;  %v4307_v34 = vrot.slane %v4305_v61, 5  ;;  %v4346_v7 = vunpack.c.l.b16 %v4042_v55  ;;  %v4388_v55 = vrot.slane %v7620_v8, 5  ;;  %v4043_v8 = vld [vmem:[#allocation2 + $0xd0] sm:$0x1] }
 0x26c   : > { %v4387_v47 = vsel %vm1115_vm9, %v4385_v1, %v4386_v24  ;;  %v4940_v46 = vrot.slane %v4938_v50, 3  ;;  %v4620_v29 = vshrl.u32 %v4385_v1, 16  ;;  %v4623_v49 = vshll.u32 %v4385_v1, 16 }
 0x26d   : > { %5413 = vmatmul.bf16.gmra.mxu3 %v4910_v3  ;;  %v4304_v3 = vrot.slane %v4302_v13, 4  ;;  %v4631_v10 = vshll.u32 %v4387_v47, 16  ;;  %v6840_v1 = vor.u32 %v6905_v22, %v6839_v41 }
 0x26e   : > { %v4944_v24 = vor.u32 %v4943_v19, %v4940_v46  ;;  %v4622_v25 = vrot.slane %v4620_v29, 3  ;;  %v4625_v30 = vrot.slane %v4623_v49, 4 }
 0x26f   : > { %v7810_v31 = vpop.f32.mrf.mxu2  ;;  %v4308_v17 = vor.u32 %v4307_v34, %v4304_v3  ;;  %v4633_v61 = vrot.slane %v4631_v10, 4  ;;  %v4981_v34 = vshrl.u32 %v6840_v1, 16  ;;  %v4984_v29 = vshll.u32 %v6840_v1, 16  ;;  %v7830_v10 = vld [vmem:[#allocation2 + $0x188] sm:$0xff]  }
 0x270   : > { %8494 = vst [vmem:[#allocation114_spill] sm:$0xff] %v7810_v31  ;;  %v4952_v31 = vor.u32 %v4951_v36, %v4948_v48  ;;  %v4626_v48 = vor.u32 %v4625_v30, %v4622_v25 }
 0x271   : > { %v7814_v42 = vpop.f32.mrf.mxu1  ;;  %v5001_v46 = vshll.u32 %v4308_v17, 16  ;;  %v4983_v25 = vrot.slane %v4981_v34, 3  ;;  %v6588_v34 = vunpack.c.h.b16 %v7830_v10 }
 0x272   : > { %8495 = vst [vmem:[#allocation115_spill] sm:$0xff] %v7814_v42  ;;  %v4628_v42 = vshrl.u32 %v4387_v47, 16  ;;  %v4998_v47 = vshrl.u32 %v4308_v17, 16  ;;  %v4313_v17 = vshll.u32 %v7830_v10, 16 }
 0x274   : > { %3462 = vmatmul.bf16.gmra.mxu2 %v7656_v37  ;;  %5551 = vmatmul.bf16.gmra.mxu1 %v4592_v2  ;;  %v6584_v37 = vunpack.c.h.b16 %v7812_v5  ;;  %v4630_v13 = vrot.slane %v4628_v42, 3  ;;  %v4362_v2 = vpack.c.b16 %v4346_v7, %v4346_v7  ;;  %v4315_v1 = vrot.slane %v4313_v17, 5 }
 0x276   : > { %v4634_v36 = vor.u32 %v4633_v61, %v4630_v13  ;;  %v4389_v3 = vrot.slane %v4362_v2, 5  ;;  %v6264_v61 = vld [vmem:[#allocation3 + $0x80] sm:$0xff] }
 0x277   : > { %5507 = vmatmul.bf16.gmra.mxu0 %v4961_v57  ;;  %v7821_v27 = vpop.f32.mrf.mxu2  ;;  %v4953_v57 = vsel %vm1164_vm8, %v4944_v24, %v4952_v31  ;;  %v5000_v31 = vrot.slane %v4998_v47, 3  ;;  %v5003_v24 = vrot.slane %v5001_v46, 4  ;;  %v4663_v47 = vshrl.u32 %v4388_v55, 16  ;;  %3906 = vmatpush.bf16.msra.mxu2 %v6264_v61 }
 0x278   : > { %8496 = vst [vmem:[#allocation116_spill] sm:$0xff] %v7821_v27  ;;  %v4176_v27 = vpack.c.b16 %v6584_v37, %v6584_v37  ;;  %v4310_v37 = vshrl.u32 %v7830_v10, 16  ;;  %v4635_v41 = vsel %vm1164_vm8, %v4626_v48, %v4634_v36  ;;  %v4390_v22 = vsel %vm1115_vm9, %v4388_v55, %v4389_v3 }
 0x279   : > { %v7824_v50 = vpop.f32.mrf.mxu1  ;;  %v5004_v2 = vor.u32 %v5003_v24, %v5000_v31  ;;  %v4666_v48 = vshll.u32 %v4388_v55, 16  ;;  %v4671_v36 = vshrl.u32 %v4390_v22, 16  ;;  %v4674_v3 = vshll.u32 %v4390_v22, 16  ;;  %v6906_v31 = vld [vmem:[#allocation2 + $0x184] sm:$0xf0]  }
 0x27a   : > { %8497 = vst [vmem:[#allocation117_spill] sm:$0xff] %v7824_v50  ;;  %v4989_v49 = vshrl.u32 %v4176_v27, 16  ;;  %v4992_v42 = vshll.u32 %v4176_v27, 16  ;;  %v4986_v27 = vrot.slane %v4984_v29, 4  ;;  %v4665_v24 = vrot.slane %v4663_v47, 3 }
 0x27b   : > { %v4673_v17 = vrot.slane %v4671_v36, 3 }
 0x27c   : > { %v4991_v30 = vrot.slane %v4989_v49, 3  ;;  %v4994_v13 = vrot.slane %v4992_v42, 4  ;;  %v4987_v50 = vor.u32 %v4986_v27, %v4983_v25  ;;  %v6843_v42 = vld [vmem:[#allocation2 + $0x184] sm:$0x8] }
 0x27d   : > { %5418 = vmatmul.bf16.gmra.mxu3 %v4953_v57  ;;  %v4312_v57 = vrot.slane %v4310_v37, 4  ;;  %v4668_v37 = vrot.slane %v4666_v48, 4  ;;  %v6844_v55 = vor.u32 %v6906_v31, %v6843_v42 }
 0x27f   : > { %v7827_v19 = vpop.f32.mrf.mxu2  ;;  %v4316_v49 = vor.u32 %v4315_v1, %v4312_v57  ;;  %v4669_v27 = vor.u32 %v4668_v37, %v4665_v24  ;;  %v5024_v1 = vshrl.u32 %v6844_v55, 16  ;;  %v5027_v47 = vshll.u32 %v6844_v55, 16  ;;  %v4044_v37 = vld [vmem:[#allocation2 + $0xe8] sm:$0x1] }
 0x281   : > { %v7832_v7 = vpop.f32.mrf.mxu1  ;;  %v5041_v22 = vshrl.u32 %v4316_v49, 16  ;;  %v5029_v42 = vrot.slane %v5027_v47, 4 }
 0x282   : > { %8498 = vst [vmem:[#allocation118_spill] sm:$0xff] %v7832_v7  ;;  %v4347_v7 = vunpack.c.l.b16 %v4043_v8  ;;  %v5044_v8 = vshll.u32 %v4316_v49, 16  ;;  %v5026_v49 = vrot.slane %v5024_v1, 3 }
 0x284   : > { %3467 = vmatmul.bf16.gmra.mxu2 %v7682_v44  ;;  %5556 = vmatmul.bf16.gmra.mxu1 %v4635_v41  ;;  %v4995_v44 = vor.u32 %v4994_v13, %v4991_v30  ;;  %v4676_v41 = vrot.slane %v4674_v3, 4  ;;  %v4363_v61 = vpack.c.b16 %v4347_v7, %v4347_v7  ;;  %v4391_v13 = vrot.slane %v7646_v58, 5 }
 0x285   : > { %v5043_v7 = vrot.slane %v5041_v22, 3  ;;  %v5030_v55 = vor.u32 %v5029_v42, %v5026_v49  ;;  %v4394_v49 = vrot.slane %v7672_v18, 5 }
 0x286   : > { %v4677_v30 = vor.u32 %v4676_v41, %v4673_v17  ;;  %v4392_v57 = vrot.slane %v4363_v61, 5  ;;  %v4709_v41 = vshll.u32 %v4391_v13, 16 }
 0x287   : > { %5512 = vmatmul.bf16.gmra.mxu0 %v5004_v2  ;;  %v7839_v46 = vpop.f32.mrf.mxu2  ;;  %v4996_v2 = vsel %vm1164_vm8, %v4987_v50, %v4995_v44  ;;  %v5046_v50 = vrot.slane %v5044_v8, 4  ;;  %v4348_v8 = vunpack.c.l.b16 %v4044_v37  ;;  %v4752_v18 = vshll.u32 %v4394_v49, 16 }
 0x288   : > { %8499 = vst [vmem:[#allocation119_spill] sm:$0xff] %v7839_v46  ;;  %v4178_v46 = vpack.c.b16 %v6588_v34, %v6588_v34  ;;  %v4678_v44 = vsel %vm1164_vm8, %v4669_v27, %v4677_v30  ;;  %v4393_v34 = vsel %vm1115_vm9, %v4391_v13, %v4392_v57  ;;  %v4711_v30 = vrot.slane %v4709_v41, 4  ;;  %v779_v41 = vld [vmem:[#allocation2 + $0x10] sm:$0x1] }
 0x289   : > { %v7842_v29 = vpop.f32.mrf.mxu1  ;;  %v5047_v24 = vor.u32 %v5046_v50, %v5043_v7  ;;  %v4714_v61 = vshrl.u32 %v4393_v34, 16 }
 0x28a   : > { %8500 = vst [vmem:[#allocation120_spill] sm:$0xff] %v7842_v29  ;;  %v5032_v48 = vshrl.u32 %v4178_v46, 16  ;;  %v5035_v36 = vshll.u32 %v4178_v46, 16  ;;  %v4706_v46 = vshrl.u32 %v4391_v13, 16 }
 0x28b   : > { %v4716_v57 = vrot.slane %v4714_v61, 3  ;;  %v4045_v61 = vld [vmem:[#allocation2 + $0x100] sm:$0x1] }
 0x28c   : > { %v5034_v31 = vrot.slane %v5032_v48, 3  ;;  %v5037_v58 = vrot.slane %v5035_v36, 4  ;;  %v4364_v48 = vpack.c.b16 %v4348_v8, %v4348_v8  ;;  %v6988_v36 = vld [vmem:[#allocation2 + $0x188] sm:$0xff]   ;;  %v4749_v8 = vshrl.u32 %v4394_v49, 16 }
 0x28d   : > { %5423 = vmatmul.bf16.gmra.mxu3 %v4996_v2  ;;  %v4717_v2 = vshll.u32 %v4393_v34, 16  ;;  %v2278_v7 = vshrl.u32 %v6988_v36, 16  ;;  %v2281_v50 = vshll.u32 %v6988_v36, 16 }
 0x28e   : > { %v5038_v22 = vor.u32 %v5037_v58, %v5034_v31  ;;  %v4395_v42 = vrot.slane %v4364_v48, 5 }
 0x28f   : > { %v7845_v25 = vpop.f32.mrf.mxu2  ;;  %v4719_v1 = vrot.slane %v4717_v2, 4  ;;  %v2280_v58 = vrot.slane %v2278_v7, 4  ;;  %v4754_v7 = vrot.slane %v4752_v18, 4  ;;  %v780_v18 = vld [vmem:[#allocation2 + $0x28] sm:$0x1] }
 0x290   : > { %v5039_v47 = vsel %vm1164_vm8, %v5030_v55, %v5038_v22  ;;  %v1083_v55 = vunpack.c.l.b16 %v779_v41 }
 0x291   : > { %v7848_v3 = vpop.f32.mrf.mxu1  ;;  %v4720_v34 = vor.u32 %v4719_v1, %v4716_v57  ;;  %v4349_v57 = vunpack.c.l.b16 %v4045_v61  ;;  %v4397_v61 = vrot.slane %v7702_v53, 5 }
 0x292   : > { %8501 = vst [vmem:[#allocation121_spill] sm:$0xff] %v7848_v3  ;;  %v1099_v36 = vpack.c.b16 %v1083_v55, %v1083_v55 }
 0x294   : > { %3472 = vmatmul.bf16.gmra.mxu2 %v7708_v32  ;;  %5561 = vmatmul.bf16.gmra.mxu1 %v4678_v44  ;;  %v4708_v32 = vrot.slane %v4706_v46, 3  ;;  %v4396_v46 = vsel %vm1115_vm9, %v4394_v49, %v4395_v42  ;;  %v1117_v41 = vrot.slane %v1099_v36, 5  ;;  %v4046_v36 = vld [vmem:[#allocation2 + $0x118] sm:$0x1] }
 0x296   : > { %v4712_v13 = vor.u32 %v4711_v30, %v4708_v32  ;;  %v4757_v32 = vshrl.u32 %v4396_v46, 16  ;;  %v4760_v30 = vshll.u32 %v4396_v46, 16 }
 0x297   : > { %5517 = vmatmul.bf16.gmra.mxu0 %v5047_v24  ;;  %v7853_v17 = vpop.f32.mrf.mxu2  ;;  %v2283_v24 = vrot.slane %v2281_v50, 5 }
 0x298   : > { %v4721_v37 = vsel %vm1164_vm8, %v4712_v13, %v4720_v34  ;;  %v4759_v50 = vrot.slane %v4757_v32, 3  ;;  %v4762_v13 = vrot.slane %v4760_v30, 4  ;;  %v4365_v34 = vpack.c.b16 %v4349_v57, %v4349_v57 }
 0x299   : > { %v7855_v27 = vpop.f32.mrf.mxu1  ;;  %v2284_v2 = vor.u32 %v2283_v24, %v2280_v58  ;;  %v6989_v24 = vld [vmem:[#allocation2 + $0x8] sm:$0xff]  }
 0x29a   : > { %8502 = vst [vmem:[#allocation122_spill] sm:$0xff] %v7855_v27  ;;  %v4763_v46 = vor.u32 %v4762_v13, %v4759_v50  ;;  %v4795_v50 = vshll.u32 %v4397_v61, 16 }
 0x29b   : > { %v3047_v48 = vshll.u32 %v2284_v2, 16 }
 0x29d   : > { %5428 = vmatmul.bf16.gmra.mxu3 %v5039_v47  ;;  %v3044_v47 = vshrl.u32 %v2284_v2, 16  ;;  %v3049_v58 = vrot.slane %v3047_v48, 4 }
 0x29f   : > { %v7858_v44 = vpop.f32.mrf.mxu2  ;;  %v3046_v42 = vrot.slane %v3044_v47, 3 }
 0x2a1   : > { %v7861_v31 = vpop.f32.mrf.mxu1  ;;  %v3050_v2 = vor.u32 %v3049_v58, %v3046_v42  ;;  %v4350_v42 = vunpack.c.l.b16 %v4046_v36 }
 0x2a2   : > { %8503 = vst [vmem:[#allocation123_spill] sm:$0xff] %v7861_v31 }
 0x2a4   : > { %3477 = vmatmul.bf16.gmra.mxu2 %v7734_v62  ;;  %5566 = vmatmul.bf16.gmra.mxu1 %v4721_v37  ;;  %v4751_v62 = vrot.slane %v4749_v8, 3  ;;  %v1116_v37 = vrot.slane %v6989_v24, 5 }
 0x2a6   : > { %v4755_v49 = vor.u32 %v4754_v7, %v4751_v62  ;;  %v1118_v55 = vsel %vm1115_vm9, %v1116_v37, %v1117_v41  ;;  %v1192_v30 = vshrl.u32 %v1116_v37, 16  ;;  %v1195_v57 = vshll.u32 %v1116_v37, 16 }
 0x2a7   : > { %v7866_v22 = vpop.f32.mrf.mxu2  ;;  %v1200_v47 = vshrl.u32 %v1118_v55, 16  ;;  %v1203_v48 = vshll.u32 %v1118_v55, 16  ;;  %v1084_v62 = vunpack.c.l.b16 %v780_v18  ;;  %v4792_v7 = vshrl.u32 %v4397_v61, 16 }
 0x2a8   : > { %v4764_v8 = vsel %vm1164_vm8, %v4755_v49, %v4763_v46  ;;  %v1194_v24 = vrot.slane %v1192_v30, 3  ;;  %v1197_v41 = vrot.slane %v1195_v57, 4  ;;  %v4797_v37 = vrot.slane %v4795_v50, 4 }
 0x2a9   : > { %v7868_v1 = vpop.f32.mrf.mxu1  ;;  %v1202_v49 = vrot.slane %v1200_v47, 3  ;;  %v1205_v46 = vrot.slane %v1203_v48, 4  ;;  %v4400_v30 = vrot.slane %v7726_v40, 5 }
 0x2aa   : > { %8504 = vst [vmem:[#allocation124_spill] sm:$0xff] %v7868_v1  ;;  %v4398_v1 = vrot.slane %v4365_v34, 5  ;;  %v1198_v18 = vor.u32 %v1197_v41, %v1194_v24  ;;  %v4047_v41 = vld [vmem:[#allocation2 + $0x130] sm:$0x1] }
 0x2ab   : > { %v1206_v3 = vor.u32 %v1205_v46, %v1202_v49 }
 0x2ac   : > { %v4399_v32 = vsel %vm1115_vm9, %v4397_v61, %v4398_v1  ;;  %v1100_v1 = vpack.c.b16 %v1084_v62, %v1084_v62 }
 0x2ad   : > { %v4800_v13 = vshrl.u32 %v4399_v32, 16  ;;  %v4803_v34 = vshll.u32 %v4399_v32, 16  ;;  %v6990_v32 = vld [vmem:[#allocation2 + $0x20] sm:$0xff]  ;;  %v1207_v48 = vsel %vm1164_vm8, %v1198_v18, %v1206_v3  ;;  %v4835_v3 = vshrl.u32 %v4400_v30, 16 }
 0x2ae   : > { %v1119_v36 = vrot.slane %v6990_v32, 5 }
 0x2af   : > { %v7870_v31 = vpop.f32.mrf.mxu2  ;;  %v4805_v55 = vrot.slane %v4803_v34, 4 }
 0x2b0   : > { %8505 = vst [vmem:[#allocation125_spill] sm:$0xff] %v7870_v31  ;;  %v1120_v31 = vrot.slane %v1100_v1, 5  ;;  %v1238_v24 = vshll.u32 %v1119_v36, 16 }
 0x2b1   : > { %v7873_v27 = vpop.f32.mrf.mxu1 }
 0x2b2   : > { %8506 = vst [vmem:[#allocation126_spill] sm:$0xff] %v7873_v27  ;;  %v4366_v27 = vpack.c.b16 %v4350_v42, %v4350_v42  ;;  %v1121_v50 = vsel %vm1115_vm9, %v1119_v36, %v1120_v31  ;;  %v1235_v42 = vshrl.u32 %v1119_v36, 16  ;;  %v4837_v36 = vrot.slane %v4835_v3, 3 }
 0x2b3   : > { %v1243_v40 = vshrl.u32 %v1121_v50, 16 }
 0x2b4   : > { %3482 = vmatmul.bf16.gmra.mxu2 %v3050_v2  ;;  %5571 = vmatmul.bf16.gmra.mxu1 %v4764_v8  ;;  %v4794_v2 = vrot.slane %v4792_v7, 3  ;;  %v4802_v8 = vrot.slane %v4800_v13, 3  ;;  %v4401_v57 = vrot.slane %v4366_v27, 5  ;;  %v781_v13 = vld [vmem:[#allocation2 + $0x40] sm:$0x1]  ;;  %v1246_v27 = vshll.u32 %v1121_v50, 16 }
 0x2b5   : > { %v1085_v49 = vunpack.c.l.b16 %v781_v13  ;;  %v1237_v31 = vrot.slane %v1235_v42, 3  ;;  %v1245_v18 = vrot.slane %v1243_v40, 3  ;;  %v6991_v13 = vld [vmem:[#allocation2 + $0x38] sm:$0xff] }
 0x2b6   : > { %v4798_v61 = vor.u32 %v4797_v37, %v4794_v2  ;;  %v4402_v34 = vsel %vm1115_vm9, %v4400_v30, %v4401_v57 }
 0x2b7   : > { %v7878_v53 = vpop.f32.mrf.mxu2  ;;  %v4843_v1 = vshrl.u32 %v4402_v34, 16  ;;  %v4846_v2 = vshll.u32 %v4402_v34, 16  ;;  %v1101_v32 = vpack.c.b16 %v1085_v49, %v1085_v49 }
 0x2b8   : > { %8507 = vst [vmem:[#allocation127_spill] sm:$0xff] %v7878_v53  ;;  %v4806_v53 = vor.u32 %v4805_v55, %v4802_v8  ;;  %v1240_v8 = vrot.slane %v1238_v24, 4 }
 0x2b9   : > { %v7880_v58 = vpop.f32.mrf.mxu1  ;;  %v1123_v24 = vrot.slane %v1101_v32, 5 }
 0x2ba   : > { %8508 = vst [vmem:[#allocation128_spill] sm:$0xff] %v7880_v58  ;;  %v4807_v7 = vsel %vm1164_vm8, %v4798_v61, %v4806_v53  ;;  %v4351_v53 = vunpack.c.l.b16 %v4047_v41  ;;  %v1248_v61 = vrot.slane %v1246_v27, 4  ;;  %v1241_v50 = vor.u32 %v1240_v8, %v1237_v31  ;;  %v4048_v8 = vld [vmem:[#allocation2 + $0x148] sm:$0x1] }
 0x2bc   : > { %v1249_v34 = vor.u32 %v1248_v61, %v1245_v18 }
 0x2be   : > { %v1250_v49 = vsel %vm1164_vm8, %v1241_v50, %v1249_v34 }
 0x2bf   : > { %v7882_v29 = vpop.f32.mrf.mxu2 }
 0x2c1   : > { %v5537_v47 = vpop.f32.mrf.mxu1 }
 0x2c2   : > { %v7887_v62 = vadd.f32 %v5537_v47, %v7753_v21  ;;  %v4838_v21 = vshll.u32 %v4400_v30, 16  ;;  %v4845_v47 = vrot.slane %v4843_v1, 3  ;;  %v1122_v30 = vrot.slane %v6991_v13, 5  ;;  %v782_v1 = vld [vmem:[#allocation2 + $0x58] sm:$0x1] }
 0x2c3   : > { %v1086_v61 = vunpack.c.l.b16 %v782_v1  ;;  %v6992_v1 = vld [vmem:[#allocation2 + $0x50] sm:$0xff] }
 0x2c4   : > { %3907 = vmatmul.bf16.vlgmr.msra.gmra.mxu2 %v1207_v48  ;;  %5576 = vmatmul.bf16.gmra.mxu1 %v4807_v7  ;;  %v4840_v57 = vrot.slane %v4838_v21, 4  ;;  %v4848_v48 = vrot.slane %v4846_v2, 4  ;;  %v4367_v7 = vpack.c.b16 %v4351_v53, %v4351_v53  ;;  %v1124_v21 = vsel %vm1115_vm9, %v1122_v30, %v1123_v24 }
 0x2c5   : > { %v1278_v53 = vshrl.u32 %v1122_v30, 16  ;;  %v1281_v31 = vshll.u32 %v1122_v30, 16  ;;  %v1289_v18 = vshll.u32 %v1124_v21, 16  ;;  %v1102_v30 = vpack.c.b16 %v1086_v61, %v1086_v61 }
 0x2c6   : > { %v4841_v41 = vor.u32 %v4840_v57, %v4837_v36  ;;  %v4849_v42 = vor.u32 %v4848_v48, %v4845_v47  ;;  %v4352_v48 = vunpack.c.l.b16 %v4048_v8 }
 0x2c7   : > { %v7892_v46 = vpop.f32.mrf.mxu2  ;;  %v1280_v50 = vrot.slane %v1278_v53, 3  ;;  %v1283_v13 = vrot.slane %v1281_v31, 4  ;;  %v1126_v31 = vrot.slane %v1102_v30, 5 }
 0x2c8   : > { %v4850_v3 = vsel %vm1164_vm8, %v4841_v41, %v4849_v42  ;;  %v1291_v42 = vrot.slane %v1289_v18, 4 }
 0x2c9   : > { %v5539_v37 = vpop.f32.mrf.mxu1 }
 0x2ca   : > { %v7895_v55 = vadd.f32 %v5539_v37, %v7765_v6  ;;  %v4403_v6 = vrot.slane %v7749_v15, 5  ;;  %v4404_v37 = vrot.slane %v4367_v7, 5  ;;  %v1286_v15 = vshrl.u32 %v1124_v21, 16 }
 0x2cb   : > { %v1284_v21 = vor.u32 %v1283_v13, %v1280_v50  ;;  %v4049_v13 = vld [vmem:[#allocation2 + $0x160] sm:$0x1] }
 0x2cc   : > { %v4405_v2 = vsel %vm1115_vm9, %v4403_v6, %v4404_v37  ;;  %v4881_v36 = vshll.u32 %v4403_v6, 16  ;;  %v1288_v41 = vrot.slane %v1286_v15, 3 }
 0x2cd   : > { %v4886_v57 = vshrl.u32 %v4405_v2, 16  ;;  %v4889_v47 = vshll.u32 %v4405_v2, 16 }
 0x2ce   : > { %v4883_v37 = vrot.slane %v4881_v36, 4  ;;  %v1292_v2 = vor.u32 %v1291_v42, %v1288_v41 }
 0x2cf   : > { %v7897_v58 = vpop.f32.mrf.mxu2 }
 0x2d0   : > { %v1293_v61 = vsel %vm1164_vm8, %v1284_v21, %v1292_v2 }
 0x2d1   : > { %v5542_v40 = vpop.f32.mrf.mxu1 }
 0x2d2   : > { %v7901_v27 = vadd.f32 %v5542_v40, %v7776_v60  ;;  %v4878_v60 = vshrl.u32 %v4403_v6, 16  ;;  %v4888_v40 = vrot.slane %v4886_v57, 3  ;;  %v1125_v6 = vrot.slane %v6992_v1, 5  ;;  %v783_v57 = vld [vmem:[#allocation2 + $0x70] sm:$0x1] }
 0x2d3   : > { %v1087_v42 = vunpack.c.l.b16 %v783_v57  ;;  %v6993_v57 = vld [vmem:[#allocation2 + $0x68] sm:$0xff] }
 0x2d4   : > { %3912 = vmatmul.bf16.gmra.mxu2 %v1250_v49  ;;  %5581 = vmatmul.bf16.gmra.mxu1 %v4850_v3  ;;  %v4880_v24 = vrot.slane %v4878_v60, 3  ;;  %v4891_v49 = vrot.slane %v4889_v47, 4  ;;  %v4368_v3 = vpack.c.b16 %v4352_v48, %v4352_v48  ;;  %v1127_v36 = vsel %vm1115_vm9, %v1125_v6, %v1126_v31 }
 0x2d5   : > { %v1321_v48 = vshrl.u32 %v1125_v6, 16  ;;  %v1324_v50 = vshll.u32 %v1125_v6, 16  ;;  %v1332_v41 = vshll.u32 %v1127_v36, 16  ;;  %v1103_v6 = vpack.c.b16 %v1087_v42, %v1087_v42 }
 0x2d6   : > { %v4884_v8 = vor.u32 %v4883_v37, %v4880_v24  ;;  %v4892_v53 = vor.u32 %v4891_v49, %v4888_v40  ;;  %v4353_v49 = vunpack.c.l.b16 %v4049_v13 }
 0x2d7   : > { %v7907_v32 = vpop.f32.mrf.mxu2  ;;  %v1323_v21 = vrot.slane %v1321_v48, 3  ;;  %v1326_v1 = vrot.slane %v1324_v50, 4  ;;  %v1129_v50 = vrot.slane %v1103_v6, 5 }
 0x2d8   : > { %8509 = vst [vmem:[#allocation129_spill] sm:$0xff] %v7907_v32  ;;  %v4893_v60 = vsel %vm1164_vm8, %v4884_v8, %v4892_v53  ;;  %v1334_v53 = vrot.slane %v1332_v41, 4 }
 0x2d9   : > { %v5544_v7 = vpop.f32.mrf.mxu1 }
 0x2da   : > { %v7910_v34 = vadd.f32 %v5544_v7, %v7786_v56  ;;  %v4406_v56 = vrot.slane %v7770_v52, 5  ;;  %v4407_v7 = vrot.slane %v4368_v3, 5  ;;  %v1329_v52 = vshrl.u32 %v1127_v36, 16 }
 0x2db   : > { %v1327_v36 = vor.u32 %v1326_v1, %v1323_v21 }
 0x2dc   : > { %v4408_v47 = vsel %vm1115_vm9, %v4406_v56, %v4407_v7  ;;  %v4924_v24 = vshll.u32 %v4406_v56, 16  ;;  %v1331_v8 = vrot.slane %v1329_v52, 3 }
 0x2dd   : > { %v4929_v37 = vshrl.u32 %v4408_v47, 16  ;;  %v4932_v40 = vshll.u32 %v4408_v47, 16 }
 0x2de   : > { %v4926_v7 = vrot.slane %v4924_v24, 4  ;;  %v1335_v47 = vor.u32 %v1334_v53, %v1331_v8 }
 0x2df   : > { %v7912_v32 = vpop.f32.mrf.mxu2 }
 0x2e0   : > { %v1336_v52 = vsel %vm1164_vm8, %v1327_v36, %v1335_v47 }
 0x2e1   : > { %v5547_v15 = vpop.f32.mrf.mxu1 }
 0x2e2   : > { %v7916_v18 = vadd.f32 %v5547_v15, %v7795_v14  ;;  %v4921_v14 = vshrl.u32 %v4406_v56, 16  ;;  %v4931_v15 = vrot.slane %v4929_v37, 3  ;;  %v1128_v56 = vrot.slane %v6993_v57, 5 }
 0x2e4   : > { %3917 = vmatmul.bf16.gmra.mxu2 %v1293_v61  ;;  %5586 = vmatmul.bf16.gmra.mxu1 %v4893_v60  ;;  %v4923_v31 = vrot.slane %v4921_v14, 3  ;;  %v4934_v61 = vrot.slane %v4932_v40, 4  ;;  %v4369_v60 = vpack.c.b16 %v4353_v49, %v4353_v49  ;;  %v1130_v42 = vsel %vm1115_vm9, %v1128_v56, %v1129_v50  ;;  %v784_v14 = vld [vmem:[#allocation2 + $0x88] sm:$0x1]  ;;  %v4050_v40 = vld [vmem:[#allocation2 + $0x178] sm:$0x1] }
 0x2e5   : > { %v1364_v37 = vshrl.u32 %v1128_v56, 16  ;;  %v1367_v49 = vshll.u32 %v1128_v56, 16  ;;  %v1372_v21 = vshrl.u32 %v1130_v42, 16  ;;  %v1375_v1 = vshll.u32 %v1130_v42, 16 }
 0x2e6   : > { %v4927_v13 = vor.u32 %v4926_v7, %v4923_v31  ;;  %v4935_v48 = vor.u32 %v4934_v61, %v4931_v15  ;;  %v1088_v8 = vunpack.c.l.b16 %v784_v14  ;;  %v4354_v15 = vunpack.c.l.b16 %v4050_v40 }
 0x2e7   : > { %v7922_v30 = vpop.f32.mrf.mxu2  ;;  %v1366_v61 = vrot.slane %v1364_v37, 3  ;;  %v1374_v36 = vrot.slane %v1372_v21, 3  ;;  %v1377_v57 = vrot.slane %v1375_v1, 4  ;;  %v4412_v37 = vrot.slane %v7812_v5, 5 }
 0x2e8   : > { %8510 = vst [vmem:[#allocation130_spill] sm:$0xff] %v7922_v30  ;;  %v4936_v41 = vsel %vm1164_vm8, %v4927_v13, %v4935_v48  ;;  %v1104_v47 = vpack.c.b16 %v1088_v8, %v1088_v8  ;;  %v4370_v56 = vpack.c.b16 %v4354_v15, %v4354_v15  ;;  %v785_v8 = vld [vmem:[#allocation2 + $0xa0] sm:$0x1] }
 0x2e9   : > { %v5549_v3 = vpop.f32.mrf.mxu1  ;;  %v5007_v5 = vshrl.u32 %v4412_v37, 16 }
 0x2ea   : > { %v7925_v2 = vadd.f32 %v5549_v3, %v7807_v20  ;;  %v4409_v20 = vrot.slane %v7791_v9, 5  ;;  %v4410_v3 = vrot.slane %v4369_v60, 5  ;;  %v1369_v60 = vrot.slane %v1367_v49, 4 }
 0x2eb   : > { %v4413_v40 = vrot.slane %v4370_v56, 5 }
 0x2ec   : > { %v4411_v24 = vsel %vm1115_vm9, %v4409_v20, %v4410_v3  ;;  %v4964_v9 = vshrl.u32 %v4409_v20, 16  ;;  %v4967_v6 = vshll.u32 %v4409_v20, 16  ;;  %v6994_v20 = vld [vmem:[#allocation2 + $0x80] sm:$0xff] }
 0x2ed   : > { %v4972_v31 = vshrl.u32 %v4411_v24, 16  ;;  %v4975_v7 = vshll.u32 %v4411_v24, 16  ;;  %v1132_v24 = vrot.slane %v1104_v47, 5 }
 0x2ee   : > { %v4966_v13 = vrot.slane %v4964_v9, 3  ;;  %v4969_v48 = vrot.slane %v4967_v6, 4  ;;  %v4414_v9 = vsel %vm1115_vm9, %v4412_v37, %v4413_v40 }
 0x2ef   : > { %v7927_v30 = vpop.f32.mrf.mxu2  ;;  %v4974_v50 = vrot.slane %v4972_v31, 3  ;;  %v4977_v3 = vrot.slane %v4975_v7, 4  ;;  %v4051_v31 = vld [vmem:[#allocation2 + $0x190] sm:$0x1]  ;;  %v5015_v47 = vshrl.u32 %v4414_v9, 16 }
 0x2f0   : > { %8511 = vst [vmem:[#allocation131_spill] sm:$0xff] %v7927_v30  ;;  %v4970_v14 = vor.u32 %v4969_v48, %v4966_v13  ;;  %v1131_v30 = vrot.slane %v6994_v20, 5  ;;  %v5018_v13 = vshll.u32 %v4414_v9, 16 }
 0x2f1   : > { %v5017_v20 = vrot.slane %v5015_v47, 3 }
 0x2f2   : > { %v1133_v1 = vsel %vm1115_vm9, %v1131_v30, %v1132_v24  ;;  %v1407_v6 = vshrl.u32 %v1131_v30, 16  ;;  %v1410_v7 = vshll.u32 %v1131_v30, 16  ;;  %v5020_v24 = vrot.slane %v5018_v13, 4 }
 0x2f3   : > { %v1415_v15 = vshrl.u32 %v1133_v1, 16 }
 0x2f4   : > { %3922 = vmatmul.bf16.gmra.mxu2 %v1336_v52  ;;  %5591 = vmatmul.bf16.gmra.mxu1 %v4936_v41  ;;  %v1370_v52 = vor.u32 %v1369_v60, %v1366_v61  ;;  %v1378_v41 = vor.u32 %v1377_v57, %v1374_v36  ;;  %v1418_v61 = vshll.u32 %v1133_v1, 16  ;;  %v1089_v60 = vunpack.c.l.b16 %v785_v8 }
 0x2f5   : > { %v5010_v57 = vshll.u32 %v4412_v37, 16  ;;  %v1409_v48 = vrot.slane %v1407_v6, 3  ;;  %v5021_v8 = vor.u32 %v5020_v24, %v5017_v20  ;;  %v6995_v37 = vld [vmem:[#allocation2 + $0x98] sm:$0xff]  ;;  %v4415_v6 = vrot.slane %v7830_v10, 5 }
 0x2f6   : > { %v1379_v49 = vsel %vm1164_vm8, %v1370_v52, %v1378_v41  ;;  %v1420_v56 = vrot.slane %v1418_v61, 4  ;;  %v1105_v52 = vpack.c.b16 %v1089_v60, %v1089_v60  ;;  %v5009_v41 = vrot.slane %v5007_v5, 3  ;;  %v786_v5 = vld [vmem:[#allocation2 + $0xb8] sm:$0x1] }
 0x2f7   : > { %v7934_v53 = vpop.f32.mrf.mxu2  ;;  %v5053_v10 = vshll.u32 %v4415_v6, 16 }
 0x2f8   : > { %8512 = vst [vmem:[#allocation132_spill] sm:$0xff] %v7934_v53  ;;  %v4978_v53 = vor.u32 %v4977_v3, %v4974_v50  ;;  %v1412_v50 = vrot.slane %v1410_v7, 4  ;;  %v1417_v3 = vrot.slane %v1415_v15, 3  ;;  %v1135_v9 = vrot.slane %v1105_v52, 5 }
 0x2f9   : > { %v1090_v52 = vunpack.c.l.b16 %v786_v5 }
 0x2fa   : > { %v4979_v21 = vsel %vm1164_vm8, %v4970_v14, %v4978_v53  ;;  %v4355_v53 = vunpack.c.l.b16 %v4051_v31  ;;  %v5012_v14 = vrot.slane %v5010_v57, 4  ;;  %v1413_v40 = vor.u32 %v1412_v50, %v1409_v48 }
 0x2fb   : > { %v5050_v50 = vshrl.u32 %v4415_v6, 16 }
 0x2fc   : > { %v4371_v30 = vpack.c.b16 %v4355_v53, %v4355_v53  ;;  %v5013_v1 = vor.u32 %v5012_v14, %v5009_v41 }
 0x2fe   : > { %v4416_v31 = vrot.slane %v4371_v30, 5  ;;  %v5022_v15 = vsel %vm1164_vm8, %v5013_v1, %v5021_v8  ;;  %v5052_v30 = vrot.slane %v5050_v50, 3  ;;  %v1106_v8 = vpack.c.b16 %v1090_v52, %v1090_v52 }
 0x2ff   : > { %v7936_v42 = vpop.f32.mrf.mxu2 }
 0x300   : > { %v4417_v60 = vsel %vm1115_vm9, %v4415_v6, %v4416_v31 }
 0x304   : > { %3927 = vmatmul.bf16.gmra.mxu2 %v1379_v49  ;;  %5596 = vmatmul.bf16.gmra.mxu1 %v4979_v21  ;;  %v1421_v49 = vor.u32 %v1420_v56, %v1417_v3  ;;  %v5058_v3 = vshrl.u32 %v4417_v60, 16  ;;  %v5061_v56 = vshll.u32 %v4417_v60, 16 }
 0x306   : > { %v1422_v7 = vsel %vm1164_vm8, %v1413_v40, %v1421_v49  ;;  %v5055_v40 = vrot.slane %v5053_v10, 4  ;;  %v5060_v49 = vrot.slane %v5058_v3, 3  ;;  %v5063_v1 = vrot.slane %v5061_v56, 4 }
 0x307   : > { %v7943_v36 = vpop.f32.mrf.mxu2 }
 0x308   : > { %8513 = vst [vmem:[#allocation133_spill] sm:$0xff] %v7943_v36  ;;  %v1134_v36 = vrot.slane %v6995_v37, 5  ;;  %v5056_v31 = vor.u32 %v5055_v40, %v5052_v30 }
 0x30a   : > { %v1136_v61 = vsel %vm1115_vm9, %v1134_v36, %v1135_v9  ;;  %v1450_v57 = vshrl.u32 %v1134_v36, 16  ;;  %v1453_v47 = vshll.u32 %v1134_v36, 16 }
 0x30b   : > { %v1458_v13 = vshrl.u32 %v1136_v61, 16  ;;  %v1461_v53 = vshll.u32 %v1136_v61, 16  ;;  %v1138_v61 = vrot.slane %v1106_v8, 5 }
 0x30c   : > { %v1452_v41 = vrot.slane %v1450_v57, 3  ;;  %v1455_v14 = vrot.slane %v1453_v47, 4  ;;  %v787_v47 = vld [vmem:[#allocation2 + $0xd0] sm:$0x1] }
 0x30d   : > { %v1460_v20 = vrot.slane %v1458_v13, 3  ;;  %v1463_v24 = vrot.slane %v1461_v53, 4  ;;  %v1091_v56 = vunpack.c.l.b16 %v787_v47  ;;  %v3409_v47 = vadd.f32 %v7760_v51, %v7390_v12 }
 0x30e   : > { %v1456_v36 = vor.u32 %v1455_v14, %v1452_v41  ;;  %v3411_v12 = vadd.f32 %v7768_v43, %v7400_v59 }
 0x30f   : > { %v7945_v21 = vpop.f32.mrf.mxu2  ;;  %v1464_v9 = vor.u32 %v1463_v24, %v1460_v20  ;;  %v1107_v24 = vpack.c.b16 %v1091_v56, %v1091_v56 }
 0x311   : > { %v1465_v60 = vsel %vm1164_vm8, %v1456_v36, %v1464_v9  ;;  %v1141_v36 = vrot.slane %v1107_v24, 5  ;;  %v7972_v24 = vpop.f32.mrf.mxu3 }
 0x314   : > { %3932 = vmatmul.bf16.gmra.mxu2 %v1422_v7  ;;  %5601 = vmatmul.bf16.gmra.mxu1 %v5022_v15  ;;  %v5064_v7 = vor.u32 %v5063_v1, %v5060_v49  ;;  %v6996_v15 = vld [vmem:[#allocation2 + $0xb0] sm:$0xff]  ;;  %v6997_v1 = vld [vmem:[#allocation2 + $0xc8] sm:$0xff] }
 0x315   : > { %v1137_v6 = vrot.slane %v6996_v15, 5  ;;  %v1140_v8 = vrot.slane %v6997_v1, 5 }
 0x316   : > { %v5065_v5 = vsel %vm1164_vm8, %v5056_v31, %v5064_v7  ;;  %v788_v7 = vld [vmem:[#allocation2 + $0xe8] sm:$0x1] }
 0x317   : > { %v7952_v48 = vpop.f32.mrf.mxu2  ;;  %v1139_v57 = vsel %vm1115_vm9, %v1137_v6, %v1138_v61  ;;  %v1493_v53 = vshrl.u32 %v1137_v6, 16  ;;  %v1496_v50 = vshll.u32 %v1137_v6, 16  ;;  %v1142_v31 = vsel %vm1115_vm9, %v1140_v8, %v1141_v36 }
 0x318   : > { %v1501_v10 = vshrl.u32 %v1139_v57, 16  ;;  %v1504_v3 = vshll.u32 %v1139_v57, 16  ;;  %v1536_v6 = vshrl.u32 %v1140_v8, 16  ;;  %v1539_v61 = vshll.u32 %v1140_v8, 16  ;;  %v7974_v8 = vpop.f32.mrf.mxu0 }
 0x319   : > { %v1495_v52 = vrot.slane %v1493_v53, 3  ;;  %v1498_v41 = vrot.slane %v1496_v50, 4  ;;  %v1092_v57 = vunpack.c.l.b16 %v788_v7  ;;  %v3500_v7 = vadd.f32 %v7396_v54, %v3411_v12 }
 0x31a   : > { %v1503_v14 = vrot.slane %v1501_v10, 3  ;;  %v1506_v20 = vrot.slane %v1504_v3, 4  ;;  %v1538_v53 = vrot.slane %v1536_v6, 3  ;;  %v1541_v50 = vrot.slane %v1539_v61, 4 }
 0x31b   : > { %v1499_v40 = vor.u32 %v1498_v41, %v1495_v52  ;;  %v1108_v56 = vpack.c.b16 %v1092_v57, %v1092_v57  ;;  %v3498_v52 = vadd.f32 %v7386_v26, %v3409_v47  ;;  %v7989_v57 = vld [vmem:[%s8381_s4] ss:$0 sm:$0xff] }
 0x31c   : > { %v1507_v49 = vor.u32 %v1506_v20, %v1503_v14  ;;  %v1542_v14 = vor.u32 %v1541_v50, %v1538_v53  ;;  %v3414_v53 = vadd.f32 %v7781_v35, %v7410_v33  ;;  %v7993_v50 = vpop.f32.mrf.mxu3 }
 0x31d   : > { %v1144_v1 = vrot.slane %v1108_v56, 5  ;;  %v3731_v51 = vadd.f32 %v7367_v16, %v3498_v52 }
 0x31e   : > { %v1508_v9 = vsel %vm1164_vm8, %v1499_v40, %v1507_v49  ;;  %v6998_v40 = vld [vmem:[#allocation2 + $0xe0] sm:$0xff] }
 0x31f   : > { %v7954_v37 = vpop.f32.mrf.mxu2  ;;  %v1143_v49 = vrot.slane %v6998_v40, 5  ;;  %v3820_v6 = vadd.f32 %v7562_v11, %v3731_v51  ;;  %v3733_v11 = vadd.f32 %v7380_v0, %v3500_v7  ;;  %v3416_v7 = vadd.f32 %v7789_v23, %v7418_v4 }
 0x321   : > { %v1145_v26 = vsel %vm1115_vm9, %v1143_v49, %v1144_v1  ;;  %v3822_v35 = vadd.f32 %v7573_v45, %v3733_v11 }
 0x322   : > { %v1587_v59 = vshrl.u32 %v1145_v26, 16  ;;  %v1590_v43 = vshll.u32 %v1145_v26, 16 }
 0x324   : > { %3937 = vmatmul.bf16.gmra.mxu2 %v1465_v60  ;;  %5606 = vmatmul.bf16.gmra.mxu1 %v5065_v5  ;;  %v1544_v60 = vshrl.u32 %v1142_v31, 16  ;;  %v1547_v5 = vshll.u32 %v1142_v31, 16  ;;  %v789_v31 = vld [vmem:[#allocation2 + $0x100] sm:$0x1]  ;;  %v1589_v52 = vrot.slane %v1587_v59, 3 }
 0x325   : > { %v1093_v47 = vunpack.c.l.b16 %v789_v31 }
 0x326   : > { %v1546_v10 = vrot.slane %v1544_v60, 3  ;;  %v1549_v3 = vrot.slane %v1547_v5, 4  ;;  %v1579_v60 = vshrl.u32 %v1143_v49, 16  ;;  %v1582_v5 = vshll.u32 %v1143_v49, 16 }
 0x327   : > { %v7959_v13 = vpop.f32.mrf.mxu2  ;;  %v1109_v40 = vpack.c.b16 %v1093_v47, %v1093_v47  ;;  %v3503_v49 = vadd.f32 %v7408_v28, %v3414_v53 }
 0x328   : > { %v1550_v20 = vor.u32 %v1549_v3, %v1546_v10  ;;  %v7999_v10 = vpop.f32.mrf.mxu0  ;;  %v1581_v3 = vrot.slane %v1579_v60, 3  ;;  %v1584_v56 = vrot.slane %v1582_v5, 4 }
 0x329   : > { %v1147_v31 = vrot.slane %v1109_v40, 5  ;;  %v3736_v45 = vadd.f32 %v7393_v38, %v3503_v49  ;;  %v8516_v49 = vld [vmem:[#allocation9_spill] sm:$0xff] }
 0x32a   : > { %v1551_v36 = vsel %vm1164_vm8, %v1542_v14, %v1550_v20  ;;  %v1592_v14 = vrot.slane %v1590_v43, 4  ;;  %v790_v43 = vld [vmem:[#allocation2 + $0x118] sm:$0x1] }
 0x32b   : > { %v3825_v23 = vadd.f32 %v7582_v39, %v3736_v45 }
 0x32c   : > { %v1593_v51 = vor.u32 %v1592_v14, %v1589_v52  ;;  %v8514_v52 = vld [vmem:[#allocation13_spill] sm:$0xff]  ;;  %v8515_v14 = vld [vmem:[#allocation112_spill] sm:$0xff] }
 0x32f   : > { %v7961_v30 = vpop.f32.mrf.mxu2 }
 0x330   : > { %v8018_v59 = vpop.f32.mrf.mxu0 }
 0x334   : > { %3942 = vmatmul.bf16.gmra.mxu2 %v1508_v9  ;;  %v7981_v9 = vpop.f32.mrf.mxu1 }
 0x337   : > { %v7965_v15 = vpop.f32.mrf.mxu2 }
 0x338   : > { %v8034_v45 = vpop.f32.mrf.mxu0 }
 0x33c   : > { %v8004_v1 = vpop.f32.mrf.mxu1 }
 0x33f   : > { %v7970_v41 = vpop.f32.mrf.mxu2 }
 0x344   : > { %3947 = vmatmul.bf16.gmra.mxu2 %v1551_v36  ;;  %v6999_v36 = vld [vmem:[#allocation2 + $0xf8] sm:$0xff]  }
 0x345   : > { %v1146_v26 = vrot.slane %v6999_v36, 5 }
 0x347   : > { %v3908_v61 = vpop.f32.mrf.mxu2  ;;  %v1148_v5 = vsel %vm1115_vm9, %v1146_v26, %v1147_v31  ;;  %v1622_v38 = vshrl.u32 %v1146_v26, 16  ;;  %v1625_v47 = vshll.u32 %v1146_v26, 16 }
 0x348   : > { %v3909_v16 = vadd.f32 %v3908_v61, %v3820_v6  ;;  %v8014_v61 = vpop.f32.mrf.mxu3  ;;  %v1630_v53 = vshrl.u32 %v1148_v5, 16 }
 0x349   : > { %v1627_v39 = vrot.slane %v1625_v47, 4 }
 0x34a   : > { %v5617_v54 = vadd.f32 %v7887_v62, %v3909_v16  ;;  %v1585_v62 = vor.u32 %v1584_v56, %v1581_v3  ;;  %v3505_v16 = vadd.f32 %v7416_v63, %v3416_v7  ;;  %v1094_v3 = vunpack.c.l.b16 %v790_v43  ;;  %v8023_v56 = vpop.f32.mrf.mxu1  ;;  %v8518_v7 = vld [vmem:[#allocation58_spill] sm:$0xff]  ;;  %v7000_v43 = vld [vmem:[#allocation2 + $0x110] sm:$0xff]  }
 0x34c   : > { %v5653_v20 = vadd.f32 %v7989_v57, %v5617_v54  ;;  %v1594_v6 = vsel %vm1164_vm8, %v1585_v62, %v1593_v51  ;;  %v1633_v54 = vshll.u32 %v1148_v5, 16  ;;  %v3738_v63 = vadd.f32 %v8516_v49, %v3505_v16 }
 0x34d   : > { %v1110_v51 = vpack.c.b16 %v1094_v3, %v1094_v3  ;;  %v1149_v16 = vrot.slane %v7000_v43, 5 }
 0x34e   : > { %v5685_v33 = vmax.f32 %v5653_v20, 0.0  ;;  %v3419_v20 = vadd.f32 %v8515_v14, %v8514_v52 }
 0x34f   : > { %v3910_v12 = vpop.f32.mrf.mxu2 }
 0x350   : > { %5717 = vst [vmem:[%s8006_s15] sm:$0xff] %v5685_v33  ;;  %v3911_v0 = vadd.f32 %v3910_v12, %v3822_v35  ;;  %v1624_v33 = vrot.slane %v1622_v38, 3  ;;  %v1632_v35 = vrot.slane %v1630_v53, 3  ;;  %v1635_v12 = vrot.slane %v1633_v54, 4  ;;  %v8031_v26 = vpop.f32.mrf.mxu3  ;;  %v8521_v53 = vld [vmem:[#allocation10_spill] sm:$0xff] }
 0x352   : > { %v5618_v28 = vadd.f32 %v7895_v55, %v3911_v0  ;;  %v8517_v0 = vld [vmem:[#allocation12_spill] sm:$0xff] }
 0x353   : > { %v3508_v36 = vadd.f32 %v8517_v0, %v3419_v20  ;;  %v791_v20 = vld [vmem:[#allocation2 + $0x130] sm:$0x1] }
 0x354   : > { %v5654_v60 = vadd.f32 %v7989_v57, %v5618_v28  ;;  %3952 = vmatmul.bf16.gmra.mxu2 %v1594_v6  ;;  %v3827_v28 = vadd.f32 %v8518_v7, %v3738_v63  ;;  %v1628_v6 = vor.u32 %v1627_v39, %v1624_v33  ;;  %v8523_v33 = vld [vmem:[#allocation62_spill] sm:$0xff]  ;;  %v8051_v7 = vpop.f32.mrf.mxu0 }
 0x355   : > { %v3741_v54 = vadd.f32 %v8521_v53, %v3508_v36 }
 0x356   : > { %v5686_v4 = vmax.f32 %v5654_v60, 0.0  ;;  %v1636_v60 = vor.u32 %v1635_v12, %v1632_v35  ;;  %v1668_v12 = vshll.u32 %v1149_v16, 16 }
 0x357   : > { %v3913_v55 = vpop.f32.mrf.mxu2  ;;  %v3830_v39 = vadd.f32 %v8523_v33, %v3741_v54  ;;  %v8527_v54 = vld [vmem:[#allocation18_spill] sm:$0xff] }
 0x358   : > { %5718 = vst [vmem:[%s8006_s15 + $0x8] sm:$0xff] %v5686_v4  ;;  %v3914_v11 = vadd.f32 %v3913_v55, %v3825_v23  ;;  %v1150_v4 = vrot.slane %v1110_v51, 5  ;;  %v8519_v23 = vld [vmem:[#allocation16_spill] sm:$0xff]  ;;  %v8520_v55 = vld [vmem:[#allocation114_spill] sm:$0xff]  ;;  %v1637_v3 = vsel %vm1164_vm8, %v1628_v6, %v1636_v60  ;;  %v8048_v0 = vpop.f32.mrf.mxu3 }
 0x359   : > { %v3421_v38 = vadd.f32 %v8520_v55, %v8519_v23  ;;  %v1670_v23 = vrot.slane %v1668_v12, 4 }
 0x35a   : > { %v5619_v40 = vadd.f32 %v7901_v27, %v3914_v11  ;;  %v8041_v11 = vpop.f32.mrf.mxu1  ;;  %v1151_v14 = vsel %vm1115_vm9, %v1149_v16, %v1150_v4 }
 0x35b   : > { %v1676_v51 = vshll.u32 %v1151_v14, 16 }
 0x35c   : > { %v5655_v62 = vadd.f32 %v7989_v57, %v5619_v40  ;;  %v8522_v40 = vld [vmem:[#allocation15_spill] sm:$0xff] }
 0x35d   : > { %v3510_v49 = vadd.f32 %v8522_v40, %v3421_v38  ;;  %v1678_v55 = vrot.slane %v1676_v51, 4 }
 0x35e   : > { %v5687_v31 = vmax.f32 %v5655_v62, 0.0  ;;  %v1673_v62 = vshrl.u32 %v1151_v14, 16  ;;  %v8528_v14 = vld [vmem:[#allocation66_spill] sm:$0xff] }
 0x35f   : > { %v3915_v27 = vpop.f32.mrf.mxu2 }
 0x360   : > { %5719 = vst [vmem:[%s8006_s15 + $0x10] sm:$0xff] %v5687_v31  ;;  %v3916_v5 = vadd.f32 %v3915_v27, %v3827_v28  ;;  %v1095_v31 = vunpack.c.l.b16 %v791_v20  ;;  %v8524_v28 = vld [vmem:[#allocation19_spill] sm:$0xff]  ;;  %v8525_v27 = vld [vmem:[#allocation116_spill] sm:$0xff] }
 0x361   : > { %v3424_v6 = vadd.f32 %v8525_v27, %v8524_v28  ;;  %v8069_v28 = vpop.f32.mrf.mxu0 }
 0x362   : > { %v5620_v47 = vadd.f32 %v7910_v34, %v3916_v5  ;;  %v1665_v34 = vshrl.u32 %v1149_v16, 16  ;;  %v8526_v5 = vld [vmem:[#allocation11_spill] sm:$0xff]  ;;  %v1675_v16 = vrot.slane %v1673_v62, 3  ;;  %v8058_v53 = vpop.f32.mrf.mxu1  ;;  %v8065_v62 = vpop.f32.mrf.mxu3 }
 0x363   : > { %v3743_v43 = vadd.f32 %v8526_v5, %v3510_v49  ;;  %v7001_v49 = vld [vmem:[#allocation2 + $0x128] sm:$0xff]  }
 0x364   : > { %v5656_v52 = vadd.f32 %v7989_v57, %v5620_v47  ;;  %3957 = vmatmul.bf16.gmra.mxu2 %v1637_v3  ;;  %v1667_v4 = vrot.slane %v1665_v34, 3  ;;  %v1111_v47 = vpack.c.b16 %v1095_v31, %v1095_v31  ;;  %v3513_v3 = vadd.f32 %v8527_v54, %v3424_v6  ;;  %v8529_v34 = vld [vmem:[#allocation22_spill] sm:$0xff]  ;;  %v792_v6 = vld [vmem:[#allocation2 + $0x148] sm:$0x1] }
 0x365   : > { %v3832_v20 = vadd.f32 %v8528_v14, %v3743_v43  ;;  %v1679_v33 = vor.u32 %v1678_v55, %v1675_v16  ;;  %v3426_v12 = vadd.f32 %v7827_v19, %v8529_v34  ;;  %v5464_v19 = vadd.f32 %v7974_v8, %v7972_v24  ;;  %v8531_v43 = vld [vmem:[#allocation21_spill] sm:$0xff] }
 0x366   : > { %v5688_v63 = vmax.f32 %v5656_v52, 0.0  ;;  %v1096_v55 = vunpack.c.l.b16 %v792_v6  ;;  %v7002_v6 = vld [vmem:[#allocation2 + $0x140] sm:$0xff]  }
 0x367   : > { %v3918_v35 = vpop.f32.mrf.mxu2 }
 0x368   : > { %5720 = vst [vmem:[%s8006_s15 + $0x18] sm:$0xff] %v5688_v63  ;;  %v3919_v36 = vadd.f32 %v3918_v35, %v3830_v39  ;;  %v1671_v63 = vor.u32 %v1670_v23, %v1667_v4  ;;  %v1152_v39 = vrot.slane %v7001_v49, 5  ;;  %v1153_v35 = vrot.slane %v1111_v47, 5 }
 0x369   : > { %v3515_v4 = vadd.f32 %v8531_v43, %v3426_v12 }
 0x36a   : > { %v5621_v60 = vadd.f32 %v7916_v18, %v3919_v36  ;;  %v8530_v36 = vld [vmem:[#allocation14_spill] sm:$0xff]  ;;  %v1680_v27 = vsel %vm1164_vm8, %v1671_v63, %v1679_v33  ;;  %v1154_v5 = vsel %vm1115_vm9, %v1152_v39, %v1153_v35  ;;  %v1708_v54 = vshrl.u32 %v1152_v39, 16  ;;  %v8533_v63 = vld [vmem:[#allocation25_spill] sm:$0xff]  ;;  %v8534_v33 = vld [vmem:[#allocation119_spill] sm:$0xff] }
 0x36b   : > { %v3746_v31 = vadd.f32 %v8530_v36, %v3513_v3  ;;  %v1711_v3 = vshll.u32 %v1152_v39, 16  ;;  %v1719_v14 = vshll.u32 %v1154_v5, 16  ;;  %v3429_v24 = vadd.f32 %v8534_v33, %v8533_v63  ;;  %v8539_v63 = vld [vmem:[#allocation20_spill] sm:$0xff] }
 0x36c   : > { %v5657_v38 = vadd.f32 %v7989_v57, %v5621_v60  ;;  %v1112_v35 = vpack.c.b16 %v1096_v55, %v1096_v55  ;;  %v1710_v34 = vrot.slane %v1708_v54, 3 }
 0x36d   : > { %v1713_v12 = vrot.slane %v1711_v3, 4  ;;  %v1721_v36 = vrot.slane %v1719_v14, 4 }
 0x36e   : > { %v5689_v52 = vmax.f32 %v5657_v38, 0.0  ;;  %v8078_v38 = vpop.f32.mrf.mxu1 }
 0x36f   : > { %v3920_v40 = vpop.f32.mrf.mxu2 }
 0x370   : > { %5721 = vst [vmem:[%s8006_s15 + $0x20] sm:$0xff] %v5689_v52  ;;  %v3921_v18 = vadd.f32 %v3920_v40, %v3832_v20  ;;  %v1716_v52 = vshrl.u32 %v1154_v5, 16  ;;  %v5553_v20 = vadd.f32 %v7981_v9, %v5464_v19  ;;  %v5466_v9 = vadd.f32 %v7999_v10, %v7993_v50  ;;  %v793_v5 = vld [vmem:[#allocation2 + $0x160] sm:$0x1]  ;;  %v8536_v19 = vld [vmem:[#allocation24_spill] sm:$0xff] }
 0x371   : > { %v3518_v43 = vadd.f32 %v8536_v19, %v3429_v24  ;;  %v1097_v14 = vunpack.c.l.b16 %v793_v5  ;;  %v8538_v10 = vld [vmem:[#allocation28_spill] sm:$0xff] }
 0x372   : > { %v5622_v51 = vadd.f32 %v7925_v2, %v3921_v18  ;;  %v8532_v2 = vld [vmem:[#allocation70_spill] sm:$0xff]  ;;  %v8535_v18 = vld [vmem:[#allocation17_spill] sm:$0xff]  ;;  %v5555_v3 = vadd.f32 %v8004_v1, %v5466_v9 }
 0x373   : > { %v3835_v16 = vadd.f32 %v8532_v2, %v3746_v31  ;;  %v3748_v49 = vadd.f32 %v8535_v18, %v3515_v4  ;;  %v8085_v31 = vpop.f32.mrf.mxu3  ;;  %v3751_v33 = vadd.f32 %v8539_v63, %v3518_v43  ;;  %v1113_v1 = vpack.c.b16 %v1097_v14, %v1097_v14  ;;  %v8543_v14 = vld [vmem:[#allocation23_spill] sm:$0xff] }
 0x374   : > { %v5658_v60 = vadd.f32 %v7989_v57, %v5622_v51  ;;  %3962 = vmatmul.bf16.gmra.mxu2 %v1680_v27  ;;  %v1718_v51 = vrot.slane %v1716_v52, 3  ;;  %v8090_v27 = vpop.f32.mrf.mxu0  ;;  %v5471_v63 = vadd.f32 %v8034_v45, %v8031_v26  ;;  %v6656_v26 = vld [vmem:[#allocation2 + $0x1a0] sm:$0xff]  }
 0x375   : > { %v6907_v45 = vld [vmem:[#allocation2 + $0x19c] sm:$0xf0]  }
 0x376   : > { %v5690_v23 = vmax.f32 %v5658_v60, 0.0  ;;  %v1155_v60 = vrot.slane %v7002_v6, 5  ;;  %v1722_v54 = vor.u32 %v1721_v36, %v1718_v51  ;;  %v8096_v50 = vpop.f32.mrf.mxu1  ;;  %v5469_v51 = vadd.f32 %v8018_v59, %v8014_v61  ;;  %v8541_v6 = vld [vmem:[#allocation78_spill] sm:$0xff] }
 0x377   : > { %v3923_v47 = vpop.f32.mrf.mxu2  ;;  %v3840_v5 = vadd.f32 %v8541_v6, %v3751_v33 }
 0x378   : > { %5722 = vst [vmem:[%s8006_s15 + $0x28] sm:$0xff] %v5690_v23  ;;  %v3924_v40 = vadd.f32 %v3923_v47, %v3835_v16  ;;  %v8537_v23 = vld [vmem:[#allocation74_spill] sm:$0xff]  ;;  %v1156_v16 = vrot.slane %v1112_v35, 5  ;;  %v1714_v47 = vor.u32 %v1713_v12, %v1710_v34  ;;  %v1754_v35 = vshll.u32 %v1155_v60, 16 }
 0x379   : > { %v3837_v2 = vadd.f32 %v8537_v23, %v3748_v49  ;;  %v1751_v49 = vshrl.u32 %v1155_v60, 16 }
 0x37a   : > { %v5623_v8 = vadd.f32 %v5553_v20, %v3924_v40  ;;  %v3431_v20 = vadd.f32 %v7845_v25, %v8538_v10  ;;  %v1157_v24 = vsel %vm1115_vm9, %v1155_v60, %v1156_v16  ;;  %v8540_v25 = vld [vmem:[#allocation27_spill] sm:$0xff]  ;;  %v7003_v60 = vld [vmem:[#allocation2 + $0x158] sm:$0xff]   ;;  %v1159_v16 = vrot.slane %v1113_v1, 5 }
 0x37b   : > { %v1759_v34 = vshrl.u32 %v1157_v24, 16  ;;  %v1762_v12 = vshll.u32 %v1157_v24, 16 }
 0x37c   : > { %v5659_v39 = vadd.f32 %v7989_v57, %v5623_v8  ;;  %v1723_v8 = vsel %vm1164_vm8, %v1714_v47, %v1722_v54  ;;  %v3520_v36 = vadd.f32 %v8540_v25, %v3431_v20  ;;  %v8110_v19 = vpop.f32.mrf.mxu0  ;;  %v1756_v47 = vrot.slane %v1754_v35, 4  ;;  %v8542_v54 = vld [vmem:[#allocation31_spill] sm:$0xff] }
 0x37d   : > { %v1761_v61 = vrot.slane %v1759_v34, 3  ;;  %v1764_v59 = vrot.slane %v1762_v12, 4 }
 0x37e   : > { %v5691_v4 = vmax.f32 %v5659_v39, 0.0  ;;  %v8107_v39 = vpop.f32.mrf.mxu3  ;;  %v3753_v10 = vadd.f32 %v8543_v14, %v3520_v36  ;;  %v8117_v20 = vpop.f32.mrf.mxu1 }
 0x37f   : > { %v3925_v55 = vpop.f32.mrf.mxu2  ;;  %v1765_v24 = vor.u32 %v1764_v59, %v1761_v61  ;;  %v8547_v59 = vld [vmem:[#allocation26_spill] sm:$0xff] }
 0x380   : > { %5723 = vst [vmem:[%s8006_s15 + $0x30] sm:$0xff] %v5691_v4  ;;  %v3926_v52 = vadd.f32 %v3925_v55, %v3837_v2  ;;  %v5558_v4 = vadd.f32 %v8023_v56, %v5469_v51  ;;  %v1158_v2 = vrot.slane %v7003_v60, 5  ;;  %v1753_v55 = vrot.slane %v1751_v49, 3 }
 0x381   : > { %v6592_v60 = vunpack.c.h.b16 %v6656_v26 }
 0x382   : > { %v5624_v40 = vadd.f32 %v5555_v3, %v3926_v52  ;;  %v3434_v3 = vadd.f32 %v7853_v17, %v8542_v54  ;;  %v1757_v33 = vor.u32 %v1756_v47, %v1753_v55  ;;  %v8545_v17 = vld [vmem:[#allocation82_spill] sm:$0xff]  ;;  %v1797_v34 = vshll.u32 %v1158_v2, 16 }
 0x383   : > { %v3842_v35 = vadd.f32 %v8545_v17, %v3753_v10  ;;  %v8546_v55 = vld [vmem:[#allocation34_spill] sm:$0xff] }
 0x384   : > { %v5660_v18 = vadd.f32 %v7989_v57, %v5624_v40  ;;  %3967 = vmatmul.bf16.gmra.mxu2 %v1723_v8  ;;  %v1160_v40 = vsel %vm1115_vm9, %v1158_v2, %v1159_v16  ;;  %v1794_v8 = vshrl.u32 %v1158_v2, 16  ;;  %v794_v16 = vld [vmem:[#allocation2 + $0x178] sm:$0x1]  ;;  %v3436_v47 = vadd.f32 %v7858_v44, %v8546_v55 }
 0x385   : > { %v1802_v51 = vshrl.u32 %v1160_v40, 16  ;;  %v1805_v25 = vshll.u32 %v1160_v40, 16  ;;  %v8137_v54 = vrot.slane %v1797_v34, 4  ;;  %v1098_v44 = vunpack.c.l.b16 %v794_v16  ;;  %v8549_v17 = vld [vmem:[#allocation86_spill] sm:$0xff]  ;;  %v8550_v16 = vld [vmem:[#allocation37_spill] sm:$0xff] }
 0x386   : > { %v5692_v9 = vmax.f32 %v5660_v18, 0.0  ;;  %v8544_v18 = vld [vmem:[#allocation30_spill] sm:$0xff]  ;;  %v8125_v36 = vpop.f32.mrf.mxu3  ;;  %v3439_v55 = vadd.f32 %v7866_v22, %v8550_v16  ;;  %v5476_v22 = vadd.f32 %v8069_v28, %v8065_v62 }
 0x387   : > { %v3928_v43 = vpop.f32.mrf.mxu2  ;;  %v3523_v1 = vadd.f32 %v8544_v18, %v3434_v3  ;;  %v5474_v3 = vadd.f32 %v8051_v7, %v8048_v0  ;;  %v8142_v40 = vrot.slane %v1802_v51, 3 }
 0x388   : > { %5724 = vst [vmem:[%s8006_s15 + $0x38] sm:$0xff] %v5692_v9  ;;  %v3929_v23 = vadd.f32 %v3928_v43, %v3840_v5  ;;  %v5560_v9 = vadd.f32 %v8041_v11, %v5471_v63  ;;  %v6847_v5 = vld [vmem:[#allocation2 + $0x19c] sm:$0x8]  ;;  %v8129_v43 = vpop.f32.mrf.mxu0  ;;  %v8144_v63 = vrot.slane %v1805_v25, 4  ;;  %v5565_v62 = vadd.f32 %v8078_v38, %v5476_v22 }
 0x389   : > { %v6848_v2 = vor.u32 %v6907_v45, %v6847_v5  ;;  %v3756_v11 = vadd.f32 %v8547_v59, %v3523_v1  ;;  %v4318_v45 = vshrl.u32 %v6656_v26, 16  ;;  %v1114_v59 = vpack.c.b16 %v1098_v44, %v1098_v44 }
 0x38a   : > { %v5625_v52 = vadd.f32 %v5558_v4, %v3929_v23  ;;  %v1766_v4 = vsel %vm1164_vm8, %v1757_v33, %v1765_v24  ;;  %v8132_v23 = vrot.slane %v1794_v8, 3  ;;  %v8146_v33 = vpop.f32.mrf.mxu1  ;;  %v1808_v44 = vor.u32 %v8144_v63, %v8142_v40 }
 0x38b   : > { %v5067_v14 = vshrl.u32 %v6848_v2, 16  ;;  %v5070_v10 = vshll.u32 %v6848_v2, 16  ;;  %v4418_v2 = vrot.slane %v6656_v26, 5 }
 0x38c   : > { %v5661_v56 = vadd.f32 %v7989_v57, %v5625_v52  ;;  %v4180_v52 = vpack.c.b16 %v6592_v60, %v6592_v60  ;;  %v1800_v34 = vor.u32 %v8137_v54, %v8132_v23  ;;  %v4052_v60 = vld [vmem:[#allocation2 + $0x1a8] sm:$0x1] }
 0x38d   : > { %v5069_v24 = vrot.slane %v5067_v14, 3  ;;  %v5072_v8 = vrot.slane %v5070_v10, 4 }
 0x38e   : > { %v5693_v49 = vmax.f32 %v5661_v56, 0.0  ;;  %v5075_v18 = vshrl.u32 %v4180_v52, 16  ;;  %v5078_v1 = vshll.u32 %v4180_v52, 16 }
 0x38f   : > { %v3930_v12 = vpop.f32.mrf.mxu2  ;;  %v5073_v25 = vor.u32 %v5072_v8, %v5069_v24  ;;  %v5093_v24 = vshrl.u32 %v4418_v2, 16 }
 0x390   : > { %5725 = vst [vmem:[%s8006_s15 + $0x40] sm:$0xff] %v5693_v49  ;;  %v3931_v6 = vadd.f32 %v3930_v12, %v3842_v35  ;;  %v8548_v49 = vld [vmem:[#allocation33_spill] sm:$0xff]  ;;  %v3845_v35 = vadd.f32 %v8549_v17, %v3756_v11  ;;  %v5563_v12 = vadd.f32 %v8058_v53, %v5474_v3  ;;  %v8156_v11 = vpop.f32.mrf.mxu3  ;;  %v4320_v3 = vrot.slane %v4318_v45, 4  ;;  %v8159_v14 = vpop.f32.mrf.mxu0 }
 0x391   : > { %v3525_v0 = vadd.f32 %v8548_v49, %v3436_v47  ;;  %v8551_v53 = vld [vmem:[#allocation29_spill] sm:$0xff]  ;;  %v5095_v63 = vrot.slane %v5093_v24, 3 }
 0x392   : > { %v5626_v61 = vadd.f32 %v5560_v9, %v3931_v6  ;;  %v5077_v9 = vrot.slane %v5075_v18, 3  ;;  %v5080_v6 = vrot.slane %v5078_v1, 4  ;;  %v8552_v1 = vld [vmem:[#allocation36_spill] sm:$0xff]  ;;  %v8170_v28 = vpop.f32.mrf.mxu1 }
 0x393   : > { %v3758_v54 = vadd.f32 %v8551_v53, %v3525_v0  ;;  %v3528_v49 = vadd.f32 %v8552_v1, %v3439_v55 }
 0x394   : > { %v5662_v56 = vadd.f32 %v7989_v57, %v5626_v61  ;;  %3972 = vmatmul.bf16.gmra.mxu2 %v1766_v4  ;;  %v4321_v4 = vshll.u32 %v6656_v26, 16  ;;  %v5081_v47 = vor.u32 %v5080_v6, %v5077_v9  ;;  %v4356_v61 = vunpack.c.l.b16 %v4052_v60 }
 0x395   : > { %v5096_v26 = vshll.u32 %v4418_v2, 16 }
 0x396   : > { %v5694_v7 = vmax.f32 %v5662_v56, 0.0  ;;  %v4323_v52 = vrot.slane %v4321_v4, 5  ;;  %v5082_v10 = vsel %vm1164_vm8, %v5073_v25, %v5081_v47  ;;  %v4372_v56 = vpack.c.b16 %v4356_v61, %v4356_v61  ;;  %v8554_v47 = vld [vmem:[#allocation40_spill] sm:$0xff]  ;;  %v8555_v61 = vld [vmem:[#allocation125_spill] sm:$0xff] }
 0x397   : > { %v3933_v51 = vpop.f32.mrf.mxu2  ;;  %5433 = vmatmul.bf16.gmra.mxu3 %v5082_v10  ;;  %v5098_v45 = vrot.slane %v5096_v26, 4  ;;  %v1809_v10 = vsel %vm1164_vm8, %v1800_v34, %v1808_v44 }
 0x398   : > { %5726 = vst [vmem:[%s8006_s15 + $0x48] sm:$0xff] %v5694_v7  ;;  %v3934_v5 = vadd.f32 %v3933_v51, %v3845_v35  ;;  %v4324_v18 = vor.u32 %v4323_v52, %v4320_v3  ;;  %v4419_v0 = vrot.slane %v4372_v56, 5  ;;  %v7004_v7 = vld [vmem:[#allocation2 + $0x170] sm:$0xff]   ;;  %v1162_v35 = vrot.slane %v1114_v59, 5  ;;  %v8553_v51 = vld [vmem:[#allocation90_spill] sm:$0xff]  ;;  %v8178_v24 = vpop.f32.mrf.mxu3 }
 0x399   : > { %v1161_v17 = vrot.slane %v7004_v7, 5  ;;  %v3847_v25 = vadd.f32 %v8553_v51, %v3758_v54  ;;  %v3441_v59 = vadd.f32 %v8555_v61, %v8554_v47  ;;  %v8556_v54 = vld [vmem:[#allocation32_spill] sm:$0xff]  ;;  %v5099_v56 = vor.u32 %v5098_v45, %v5095_v63  ;;  %v8558_v7 = vld [vmem:[#allocation94_spill] sm:$0xff]  ;;  %v8559_v63 = vld [vmem:[#allocation43_spill] sm:$0xff] }
 0x39a   : > { %v5627_v23 = vadd.f32 %v5563_v12, %v3934_v5  ;;  %v5084_v9 = vshrl.u32 %v4324_v18, 16  ;;  %v5087_v6 = vshll.u32 %v4324_v18, 16  ;;  %v4420_v40 = vsel %vm1115_vm9, %v4418_v2, %v4419_v0  ;;  %v8557_v0 = vld [vmem:[#allocation39_spill] sm:$0xff] }
 0x39b   : > { %v5101_v55 = vshrl.u32 %v4420_v40, 16  ;;  %v3761_v3 = vadd.f32 %v8556_v54, %v3528_v49  ;;  %v1163_v22 = vsel %vm1115_vm9, %v1161_v17, %v1162_v35  ;;  %v1837_v1 = vshrl.u32 %v1161_v17, 16 }
 0x39c   : > { %v5663_v8 = vadd.f32 %v7989_v57, %v5627_v23  ;;  %v5086_v60 = vrot.slane %v5084_v9, 3  ;;  %v5089_v16 = vrot.slane %v5087_v6, 4  ;;  %v5104_v23 = vshll.u32 %v4420_v40, 16  ;;  %v8191_v40 = vpop.f32.mrf.mxu1 }
 0x39d   : > { %v5103_v52 = vrot.slane %v5101_v55, 3  ;;  %v5479_v49 = vadd.f32 %v8090_v27, %v8085_v31  ;;  %v3530_v34 = vadd.f32 %v8557_v0, %v3441_v59  ;;  %v1840_v9 = vshll.u32 %v1161_v17, 16  ;;  %v8560_v31 = vld [vmem:[#allocation127_spill] sm:$0xff]  ;;  %v8562_v59 = vld [vmem:[#allocation42_spill] sm:$0xff] }
 0x39e   : > { %v5695_v12 = vmax.f32 %v5663_v8, 0.0  ;;  %v5090_v38 = vor.u32 %v5089_v16, %v5086_v60  ;;  %v5106_v2 = vrot.slane %v5104_v23, 4  ;;  %v8182_v8 = vpop.f32.mrf.mxu0  ;;  %v1845_v6 = vshrl.u32 %v1163_v22, 16 }
 0x39f   : > { %v3935_v5 = vpop.f32.mrf.mxu2  ;;  %v5568_v35 = vadd.f32 %v8096_v50, %v5479_v49  ;;  %v3444_v27 = vadd.f32 %v8560_v31, %v8559_v63  ;;  %v1839_v16 = vrot.slane %v1837_v1, 3  ;;  %v1842_v55 = vrot.slane %v1840_v9, 4  ;;  %v8568_v63 = vld [vmem:[#allocation50_spill] sm:$0xff] }
 0x3a0   : > { %5727 = vst [vmem:[%s8006_s15 + $0x50] sm:$0xff] %v5695_v12  ;;  %v3936_v4 = vadd.f32 %v3935_v5, %v3847_v25  ;;  %5522 = vmatmul.bf16.gmra.mxu0 %v5090_v38  ;;  %v5107_v18 = vor.u32 %v5106_v2, %v5103_v52  ;;  %v3850_v12 = vadd.f32 %v8558_v7, %v3761_v3  ;;  %v1847_v47 = vrot.slane %v1845_v6, 3  ;;  %v8563_v3 = vld [vmem:[#allocation98_spill] sm:$0xff] }
 0x3a1   : > { %v5481_v50 = vadd.f32 %v8110_v19, %v8107_v39  ;;  %v3533_v23 = vadd.f32 %v8562_v59, %v3444_v27  ;;  %v8565_v39 = vld [vmem:[#allocation38_spill] sm:$0xff]  ;;  %v5484_v7 = vadd.f32 %v8129_v43, %v8125_v36  ;;  %v3449_v31 = vadd.f32 %v7892_v46, %v8568_v63  ;;  %v8572_v59 = vld [vmem:[#allocation53_spill] sm:$0xff] }
 0x3a2   : > { %v5628_v53 = vadd.f32 %v5565_v62, %v3936_v4  ;;  %v5108_v25 = vsel %vm1164_vm8, %v5099_v56, %v5107_v18  ;;  %v1848_v62 = vshll.u32 %v1163_v22, 16  ;;  %v8561_v4 = vld [vmem:[#allocation35_spill] sm:$0xff]  ;;  %v1843_v56 = vor.u32 %v1842_v55, %v1839_v16  ;;  %v8564_v18 = vld [vmem:[#allocation46_spill] sm:$0xff]  ;;  %v8570_v16 = vld [vmem:[#allocation48_spill] sm:$0xff] }
 0x3a3   : > { %5611 = vmatmul.bf16.gmra.mxu1 %v5108_v25  ;;  %v3763_v60 = vadd.f32 %v8561_v4, %v3530_v34  ;;  %v3446_v1 = vadd.f32 %v7882_v29, %v8564_v18  ;;  %v3766_v19 = vadd.f32 %v8565_v39, %v3533_v23  ;;  %v8567_v25 = vld [vmem:[#allocation102_spill] sm:$0xff]  ;;  %v5573_v29 = vadd.f32 %v8146_v33, %v5484_v7 }
 0x3a4   : > { %v5664_v26 = vadd.f32 %v7989_v57, %v5628_v53  ;;  %3977 = vmatmul.bf16.gmra.mxu2 %v1809_v10  ;;  %v1850_v17 = vrot.slane %v1848_v62, 4  ;;  %v5401_v53 = vpop.f32.mrf.mxu3  ;;  %v5579_v0 = vpop.f32.mrf.mxu1  ;;  %v3538_v55 = vadd.f32 %v8570_v16, %v3449_v31  ;;  %v3451_v23 = vadd.f32 %v7897_v58, %v8572_v59  ;;  %v8582_v16 = vld [vmem:[#allocation49_spill] sm:$0xff] }
 0x3a5   : > { %v3852_v38 = vadd.f32 %v8563_v3, %v3763_v60  ;;  %v3855_v9 = vadd.f32 %v8567_v25, %v3766_v19  ;;  %v5486_v60 = vadd.f32 %v8159_v14, %v8156_v11  ;;  %v5489_v14 = vadd.f32 %v8182_v8, %v8178_v24  ;;  %v8576_v19 = vld [vmem:[#allocation56_spill] sm:$0xff] }
 0x3a6   : > { %v5696_v44 = vmax.f32 %v5664_v26, 0.0  ;;  %v5490_v52 = vpop.f32.mrf.mxu0  ;;  %v1851_v2 = vor.u32 %v1850_v17, %v1847_v47  ;;  %v5570_v26 = vadd.f32 %v8117_v20, %v5481_v50  ;;  %v8571_v17 = vld [vmem:[#allocation105_spill] sm:$0xff] }
 0x3a7   : > { %v3938_v51 = vpop.f32.mrf.mxu2  ;;  %v5575_v50 = vadd.f32 %v8170_v28, %v5486_v60  ;;  %v8575_v28 = vld [vmem:[#allocation107_spill] sm:$0xff]  ;;  %v5578_v58 = vadd.f32 %v8191_v40, %v5489_v14  ;;  %v5491_v25 = vadd.f32 %v5490_v52, %v5401_v53  ;;  %v8583_v52 = vld [vmem:[#allocation57_spill] sm:$0xff]  ;;  %v8587_v14 = vld [vmem:[#allocation52_spill] sm:$0xff] }
 0x3a8   : > { %5728 = vst [vmem:[%s8006_s15 + $0x58] sm:$0xff] %v5696_v44  ;;  %v3939_v5 = vadd.f32 %v3938_v51, %v3850_v12  ;;  %v1852_v34 = vsel %vm1164_vm8, %v1843_v56, %v1851_v2  ;;  %v8566_v12 = vld [vmem:[#allocation45_spill] sm:$0xff]  ;;  %v8574_v2 = vld [vmem:[#allocation51_spill] sm:$0xff] }
 0x3a9   : > { %v3535_v20 = vadd.f32 %v8566_v12, %v3446_v1  ;;  %v8578_v12 = vld [vmem:[#allocation47_spill] sm:$0xff]  ;;  %v5580_v40 = vadd.f32 %v5579_v0, %v5491_v25 }
 0x3aa   : > { %v5629_v45 = vadd.f32 %v5568_v35, %v3939_v5  ;;  %v8592_v25 = vld [vmem:[#allocation55_spill] sm:$0xff] }
 0x3ac   : > { %v5665_v61 = vadd.f32 %v7989_v57, %v5629_v45  ;;  %v5404_v62 = vpop.f32.mrf.mxu3  ;;  %v8569_v45 = vld [vmem:[#allocation41_spill] sm:$0xff]  ;;  %v5582_v43 = vpop.f32.mrf.mxu1 }
 0x3ad   : > { %v3768_v4 = vadd.f32 %v8569_v45, %v3535_v20 }
 0x3ae   : > { %v5697_v54 = vmax.f32 %v5665_v61, 0.0  ;;  %v5493_v5 = vpop.f32.mrf.mxu0 }
 0x3af   : > { %v3940_v10 = vpop.f32.mrf.mxu2  ;;  %v3857_v33 = vadd.f32 %v8571_v17, %v3768_v4  ;;  %v8581_v4 = vld [vmem:[#allocation60_spill] sm:$0xff]  ;;  %v5494_v53 = vadd.f32 %v5493_v5, %v5404_v62 }
 0x3b0   : > { %5729 = vst [vmem:[%s8006_s15 + $0x60] sm:$0xff] %v5697_v54  ;;  %v3941_v22 = vadd.f32 %v3940_v10, %v3852_v38  ;;  %v8573_v38 = vld [vmem:[#allocation44_spill] sm:$0xff] }
 0x3b1   : > { %v3771_v10 = vadd.f32 %v8573_v38, %v3538_v55  ;;  %v8585_v38 = vld [vmem:[#allocation64_spill] sm:$0xff] }
 0x3b2   : > { %v5630_v49 = vadd.f32 %v5570_v26, %v3941_v22  ;;  %v3540_v26 = vadd.f32 %v8574_v2, %v3451_v23  ;;  %v5583_v23 = vadd.f32 %v5582_v43, %v5494_v53  ;;  %v8597_v53 = vld [vmem:[#allocation59_spill] sm:$0xff] }
 0x3b3   : > { %v3860_v18 = vadd.f32 %v8575_v28, %v3771_v10 }
 0x3b4   : > { %v5666_v44 = vadd.f32 %v7989_v57, %v5630_v49  ;;  %3982 = vmatmul.bf16.gmra.mxu2 %v1852_v34  ;;  %v5406_v54 = vpop.f32.mrf.mxu3  ;;  %v5584_v1 = vpop.f32.mrf.mxu1  ;;  %v8577_v34 = vld [vmem:[#allocation129_spill] sm:$0xff]  ;;  %v3773_v20 = vadd.f32 %v8578_v12, %v3540_v26  ;;  %v8591_v12 = vld [vmem:[#allocation131_spill] sm:$0xff] }
 0x3b6   : > { %v5698_v51 = vmax.f32 %v5666_v44, 0.0  ;;  %v5495_v56 = vpop.f32.mrf.mxu0  ;;  %v3454_v44 = vadd.f32 %v8577_v34, %v8576_v19 }
 0x3b7   : > { %v3943_v6 = vpop.f32.mrf.mxu2  ;;  %v5496_v5 = vadd.f32 %v5495_v56, %v5406_v54 }
 0x3b8   : > { %5730 = vst [vmem:[%s8006_s15 + $0x68] sm:$0xff] %v5698_v51  ;;  %v3944_v35 = vadd.f32 %v3943_v6, %v3855_v9  ;;  %v8579_v9 = vld [vmem:[#allocation54_spill] sm:$0xff] }
 0x3b9   : > { %v3543_v6 = vadd.f32 %v8579_v9, %v3454_v44  ;;  %v5585_v43 = vadd.f32 %v5584_v1, %v5496_v5 }
 0x3ba   : > { %v5631_v27 = vadd.f32 %v5573_v29, %v3944_v35  ;;  %v8580_v35 = vld [vmem:[#allocation108_spill] sm:$0xff] }
 0x3bb   : > { %v3862_v63 = vadd.f32 %v8580_v35, %v3773_v20  ;;  %v3776_v55 = vadd.f32 %v8582_v16, %v3543_v6 }
 0x3bc   : > { %v5667_v36 = vadd.f32 %v7989_v57, %v5631_v27  ;;  %v5409_v51 = vpop.f32.mrf.mxu3  ;;  %v5587_v45 = vpop.f32.mrf.mxu1 }
 0x3be   : > { %v5699_v47 = vmax.f32 %v5667_v36, 0.0  ;;  %v5498_v8 = vpop.f32.mrf.mxu0  ;;  %v3456_v36 = vadd.f32 %v7912_v32, %v8581_v4  ;;  %v8586_v32 = vld [vmem:[#allocation130_spill] sm:$0xff] }
 0x3bf   : > { %v3945_v61 = vpop.f32.mrf.mxu2  ;;  %v3459_v10 = vadd.f32 %v8586_v32, %v8585_v38  ;;  %v5499_v6 = vadd.f32 %v5498_v8, %v5409_v51 }
 0x3c0   : > { %5731 = vst [vmem:[%s8006_s15 + $0x70] sm:$0xff] %v5699_v47  ;;  %v3946_v46 = vadd.f32 %v3945_v61, %v3857_v33  ;;  %v3545_v17 = vadd.f32 %v8583_v52, %v3456_v36  ;;  %v8595_v36 = vld [vmem:[#allocation72_spill] sm:$0xff] }
 0x3c1   : > { %v5588_v1 = vadd.f32 %v5587_v45, %v5499_v6 }
 0x3c2   : > { %v5632_v3 = vadd.f32 %v5575_v50, %v3946_v46  ;;  %v8584_v50 = vld [vmem:[#allocation109_spill] sm:$0xff]  ;;  %v3778_v2 = vadd.f32 %v8587_v14, %v3545_v17 }
 0x3c3   : > { %v3865_v46 = vadd.f32 %v8584_v50, %v3776_v55 }
 0x3c4   : > { %v5668_v11 = vadd.f32 %v7989_v57, %v5632_v3  ;;  %v5411_v33 = vpop.f32.mrf.mxu3  ;;  %v5589_v26 = vpop.f32.mrf.mxu1 }
 0x3c6   : > { %v5700_v22 = vmax.f32 %v5668_v11, 0.0  ;;  %v5500_v0 = vpop.f32.mrf.mxu0 }
 0x3c7   : > { %v3948_v49 = vpop.f32.mrf.mxu2  ;;  %v5501_v8 = vadd.f32 %v5500_v0, %v5411_v33 }
 0x3c8   : > { %5732 = vst [vmem:[%s8006_s15 + $0x78] sm:$0xff] %v5700_v22  ;;  %v3949_v39 = vadd.f32 %v3948_v49, %v3860_v18  ;;  %v8588_v22 = vld [vmem:[#allocation61_spill] sm:$0xff]  ;;  %v8589_v49 = vld [vmem:[#allocation110_spill] sm:$0xff] }
 0x3c9   : > { %v3548_v28 = vadd.f32 %v8588_v22, %v3459_v10  ;;  %v5590_v38 = vadd.f32 %v5589_v26, %v5501_v8  ;;  %v8600_v10 = vld [vmem:[#allocation76_spill] sm:$0xff] }
 0x3ca   : > { %v5633_v7 = vadd.f32 %v5578_v58, %v3949_v39  ;;  %v3867_v58 = vadd.f32 %v8589_v49, %v3778_v2  ;;  %v8601_v2 = vld [vmem:[#allocation63_spill] sm:$0xff] }
 0x3cb   : > { %v3781_v9 = vadd.f32 %v8592_v25, %v3548_v28  ;;  %v8602_v28 = vld [vmem:[#allocation73_spill] sm:$0xff]  ;;  %v8606_v25 = vld [vmem:[#allocation67_spill] sm:$0xff] }
 0x3cc   : > { %v5669_v24 = vadd.f32 %v7989_v57, %v5633_v7  ;;  %v5414_v19 = vpop.f32.mrf.mxu3  ;;  %v8590_v7 = vld [vmem:[#allocation68_spill] sm:$0xff]  ;;  %v5592_v56 = vpop.f32.mrf.mxu1 }
 0x3cd   : > { %v3461_v20 = vadd.f32 %v8591_v12, %v8590_v7  ;;  %v8605_v12 = vld [vmem:[#allocation133_spill] sm:$0xff] }
 0x3ce   : > { %v5701_v29 = vmax.f32 %v5669_v24, 0.0  ;;  %v5503_v44 = vpop.f32.mrf.mxu0 }
 0x3cf   : > { %v3950_v31 = vpop.f32.mrf.mxu2  ;;  %v5504_v22 = vadd.f32 %v5503_v44, %v5414_v19  ;;  %v8607_v44 = vld [vmem:[#allocation77_spill] sm:$0xff] }
 0x3d0   : > { %5733 = vst [vmem:[%s8006_s15 + $0x80] sm:$0xff] %v5701_v29  ;;  %v3951_v27 = vadd.f32 %v3950_v31, %v3862_v63  ;;  %v8593_v29 = vld [vmem:[#allocation65_spill] sm:$0xff]  ;;  %v8594_v31 = vld [vmem:[#allocation111_spill] sm:$0xff] }
 0x3d1   : > { %v3550_v35 = vadd.f32 %v8593_v29, %v3461_v20  ;;  %v5593_v26 = vadd.f32 %v5592_v56, %v5504_v22  ;;  %v8616_v22 = vld [vmem:[#allocation120_spill] sm:$0xff] }
 0x3d2   : > { %v5634_v60 = vadd.f32 %v5580_v40, %v3951_v27  ;;  %v3870_v40 = vadd.f32 %v8594_v31, %v3781_v9 }
 0x3d3   : > { %v3783_v52 = vadd.f32 %v8597_v53, %v3550_v35 }
 0x3d4   : > { %v5670_v47 = vadd.f32 %v7989_v57, %v5634_v60  ;;  %v8596_v60 = vld [vmem:[#allocation132_spill] sm:$0xff]  ;;  %v5416_v55 = vpop.f32.mrf.mxu3  ;;  %v5594_v45 = vpop.f32.mrf.mxu1 }
 0x3d5   : > { %v3464_v16 = vadd.f32 %v8596_v60, %v8595_v36 }
 0x3d6   : > { %v5702_v61 = vmax.f32 %v5670_v47, 0.0  ;;  %v5505_v17 = vpop.f32.mrf.mxu0 }
 0x3d7   : > { %v3953_v59 = vpop.f32.mrf.mxu2  ;;  %v5506_v19 = vadd.f32 %v5505_v17, %v5416_v55  ;;  %v8611_v17 = vld [vmem:[#allocation81_spill] sm:$0xff] }
 0x3d8   : > { %5734 = vst [vmem:[%s8006_s15 + $0x88] sm:$0xff] %v5702_v61  ;;  %v3954_v3 = vadd.f32 %v3953_v59, %v3865_v46  ;;  %v8598_v61 = vld [vmem:[#allocation69_spill] sm:$0xff] }
 0x3d9   : > { %v3553_v50 = vadd.f32 %v8598_v61, %v3464_v16  ;;  %v8599_v59 = vld [vmem:[#allocation113_spill] sm:$0xff]  ;;  %v8610_v16 = vld [vmem:[#allocation71_spill] sm:$0xff]  ;;  %v8612_v61 = vld [vmem:[#allocation118_spill] sm:$0xff] }
 0x3da   : > { %v5635_v11 = vadd.f32 %v5583_v23, %v3954_v3  ;;  %v3872_v23 = vadd.f32 %v8599_v59, %v3783_v52 }
 0x3dc   : > { %v5671_v62 = vadd.f32 %v7989_v57, %v5635_v11  ;;  %v3466_v11 = vadd.f32 %v7936_v42, %v8600_v10  ;;  %v5419_v5 = vpop.f32.mrf.mxu3  ;;  %v5597_v7 = vpop.f32.mrf.mxu1  ;;  %v8604_v42 = vld [vmem:[#allocation80_spill] sm:$0xff]  ;;  %v8614_v10 = vld [vmem:[#allocation75_spill] sm:$0xff] }
 0x3dd   : > { %v3469_v20 = vadd.f32 %v8605_v12, %v8604_v42  ;;  %v8303_v42 = vld [vmem:[%s8381_s4] ss:$0 sm:$0xff] }
 0x3de   : > { %v5703_v18 = vmax.f32 %v5671_v62, 0.0  ;;  %v3786_v62 = vadd.f32 %v8601_v2, %v3553_v50  ;;  %v5508_v0 = vpop.f32.mrf.mxu0 }
 0x3df   : > { %v3955_v39 = vpop.f32.mrf.mxu2  ;;  %v3558_v6 = vadd.f32 %v8607_v44, %v3469_v20  ;;  %v5509_v52 = vadd.f32 %v5508_v0, %v5419_v5  ;;  %v8615_v5 = vld [vmem:[#allocation85_spill] sm:$0xff] }
 0x3e0   : > { %5735 = vst [vmem:[%s8006_s15 + $0x90] sm:$0xff] %v5703_v18  ;;  %v3956_v34 = vadd.f32 %v3955_v39, %v3867_v58  ;;  %v3555_v18 = vadd.f32 %v8602_v28, %v3466_v11  ;;  %v8603_v58 = vld [vmem:[#allocation115_spill] sm:$0xff] }
 0x3e1   : > { %v3875_v39 = vadd.f32 %v8603_v58, %v3786_v62 }
 0x3e2   : > { %v5636_v24 = vadd.f32 %v5585_v43, %v3956_v34  ;;  %v3788_v9 = vadd.f32 %v8606_v25, %v3555_v18 }
 0x3e4   : > { %v5672_v54 = vadd.f32 %v7989_v57, %v5636_v24  ;;  %v5421_v29 = vpop.f32.mrf.mxu3  ;;  %v5599_v53 = vpop.f32.mrf.mxu1 }
 0x3e6   : > { %v5704_v63 = vmax.f32 %v5672_v54, 0.0  ;;  %v5510_v56 = vpop.f32.mrf.mxu0 }
 0x3e7   : > { %v3958_v27 = vpop.f32.mrf.mxu2  ;;  %v5511_v62 = vadd.f32 %v5510_v56, %v5421_v29  ;;  %v8622_v56 = vld [vmem:[#allocation83_spill] sm:$0xff] }
 0x3e8   : > { %5736 = vst [vmem:[%s8006_s15 + $0x98] sm:$0xff] %v5704_v63  ;;  %v3959_v4 = vadd.f32 %v3958_v27, %v3870_v40  ;;  %v8608_v63 = vld [vmem:[#allocation117_spill] sm:$0xff]  ;;  %v5595_v27 = vadd.f32 %v5594_v45, %v5506_v19 }
 0x3e9   : > { %v3877_v31 = vadd.f32 %v8608_v63, %v3788_v9 }
 0x3ea   : > { %v5637_v47 = vadd.f32 %v5588_v1, %v3959_v4  ;;  %v8609_v4 = vld [vmem:[#allocation84_spill] sm:$0xff] }
 0x3eb   : > { %v3471_v36 = vadd.f32 %v7945_v21, %v8609_v4  ;;  %v8613_v21 = vld [vmem:[#allocation88_spill] sm:$0xff] }
 0x3ec   : > { %v5673_v51 = vadd.f32 %v7989_v57, %v5637_v47  ;;  %v3791_v47 = vadd.f32 %v8610_v16, %v3558_v6  ;;  %v5424_v59 = vpop.f32.mrf.mxu3  ;;  %v5602_v2 = vpop.f32.mrf.mxu1 }
 0x3ee   : > { %v5705_v46 = vmax.f32 %v5673_v51, 0.0  ;;  %v3560_v51 = vadd.f32 %v8611_v17, %v3471_v36  ;;  %v3880_v50 = vadd.f32 %v8612_v61, %v3791_v47 }
 0x3ef   : > { %v3960_v3 = vpop.f32.mrf.mxu2 }
 0x3f0   : > { %5737 = vst [vmem:[%s8006_s15 + $0xa0] sm:$0xff] %v5705_v46  ;;  %v3961_v32 = vadd.f32 %v3960_v3, %v3872_v23  ;;  %v5598_v23 = vadd.f32 %v5597_v7, %v5509_v52  ;;  %v5513_v3 = vpop.f32.mrf.mxu0  ;;  %v3793_v11 = vadd.f32 %v8614_v10, %v3560_v51  ;;  %v8628_v10 = vld [vmem:[#allocation123_spill] sm:$0xff] }
 0x3f1   : > { %v5514_v20 = vadd.f32 %v5513_v3, %v5424_v59 }
 0x3f2   : > { %v5638_v14 = vadd.f32 %v5590_v38, %v3961_v32  ;;  %v3474_v38 = vadd.f32 %v7952_v48, %v8613_v21  ;;  %v3882_v28 = vadd.f32 %v8616_v22, %v3793_v11  ;;  %v8627_v21 = vld [vmem:[#allocation97_spill] sm:$0xff]  ;;  %v8630_v22 = vld [vmem:[#allocation91_spill] sm:$0xff] }
 0x3f4   : > { %v5674_v33 = vadd.f32 %v7989_v57, %v5638_v14  ;;  %v5604_v44 = vpop.f32.mrf.mxu1 }
 0x3f6   : > { %v5706_v49 = vmax.f32 %v5674_v33, 0.0  ;;  %v3563_v33 = vadd.f32 %v8615_v5, %v3474_v38 }
 0x3f7   : > { %v3963_v43 = vpop.f32.mrf.mxu2 }
 0x3f8   : > { %5738 = vst [vmem:[%s8006_s15 + $0xa8] sm:$0xff] %v5706_v49  ;;  %v3964_v34 = vadd.f32 %v3963_v43, %v3875_v39  ;;  %v5600_v49 = vadd.f32 %v5599_v53, %v5511_v62  ;;  %v5426_v39 = vpop.f32.mrf.mxu3  ;;  %v8617_v43 = vld [vmem:[#allocation92_spill] sm:$0xff]  ;;  %v8624_v53 = vld [vmem:[#allocation122_spill] sm:$0xff] }
 0x3f9   : > { %v3476_v48 = vadd.f32 %v7954_v37, %v8617_v43  ;;  %v5603_v37 = vadd.f32 %v5602_v2, %v5514_v20 }
 0x3fa   : > { %v5639_v24 = vadd.f32 %v5593_v26, %v3964_v34  ;;  %v8618_v34 = vld [vmem:[#allocation79_spill] sm:$0xff] }
 0x3fb   : > { %v3796_v7 = vadd.f32 %v8618_v34, %v3563_v33  ;;  %v8629_v33 = vld [vmem:[#allocation103_spill] sm:$0xff]  ;;  %v8632_v34 = vld [vmem:[#allocation124_spill] sm:$0xff] }
 0x3fc   : > { %v5675_v54 = vadd.f32 %v7989_v57, %v5639_v24  ;;  %v8619_v24 = vld [vmem:[#allocation89_spill] sm:$0xff] }
 0x3fd   : > { %v3565_v25 = vadd.f32 %v8619_v24, %v3476_v48 }
 0x3fe   : > { %v5707_v35 = vmax.f32 %v5675_v54, 0.0  ;;  %v8620_v54 = vld [vmem:[#allocation121_spill] sm:$0xff] }
 0x3ff   : > { %v3965_v40 = vpop.f32.mrf.mxu2  ;;  %v3885_v19 = vadd.f32 %v8620_v54, %v3796_v7 }
 0x400   : > { %5739 = vst [vmem:[%s8006_s15 + $0xb0] sm:$0xff] %v5707_v35  ;;  %v3966_v1 = vadd.f32 %v3965_v40, %v3877_v31  ;;  %v8621_v35 = vld [vmem:[#allocation96_spill] sm:$0xff]  ;;  %v3798_v40 = vadd.f32 %v8622_v56, %v3565_v25  ;;  %v8636_v56 = vld [vmem:[#allocation126_spill] sm:$0xff] }
 0x401   : > { %v3479_v63 = vadd.f32 %v7959_v13, %v8621_v35  ;;  %v8625_v13 = vld [vmem:[#allocation100_spill] sm:$0xff] }
 0x402   : > { %v5640_v60 = vadd.f32 %v5595_v27, %v3966_v1  ;;  %v5429_v27 = vpop.f32.mrf.mxu3  ;;  %v3481_v61 = vadd.f32 %v7961_v30, %v8625_v13  ;;  %v3484_v30 = vadd.f32 %v7965_v15, %v8629_v33  ;;  %v8633_v15 = vld [vmem:[#allocation106_spill] sm:$0xff] }
 0x403   : > { %v3486_v25 = vadd.f32 %v7970_v41, %v8633_v15 }
 0x404   : > { %v5676_v55 = vadd.f32 %v7989_v57, %v5640_v60  ;;  %v8623_v60 = vld [vmem:[#allocation93_spill] sm:$0xff]  ;;  %v3570_v38 = vadd.f32 %v8627_v21, %v3481_v61 }
 0x405   : > { %v3568_v16 = vadd.f32 %v8623_v60, %v3479_v63  ;;  %v8637_v60 = vld [vmem:[#allocation99_spill] sm:$0xff] }
 0x406   : > { %v5708_v8 = vmax.f32 %v5676_v55, 0.0  ;;  %v3887_v55 = vadd.f32 %v8624_v53, %v3798_v40 }
 0x407   : > { %v3968_v46 = vpop.f32.mrf.mxu2 }
 0x408   : > { %5740 = vst [vmem:[%s8006_s15 + $0xb8] sm:$0xff] %v5708_v8  ;;  %v3969_v45 = vadd.f32 %v3968_v46, %v3880_v50  ;;  %v5607_v8 = vpop.f32.mrf.mxu1  ;;  %v8626_v46 = vld [vmem:[#allocation87_spill] sm:$0xff] }
 0x409   : > { %v3801_v59 = vadd.f32 %v8626_v46, %v3568_v16 }
 0x40a   : > { %v5641_v32 = vadd.f32 %v5598_v23, %v3969_v45  ;;  %v5431_v3 = vpop.f32.mrf.mxu3 }
 0x40b   : > { %v3890_v11 = vadd.f32 %v8628_v10, %v3801_v59 }
 0x40c   : > { %v5677_v14 = vadd.f32 %v7989_v57, %v5641_v32  ;;  %v5515_v57 = vpop.f32.mrf.mxu0 }
 0x40d   : > { %v5516_v36 = vadd.f32 %v5515_v57, %v5426_v39  ;;  %v8631_v39 = vld [vmem:[#allocation101_spill] sm:$0xff] }
 0x40e   : > { %v5709_v0 = vmax.f32 %v5677_v14, 0.0  ;;  %v3573_v43 = vadd.f32 %v8631_v39, %v3484_v30 }
 0x40f   : > { %v3970_v18 = vpop.f32.mrf.mxu2  ;;  %v5605_v17 = vadd.f32 %v5604_v44, %v5516_v36 }
 0x410   : > { %5741 = vst [vmem:[%s8006_s15 + $0xc0] sm:$0xff] %v5709_v0  ;;  %v3971_v58 = vadd.f32 %v3970_v18, %v3882_v28  ;;  %v3803_v28 = vadd.f32 %v8630_v22, %v3570_v38  ;;  %v5609_v18 = vpop.f32.mrf.mxu1 }
 0x412   : > { %v5642_v26 = vadd.f32 %v5600_v49, %v3971_v58  ;;  %v3892_v7 = vadd.f32 %v8632_v34, %v3803_v28 }
 0x414   : > { %v5678_v12 = vadd.f32 %v8303_v42, %v5642_v26  ;;  %v5518_v4 = vpop.f32.mrf.mxu0 }
 0x415   : > { %v5519_v45 = vadd.f32 %v5518_v4, %v5429_v27 }
 0x416   : > { %v5710_v9 = vmax.f32 %v5678_v12, 0.0 }
 0x417   : > { %v3973_v6 = vpop.f32.mrf.mxu2  ;;  %v5608_v62 = vadd.f32 %v5607_v8, %v5519_v45 }
 0x418   : > { %5742 = vst [vmem:[%s8006_s15 + $0xc8] sm:$0xff] %v5710_v9  ;;  %v3974_v29 = vadd.f32 %v3973_v6, %v3885_v19  ;;  %v8634_v19 = vld [vmem:[#allocation95_spill] sm:$0xff] }
 0x419   : > { %v3806_v44 = vadd.f32 %v8634_v19, %v3573_v43 }
 0x41a   : > { %v5643_v31 = vadd.f32 %v5603_v37, %v3974_v29  ;;  %v5434_v26 = vpop.f32.mrf.mxu3  ;;  %v8635_v29 = vld [vmem:[#allocation104_spill] sm:$0xff] }
 0x41b   : > { %v3575_v35 = vadd.f32 %v8635_v29, %v3486_v25  ;;  %v3895_v40 = vadd.f32 %v8636_v56, %v3806_v44 }
 0x41c   : > { %v5679_v1 = vadd.f32 %v8303_v42, %v5643_v31  ;;  %v5520_v14 = vpop.f32.mrf.mxu0 }
 0x41d   : > { %v5521_v58 = vadd.f32 %v5520_v14, %v5431_v3  ;;  %v3808_v16 = vadd.f32 %v8637_v60, %v3575_v35 }
 0x41e   : > { %v5711_v47 = vmax.f32 %v5679_v1, 0.0 }
 0x41f   : > { %v3975_v52 = vpop.f32.mrf.mxu2  ;;  %v5610_v20 = vadd.f32 %v5609_v18, %v5521_v58 }
 0x420   : > { %5743 = vst [vmem:[%s8006_s15 + $0xd0] sm:$0xff] %v5711_v47  ;;  %v3976_v51 = vadd.f32 %v3975_v52, %v3887_v55  ;;  %v5612_v6 = vpop.f32.mrf.mxu1 }
 0x422   : > { %v5644_v50 = vadd.f32 %v5605_v17, %v3976_v51  ;;  %v5436_v4 = vpop.f32.mrf.mxu3  ;;  %v8638_v17 = vld [vmem:[#allocation128_spill] sm:$0xff] }
 0x423   : > { %v3897_v51 = vadd.f32 %v8638_v17, %v3808_v16 }
 0x424   : > { %v5680_v23 = vadd.f32 %v8303_v42, %v5644_v50  ;;  %v5523_v57 = vpop.f32.mrf.mxu0 }
 0x425   : > { %v5524_v9 = vadd.f32 %v5523_v57, %v5434_v26 }
 0x426   : > { %v5712_v32 = vmax.f32 %v5680_v23, 0.0 }
 0x427   : > { %v3978_v2 = vpop.f32.mrf.mxu2  ;;  %v5613_v31 = vadd.f32 %v5612_v6, %v5524_v9 }
 0x428   : > { %5744 = vst [vmem:[%s8006_s15 + $0xd8] sm:$0xff] %v5712_v32  ;;  %v3979_v5 = vadd.f32 %v3978_v2, %v3890_v11  ;;  %v5614_v55 = vpop.f32.mrf.mxu1 }
 0x42a   : > { %v5645_v0 = vadd.f32 %v5608_v62, %v3979_v5 }
 0x42c   : > { %v5681_v49 = vadd.f32 %v8303_v42, %v5645_v0  ;;  %v5525_v41 = vpop.f32.mrf.mxu0 }
 0x42d   : > { %v5526_v47 = vadd.f32 %v5525_v41, %v5436_v4 }
 0x42e   : > { %v5713_v48 = vmax.f32 %v5681_v49, 0.0 }
 0x42f   : > { %v3980_v12 = vpop.f32.mrf.mxu2  ;;  %v5615_v13 = vadd.f32 %v5614_v55, %v5526_v47 }
 0x430   : > { %5745 = vst [vmem:[%s8006_s15 + $0xe0] sm:$0xff] %v5713_v48  ;;  %v3981_v24 = vadd.f32 %v3980_v12, %v3892_v7 }
 0x432   : > { %v5646_v54 = vadd.f32 %v5610_v20, %v3981_v24 }
 0x434   : > { %v5682_v37 = vadd.f32 %v8303_v42, %v5646_v54 }
 0x436   : > { %v5714_v63 = vmax.f32 %v5682_v37, 0.0 }
 0x437   : > { %v3983_v27 = vpop.f32.mrf.mxu2 }
 0x438   : > { %5746 = vst [vmem:[%s8006_s15 + $0xe8] sm:$0xff] %v5714_v63  ;;  %v3984_v1 = vadd.f32 %v3983_v27, %v3895_v40 }
 0x43a   : > { %v5647_v36 = vadd.f32 %v5613_v31, %v3984_v1 }
 0x43c   : > { %v5683_v53 = vadd.f32 %v8303_v42, %v5647_v36 }
 0x43e   : > { %v5715_v52 = vmax.f32 %v5683_v53, 0.0 }
 0x43f   : > { %v3985_v8 = vpop.f32.mrf.mxu2 }
 0x440   : > { %5747 = vst [vmem:[%s8006_s15 + $0xf0] sm:$0xff] %v5715_v52  ;;  %v3986_v61 = vadd.f32 %v3985_v8, %v3897_v51 }
 0x442   : > { %v5648_v50 = vadd.f32 %v5615_v13, %v3986_v61 }
 0x444   : > { %v5684_v46 = vadd.f32 %v8303_v42, %v5648_v50 }
 0x446   : > { %v5716_v59 = vmax.f32 %v5684_v46, 0.0 }
 0x448   : > { %5748 = vst [vmem:[%s8006_s15 + $0xf8] sm:$0xff] %v5716_v59 }
 0x449   : > { %7063 = shalt.err (!%p7060_p8)
}
 0x44a   : > { %s7108_s11 = smov 128   ;;  %s7109_s15 = smov 8  }
 0x44b   : > { %6912 = dma.vmem_to_hbm [thread:$0]  (%p7178_p5), %s5763_s6, 4096, %s5765_s7, %s5750_s22, %s7108_s11, %s7108_s11, %s7109_s15  }
 0x44c PF: > { %p6924_p9 = scmp.ge.s32.totalorder %s7102_s21, 2  ;;  %s5779_s17 = sand.u32 1, %s7090_s18  }
 0x44d   : > { %s5780_s23 = scalar_lea.sflag [#allocation5], %s5779_s17 }
 0x44e   : > { %p6919_p10 = pnand %p6924_p9, %p7182_p6 }
 0x450   : > { %p6920_p11 = pneg %p6919_p10 }
 0x452   : > { %7085 = dma.done.wait (%p6920_p11), %s5780_s23, 4096  }
 0x453   : > { %7087 = vsyncadd (%p6920_p11), %s5780_s23, 4294963200  ;;  %p16_p12 = scmp.ge.s32.totalorder %s7165_s24, 4   ;;  %s8639_s18 = smov %s7094_s19 }
 0x454   : > { %s8640_s19 = smov %s7098_s20  ;;  %s8641_s20 = smov %s7176_s27 }
 0x455   : > { %s8642_s21 = smov %s7165_s24  ;;  %18 = sbr.rel (!%p16_p12) target bundleno = 4 (0x4), region = 85 }
 0x45a   :  { %5786 = vsyncpa [#allocation4], 1 }
 0x45b   :  { %5788 = vsyncpa [#allocation4 + $0x1], 1 }
 0x45c   :  { %5789 = vsyncpa [#allocation5], 1 }
 0x45d   :  { %5791 = vsyncpa [#allocation5 + $0x1], 1 }

</bundles_post_ra>
